<compile_context>
chip_gen: v5e
topology: v5e:2x2
jax: 0.10.0
libtpu: 0.0.40
codegen_flags: <defaults>
</compile_context>

<pallas_src>
import math
from functools import partial

import numpy as np
import jax
import jax.numpy as jnp
from jax import lax
from jax.experimental import pallas as pl
from jax.experimental.pallas import tpu as pltpu

# ----------------------------------------------------------------------------------
# Synthetic "configs" mirroring _MAFPiecewiseRQS.__init__
# ----------------------------------------------------------------------------------
DIM_INPUT = 4            # configs.DIM_INPUT   (features)
DIM_HIDDEN = 32          # configs.DIM_HIDDEN
NUM_RQS_BINS = 8         # configs.NUM_RQS_BINS
TAILS = "linear"         # configs.TAILS
TAIL_BOUND = 3.0         # configs.TAIL_BOUND
NUM_BLOCKS = 2           # configs.NUM_BLOCKS
USE_RESIDUAL_BLOCKS = True
DROPOUT = 0.0            # dropout(p=0) == identity
USE_BATCH_NORM = False

MIN_BIN_WIDTH = 1e-3
MIN_BIN_HEIGHT = 1e-3
MIN_DERIVATIVE = 1e-3
SEARCHSORTED_EPS = 1e-6

# tails == "linear"  ->  widths(K) + heights(K) + interior derivatives(K-1)
OUT_MULT = 3 * NUM_RQS_BINS - 1        # 23

# packed final-layer layout: per feature a 32-column group [w(8) | h(8) | d(7) | pad(9)]
PACK_STRIDE = 32
assert OUT_MULT <= PACK_STRIDE
PACKED_OUT = DIM_INPUT * PACK_STRIDE   # 128 == one full vreg lane width

# The linear-tail boundary derivative must be exactly 1.0 for the in-kernel constant
# to be valid:  min_derivative + softplus(log(exp(1 - min_derivative) - 1)) == 1.0
_BOUNDARY_CONST = math.log(math.exp(1.0 - MIN_DERIVATIVE) - 1.0)
assert abs(MIN_DERIVATIVE + math.log1p(math.exp(_BOUNDARY_CONST)) - 1.0) < 1e-6, \
    "tail-derivative constant no longer reduces to 1.0; update _fused_maf_rqs_kernel"


# ----------------------------------------------------------------------------------
# MADE masks (nflows MaskedLinear, non-random masks) and synthetic parameters
# ----------------------------------------------------------------------------------
def _made_masks(features, hidden, out_mult):
    in_deg = np.arange(1, features + 1)
    hid_deg = np.arange(hidden) % max(1, features - 1) + min(1, features - 1)
    # torch masks are (out, in); keep the transpose for the x @ W form.
    m_init = (hid_deg[:, None] >= in_deg[None, :]).astype(np.float32).T      # (F, H)
    m_hid = (hid_deg[:, None] >= hid_deg[None, :]).astype(np.float32).T      # (H, H)
    out_deg = np.repeat(in_deg, out_mult)                                    # nflows tile()
    m_final = (out_deg[:, None] > hid_deg[None, :]).astype(np.float32).T     # (H, F*M)
    return m_init, m_hid, m_final


def _linear_init(key, fan_in, fan_out):
    kw, kb = jax.random.split(key)
    bound = 1.0 / math.sqrt(fan_in)
    W = jax.random.uniform(kw, (fan_in, fan_out), jnp.float32, -bound, bound)
    b = jax.random.uniform(kb, (1, fan_out), jnp.float32, -bound, bound)
    return W, b


def init_maf_params(key):
    """Synthetic parameters in the PyTorch/nflows layout (final layer (H, F*23))."""
    m_init, m_hid, m_final = _made_masks(DIM_INPUT, DIM_HIDDEN, OUT_MULT)
    keys = jax.random.split(key, 2 + 2 * NUM_BLOCKS)
    W0, b0 = _linear_init(keys[0], DIM_INPUT, DIM_HIDDEN)
    W0 = W0 * m_init
    blocks = []
    for i in range(NUM_BLOCKS):
        Wa, ba = _linear_init(keys[1 + 2 * i], DIM_HIDDEN, DIM_HIDDEN)
        Wb, bb = _linear_init(keys[2 + 2 * i], DIM_HIDDEN, DIM_HIDDEN)
        blocks.append((Wa * m_hid, ba, Wb * m_hid, bb))
    Wf, bf = _linear_init(keys[-1], DIM_HIDDEN, DIM_INPUT * OUT_MULT)
    Wf = Wf * m_final
    return W0, b0, blocks, Wf, bf


def pack_params(params):
    """One-time host-side repack: pad the final layer to F groups of 32 columns."""
    W0, b0, blocks, Wf, bf = params
    H = W0.shape[1]
    M = OUT_MULT
    Wf_np = np.asarray(Wf)
    bf_np = np.asarray(bf)
    Wp = np.zeros((H, PACKED_OUT), np.float32)
    bp = np.zeros((1, PACKED_OUT), np.float32)
    for f in range(DIM_INPUT):
        Wp[:, f * PACK_STRIDE:f * PACK_STRIDE + M] = Wf_np[:, f * M:(f + 1) * M]
        bp[:, f * PACK_STRIDE:f * PACK_STRIDE + M] = bf_np[:, f * M:(f + 1) * M]
    flat = [W0, b0]
    for (Wa, ba, Wb, bb) in blocks:
        flat += [Wa, ba, Wb, bb]
    flat += [jnp.asarray(Wp), jnp.asarray(bp)]
    return flat


# ----------------------------------------------------------------------------------
# Fused kernel: MADE autoregressive net  +  unconstrained RQS spline (tails="linear")
# ----------------------------------------------------------------------------------
def _fused_maf_rqs_kernel(*refs, num_blocks, features, num_bins, pack_stride,
                          tail_bound, min_bin_width, min_bin_height, min_derivative):
    x_ref = refs[0]
    w0, b0 = refs[1], refs[2]
    block_refs = refs[3:3 + 4 * num_blocks]
    wf, bf = refs[3 + 4 * num_blocks], refs[4 + 4 * num_blocks]
    y_ref = refs[5 + 4 * num_blocks]
    lad_ref = refs[6 + 4 * num_blocks]

    K = num_bins
    left, right = -tail_bound, tail_bound
    bottom, top = -tail_bound, tail_bound

    x = x_ref[...]                                              # (TB, F) f32
    TB = x.shape[0]

    # ------------------- MADE masked residual MLP (all resident) -------------------
    h = jnp.dot(x, w0[...], preferred_element_type=jnp.float32) + b0[...]
    for i in range(num_blocks):
        wa, ba, wb, bb = block_refs[4 * i:4 * i + 4]
        t = jnp.maximum(h, 0.0)                                 # activation
        t = jnp.dot(t, wa[...], preferred_element_type=jnp.float32) + ba[...]
        t = jnp.maximum(t, 0.0)                                 # activation
        # dropout(p=0.0) == identity; batch norm disabled by configs
        t = jnp.dot(t, wb[...], preferred_element_type=jnp.float32) + bb[...]
        h = h + t                                               # residual add
    # packed final layer: feature f owns columns [f*32, f*32+23) = [w(K)|h(K)|d(K-1)]
    ar = jnp.dot(h, wf[...], preferred_element_type=jnp.float32) + bf[...]   # (TB, 128)

    # ------------------- unconstrained rational-quadratic spline -------------------
    # triangular masks for the inclusive / exclusive bin cumsums (built in-kernel)
    rk = lax.broadcasted_iota(jnp.int32, (K, K), 0)
    ck = lax.broadcasted_iota(jnp.int32, (K, K), 1)
    tri_inc = (rk <= ck).astype(jnp.float32)
    tri_exc = (rk < ck).astype(jnp.float32)

    lane_k = lax.broadcasted_iota(jnp.int32, (TB, K), 1)
    lane_f = lax.broadcasted_iota(jnp.int32, (TB, features), 1)

    def _softmax_bins(u, min_bin):
        m = jnp.max(u, axis=-1, keepdims=True)
        e = jnp.exp(u - m)
        s = e / jnp.sum(e, axis=-1, keepdims=True)
        return min_bin + (1.0 - min_bin * K) * s

    y_out = x                                                   # identity linear tails
    lad_sum = jnp.zeros((TB, 1), jnp.float32)

    for f in range(features):                                   # unrolled, F == 4
        base = f * pack_stride
        x_f = x[:, f:f + 1]                                     # (TB, 1)
        uw = ar[:, base:base + K]                               # (TB, K)
        uh = ar[:, base + K:base + 2 * K]                       # (TB, K)
        # width-K slice: lanes 0..K-2 hold interior derivatives, lane K-1 is the
        # zero-padded column (finite; only "selected" where the exact boundary
        # constant 1.0 overrides it below).
        ud = ar[:, base + 2 * K:base + 3 * K]                   # (TB, K)

        w = _softmax_bins(uw, min_bin_width)
        hgt = _softmax_bins(uh, min_bin_height)

        cw = (right - left) * jnp.dot(w, tri_inc, preferred_element_type=jnp.float32) + left
        cw = jnp.where(lane_k == K - 1, right, cw)              # exact right endpoint
        cw_prev = (right - left) * jnp.dot(w, tri_exc, preferred_element_type=jnp.float32) + left
        widths = cw - cw_prev

        ch = (top - bottom) * jnp.dot(hgt, tri_inc, preferred_element_type=jnp.float32) + bottom
        ch = jnp.where(lane_k == K - 1, top, ch)                # exact top endpoint
        ch_prev = (top - bottom) * jnp.dot(hgt, tri_exc, preferred_element_type=jnp.float32) + bottom
        heights = ch - ch_prev

        # derivatives = min_derivative + softplus(ud); tail derivatives are exactly 1.0
        d_int = min_derivative + (jnp.maximum(ud, 0.0)
                                  + jnp.log(1.0 + jnp.exp(-jnp.abs(ud))))

        inside = jnp.logical_and(x_f >= left, x_f <= right)     # (TB, 1)
        xc = jnp.clip(x_f, left, right)

        # searchsorted over [c_1, ..., c_{K-1}, right + eps]
        cw_eps = jnp.where(lane_k == K - 1, right + SEARCHSORTED_EPS, cw)
        bin_idx = jnp.sum((xc >= cw_eps).astype(jnp.int32), axis=-1, keepdims=True)

        onehot = (lane_k == bin_idx).astype(jnp.float32)        # (TB, K)
        onehot_m1 = (lane_k == bin_idx - 1).astype(jnp.float32)

        def _gather(v, oh=onehot):
            return jnp.sum(v * oh, axis=-1, keepdims=True)

        in_cw = _gather(cw_prev)
        in_w = _gather(widths)
        in_ch = _gather(ch_prev)
        in_h = _gather(heights)
        in_delta = in_h / in_w                                  # == gather(heights/widths)

        one = jnp.float32(1.0)
        in_d = jnp.where(bin_idx == 0, one, _gather(d_int, onehot_m1))
        in_d1 = jnp.where(bin_idx == K - 1, one, _gather(d_int, onehot))

        theta = (xc - in_cw) / in_w
        one_m_theta = 1.0 - theta
        ttm = theta * one_m_theta
        numerator = in_h * (in_delta * theta * theta + in_d * ttm)
        denominator = in_delta + (in_d + in_d1 - 2.0 * in_delta) * ttm
        inv_den = 1.0 / denominator                             # exact recip, reused
        y_spline = in_ch + numerator * inv_den
        deriv_num = (in_delta * in_delta) * (in_d1 * theta * theta
                                             + 2.0 * in_delta * ttm
                                             + in_d * one_m_theta * one_m_theta)
        lad_spline = jnp.log(deriv_num * inv_den * inv_den)     # == log(num) - 2*log(den)

        sel = jnp.logical_and(lane_f == f, inside)              # (TB, F)
        y_out = jnp.where(sel, y_spline, y_out)                 # write feature column f
        lad_sum = lad_sum + jnp.where(inside, lad_spline, 0.0)  # in-kernel feature sum

    y_ref[...] = y_out
    lad_ref[...] = lad_sum


# ----------------------------------------------------------------------------------
# Wrapper (== _MAFPiecewiseRQS.forward -> (outputs, logabsdet))
# ----------------------------------------------------------------------------------
def _choose_batch_tile(batch):
    # One batch tile per grid step.  256 rows fill the MXU on v6e/v7x; the per-tile
    # working set (x, packed params, spline temps ~< 1 MiB) is far below v7x's 64 MiB
    # VMEM even double-buffered, so no vmem_limit_bytes override is needed.
    return batch if batch <= 256 else 256


def maf_piecewise_rqs_forward(x, packed_params):
    B, F = x.shape
    assert F == DIM_INPUT
    TB = _choose_batch_tile(B)
    num_tiles = pl.cdiv(B, TB)
    Bp = num_tiles * TB
    x_in = x if Bp == B else jnp.pad(x, ((0, Bp - B), (0, 0)))

    in_specs = [pl.BlockSpec((TB, F), lambda i: (i, 0))]                       # batch-blocked
    in_specs += [pl.BlockSpec(w.shape, lambda i: (0, 0)) for w in packed_params]  # resident
    out_specs = (pl.BlockSpec((TB, F), lambda i: (i, 0)),
                 pl.BlockSpec((TB, 1), lambda i: (i, 0)))
    out_shape = (jax.ShapeDtypeStruct((Bp, F), jnp.float32),
                 jax.ShapeDtypeStruct((Bp, 1), jnp.float32))

    y, lad = pl.pallas_call(
        partial(_fused_maf_rqs_kernel,
                num_blocks=NUM_BLOCKS, features=F, num_bins=NUM_RQS_BINS,
                pack_stride=PACK_STRIDE, tail_bound=TAIL_BOUND,
                min_bin_width=MIN_BIN_WIDTH, min_bin_height=MIN_BIN_HEIGHT,
                min_derivative=MIN_DERIVATIVE),
        grid=(num_tiles,),
        in_specs=in_specs,
        out_specs=out_specs,
        out_shape=out_shape,
        compiler_params=pltpu.CompilerParams(dimension_semantics=("parallel",)),
    )(x_in, *packed_params)

    return y[:B], lad[:B, 0]                                   # (B, F), (B,)


if __name__ == "__main__":
    key = jax.random.PRNGKey(0)
    kx, kp = jax.random.split(key)
    params = init_maf_params(kp)
    packed = pack_params(params)

    fwd = jax.jit(maf_piecewise_rqs_forward)

    # small demo batch (grid=(1,)); scaled so some points land outside the tail bound
    BATCH = 8
    x = 2.0 * jax.random.normal(kx, (BATCH, DIM_INPUT), jnp.float32)
    outputs, logabsdet = fwd(x, packed)
    jax.block_until_ready((outputs, logabsdet))
    assert outputs.shape == (BATCH, DIM_INPUT) and logabsdet.shape == (BATCH,)
    assert bool(jnp.all(jnp.isfinite(outputs))) and bool(jnp.all(jnp.isfinite(logabsdet)))
    # linear tails: points outside [-TAIL_BOUND, TAIL_BOUND] must pass through unchanged
    outside = jnp.abs(x) > TAIL_BOUND
    assert bool(jnp.all(jnp.where(outside, outputs == x, True)))

    # larger batch exercising the tiled / padded / parallel-grid path (TB=256, grid=(2,))
    BATCH2 = 300
    x2 = 2.0 * jax.random.normal(jax.random.PRNGKey(1), (BATCH2, DIM_INPUT), jnp.float32)
    out2, lad2 = fwd(x2, packed)
    jax.block_until_ready((out2, lad2))
    assert out2.shape == (BATCH2, DIM_INPUT) and lad2.shape == (BATCH2,)
    assert bool(jnp.all(jnp.isfinite(out2))) and bool(jnp.all(jnp.isfinite(lad2)))

    print("KERNEL_OK")
</pallas_src>

<mosaic_0001>
module attributes {stable_mosaic.version = 11 : i64} {
  func.func @_fused_maf_rqs_kernel(%arg0: i32, %arg1: memref<8x4xf32, #tpu.memory_space<vmem>>, %arg2: memref<4x32xf32, #tpu.memory_space<vmem>>, %arg3: memref<1x32xf32, #tpu.memory_space<vmem>>, %arg4: memref<32x32xf32, #tpu.memory_space<vmem>>, %arg5: memref<1x32xf32, #tpu.memory_space<vmem>>, %arg6: memref<32x32xf32, #tpu.memory_space<vmem>>, %arg7: memref<1x32xf32, #tpu.memory_space<vmem>>, %arg8: memref<32x32xf32, #tpu.memory_space<vmem>>, %arg9: memref<1x32xf32, #tpu.memory_space<vmem>>, %arg10: memref<32x32xf32, #tpu.memory_space<vmem>>, %arg11: memref<1x32xf32, #tpu.memory_space<vmem>>, %arg12: memref<32x128xf32, #tpu.memory_space<vmem>>, %arg13: memref<1x128xf32, #tpu.memory_space<vmem>>, %arg14: memref<8x4xf32, #tpu.memory_space<vmem>>, %arg15: memref<8x1xf32, #tpu.memory_space<vmem>>) attributes {dimension_semantics = [#tpu.dimension_semantics<parallel>], iteration_bounds = array<i64: 1>, scalar_prefetch = 0 : i64, scratch_operands = 0 : i64, tpu.core_type = #tpu.core_type<tc>, window_params = [{transform_indices = @transform_0, window_bounds = array<i64: 8, 4>}, {pipeline_mode = #tpu.pipeline_mode<synchronous>, transform_indices = @transform_1, window_bounds = array<i64: 4, 32>}, {pipeline_mode = #tpu.pipeline_mode<synchronous>, transform_indices = @transform_2, window_bounds = array<i64: 1, 32>}, {pipeline_mode = #tpu.pipeline_mode<synchronous>, transform_indices = @transform_3, window_bounds = array<i64: 32, 32>}, {pipeline_mode = #tpu.pipeline_mode<synchronous>, transform_indices = @transform_4, window_bounds = array<i64: 1, 32>}, {pipeline_mode = #tpu.pipeline_mode<synchronous>, transform_indices = @transform_5, window_bounds = array<i64: 32, 32>}, {pipeline_mode = #tpu.pipeline_mode<synchronous>, transform_indices = @transform_6, window_bounds = array<i64: 1, 32>}, {pipeline_mode = #tpu.pipeline_mode<synchronous>, transform_indices = @transform_7, window_bounds = array<i64: 32, 32>}, {pipeline_mode = #tpu.pipeline_mode<synchronous>, transform_indices = @transform_8, window_bounds = array<i64: 1, 32>}, {pipeline_mode = #tpu.pipeline_mode<synchronous>, transform_indices = @transform_9, window_bounds = array<i64: 32, 32>}, {pipeline_mode = #tpu.pipeline_mode<synchronous>, transform_indices = @transform_10, window_bounds = array<i64: 1, 32>}, {pipeline_mode = #tpu.pipeline_mode<synchronous>, transform_indices = @transform_11, window_bounds = array<i64: 32, 128>}, {pipeline_mode = #tpu.pipeline_mode<synchronous>, transform_indices = @transform_12, window_bounds = array<i64: 1, 128>}, {transform_indices = @transform_13, window_bounds = array<i64: 8, 4>}, {transform_indices = @transform_14, window_bounds = array<i64: 8, 1>}]} {
    %c0 = arith.constant 0 : index
    %c0_0 = arith.constant 0 : index
    %0 = vector.load %arg1[%c0, %c0_0] : memref<8x4xf32, #tpu.memory_space<vmem>>, vector<8x4xf32>
    %c0_1 = arith.constant 0 : index
    %c0_2 = arith.constant 0 : index
    %1 = vector.load %arg2[%c0_1, %c0_2] : memref<4x32xf32, #tpu.memory_space<vmem>>, vector<4x32xf32>
    %cst = arith.constant dense<0.000000e+00> : vector<8x32xf32>
    %2 = tpu.matmul %0, %1, %cst {dimension_numbers = #tpu.dot_dimension_numbers<[1], [0], [0], [1], [0, 0, 1, 1], [], []>} : vector<8x4xf32>, vector<4x32xf32>, vector<8x32xf32> -> vector<8x32xf32>
    %c0_3 = arith.constant 0 : index
    %c0_4 = arith.constant 0 : index
    %3 = vector.load %arg3[%c0_3, %c0_4] : memref<1x32xf32, #tpu.memory_space<vmem>>, vector<1x32xf32>
    %4 = vector.broadcast %3 : vector<1x32xf32> to vector<8x32xf32>
    %5 = arith.addf %2, %4 : vector<8x32xf32>
    %cst_5 = arith.constant 0.000000e+00 : f32
    %6 = vector.broadcast %cst_5 : f32 to vector<8x32xf32>
    %7 = arith.maximumf %5, %6 : vector<8x32xf32>
    %c0_6 = arith.constant 0 : index
    %c0_7 = arith.constant 0 : index
    %8 = vector.load %arg4[%c0_6, %c0_7] : memref<32x32xf32, #tpu.memory_space<vmem>>, vector<32x32xf32>
    %cst_8 = arith.constant dense<0.000000e+00> : vector<8x32xf32>
    %9 = tpu.matmul %7, %8, %cst_8 {dimension_numbers = #tpu.dot_dimension_numbers<[1], [0], [0], [1], [0, 0, 1, 1], [], []>} : vector<8x32xf32>, vector<32x32xf32>, vector<8x32xf32> -> vector<8x32xf32>
    %c0_9 = arith.constant 0 : index
    %c0_10 = arith.constant 0 : index
    %10 = vector.load %arg5[%c0_9, %c0_10] : memref<1x32xf32, #tpu.memory_space<vmem>>, vector<1x32xf32>
    %11 = vector.broadcast %10 : vector<1x32xf32> to vector<8x32xf32>
    %12 = arith.addf %9, %11 : vector<8x32xf32>
    %cst_11 = arith.constant 0.000000e+00 : f32
    %13 = vector.broadcast %cst_11 : f32 to vector<8x32xf32>
    %14 = arith.maximumf %12, %13 : vector<8x32xf32>
    %c0_12 = arith.constant 0 : index
    %c0_13 = arith.constant 0 : index
    %15 = vector.load %arg6[%c0_12, %c0_13] : memref<32x32xf32, #tpu.memory_space<vmem>>, vector<32x32xf32>
    %cst_14 = arith.constant dense<0.000000e+00> : vector<8x32xf32>
    %16 = tpu.matmul %14, %15, %cst_14 {dimension_numbers = #tpu.dot_dimension_numbers<[1], [0], [0], [1], [0, 0, 1, 1], [], []>} : vector<8x32xf32>, vector<32x32xf32>, vector<8x32xf32> -> vector<8x32xf32>
    %c0_15 = arith.constant 0 : index
    %c0_16 = arith.constant 0 : index
    %17 = vector.load %arg7[%c0_15, %c0_16] : memref<1x32xf32, #tpu.memory_space<vmem>>, vector<1x32xf32>
    %18 = vector.broadcast %17 : vector<1x32xf32> to vector<8x32xf32>
    %19 = arith.addf %16, %18 : vector<8x32xf32>
    %20 = arith.addf %5, %19 : vector<8x32xf32>
    %cst_17 = arith.constant 0.000000e+00 : f32
    %21 = vector.broadcast %cst_17 : f32 to vector<8x32xf32>
    %22 = arith.maximumf %20, %21 : vector<8x32xf32>
    %c0_18 = arith.constant 0 : index
    %c0_19 = arith.constant 0 : index
    %23 = vector.load %arg8[%c0_18, %c0_19] : memref<32x32xf32, #tpu.memory_space<vmem>>, vector<32x32xf32>
    %cst_20 = arith.constant dense<0.000000e+00> : vector<8x32xf32>
    %24 = tpu.matmul %22, %23, %cst_20 {dimension_numbers = #tpu.dot_dimension_numbers<[1], [0], [0], [1], [0, 0, 1, 1], [], []>} : vector<8x32xf32>, vector<32x32xf32>, vector<8x32xf32> -> vector<8x32xf32>
    %c0_21 = arith.constant 0 : index
    %c0_22 = arith.constant 0 : index
    %25 = vector.load %arg9[%c0_21, %c0_22] : memref<1x32xf32, #tpu.memory_space<vmem>>, vector<1x32xf32>
    %26 = vector.broadcast %25 : vector<1x32xf32> to vector<8x32xf32>
    %27 = arith.addf %24, %26 : vector<8x32xf32>
    %cst_23 = arith.constant 0.000000e+00 : f32
    %28 = vector.broadcast %cst_23 : f32 to vector<8x32xf32>
    %29 = arith.maximumf %27, %28 : vector<8x32xf32>
    %c0_24 = arith.constant 0 : index
    %c0_25 = arith.constant 0 : index
    %30 = vector.load %arg10[%c0_24, %c0_25] : memref<32x32xf32, #tpu.memory_space<vmem>>, vector<32x32xf32>
    %cst_26 = arith.constant dense<0.000000e+00> : vector<8x32xf32>
    %31 = tpu.matmul %29, %30, %cst_26 {dimension_numbers = #tpu.dot_dimension_numbers<[1], [0], [0], [1], [0, 0, 1, 1], [], []>} : vector<8x32xf32>, vector<32x32xf32>, vector<8x32xf32> -> vector<8x32xf32>
    %c0_27 = arith.constant 0 : index
    %c0_28 = arith.constant 0 : index
    %32 = vector.load %arg11[%c0_27, %c0_28] : memref<1x32xf32, #tpu.memory_space<vmem>>, vector<1x32xf32>
    %33 = vector.broadcast %32 : vector<1x32xf32> to vector<8x32xf32>
    %34 = arith.addf %31, %33 : vector<8x32xf32>
    %35 = arith.addf %20, %34 : vector<8x32xf32>
    %c0_29 = arith.constant 0 : index
    %c0_30 = arith.constant 0 : index
    %36 = vector.load %arg12[%c0_29, %c0_30] : memref<32x128xf32, #tpu.memory_space<vmem>>, vector<32x128xf32>
    %cst_31 = arith.constant dense<0.000000e+00> : vector<8x128xf32>
    %37 = tpu.matmul %35, %36, %cst_31 {dimension_numbers = #tpu.dot_dimension_numbers<[1], [0], [0], [1], [0, 0, 1, 1], [], []>} : vector<8x32xf32>, vector<32x128xf32>, vector<8x128xf32> -> vector<8x128xf32>
    %c0_32 = arith.constant 0 : index
    %c0_33 = arith.constant 0 : index
    %38 = vector.load %arg13[%c0_32, %c0_33] : memref<1x128xf32, #tpu.memory_space<vmem>>, vector<1x128xf32>
    %39 = vector.broadcast %38 : vector<1x128xf32> to vector<8x128xf32>
    %40 = arith.addf %37, %39 : vector<8x128xf32>
    %41 = tpu.iota {dimensions = array<i32: 0>} : vector<8x8xi32>
    %42 = tpu.iota {dimensions = array<i32: 1>} : vector<8x8xi32>
    %43 = arith.cmpi sle, %41, %42 : vector<8x8xi32>
    %44 = arith.extui %43 : vector<8x8xi1> to vector<8x8xi32>
    %45 = arith.sitofp %44 : vector<8x8xi32> to vector<8x8xf32>
    %46 = arith.cmpi slt, %41, %42 : vector<8x8xi32>
    %47 = arith.extui %46 : vector<8x8xi1> to vector<8x8xi32>
    %48 = arith.sitofp %47 : vector<8x8xi32> to vector<8x8xf32>
    %49 = tpu.iota {dimensions = array<i32: 1>} : vector<8x8xi32>
    %50 = tpu.iota {dimensions = array<i32: 1>} : vector<8x4xi32>
    %cst_34 = arith.constant 0.000000e+00 : f32
    %51 = vector.broadcast %cst_34 : f32 to vector<8x1xf32>
    %52 = vector.extract_strided_slice %0 {offsets = [0, 0], sizes = [8, 1], strides = [1, 1]} : vector<8x4xf32> to vector<8x1xf32>
    %53 = vector.extract_strided_slice %40 {offsets = [0, 0], sizes = [8, 8], strides = [1, 1]} : vector<8x128xf32> to vector<8x8xf32>
    %54 = vector.extract_strided_slice %40 {offsets = [0, 8], sizes = [8, 8], strides = [1, 1]} : vector<8x128xf32> to vector<8x8xf32>
    %55 = vector.extract_strided_slice %40 {offsets = [0, 16], sizes = [8, 8], strides = [1, 1]} : vector<8x128xf32> to vector<8x8xf32>
    %cst_35 = arith.constant dense<0xFF800000> : vector<8xf32>
    %56 = vector.multi_reduction <maximumf>, %53, %cst_35 [1] : vector<8x8xf32> to vector<8xf32>
    %57 = vector.shape_cast %56 : vector<8xf32> to vector<8x1xf32>
    %58 = vector.broadcast %57 : vector<8x1xf32> to vector<8x8xf32>
    %59 = arith.subf %53, %58 : vector<8x8xf32>
    %60 = math.exp %59 : vector<8x8xf32>
    %cst_36 = arith.constant dense<0.000000e+00> : vector<8xf32>
    %61 = vector.multi_reduction <add>, %60, %cst_36 [1] : vector<8x8xf32> to vector<8xf32>
    %62 = vector.shape_cast %61 : vector<8xf32> to vector<8x1xf32>
    %63 = vector.broadcast %62 : vector<8x1xf32> to vector<8x8xf32>
    %64 = arith.divf %60, %63 : vector<8x8xf32>
    %cst_37 = arith.constant 0.991999983 : f32
    %65 = vector.broadcast %cst_37 : f32 to vector<8x8xf32>
    %66 = arith.mulf %65, %64 : vector<8x8xf32>
    %cst_38 = arith.constant 1.000000e-03 : f32
    %67 = vector.broadcast %cst_38 : f32 to vector<8x8xf32>
    %68 = arith.addf %67, %66 : vector<8x8xf32>
    %cst_39 = arith.constant dense<0xFF800000> : vector<8xf32>
    %69 = vector.multi_reduction <maximumf>, %54, %cst_39 [1] : vector<8x8xf32> to vector<8xf32>
    %70 = vector.shape_cast %69 : vector<8xf32> to vector<8x1xf32>
    %71 = vector.broadcast %70 : vector<8x1xf32> to vector<8x8xf32>
    %72 = arith.subf %54, %71 : vector<8x8xf32>
    %73 = math.exp %72 : vector<8x8xf32>
    %cst_40 = arith.constant dense<0.000000e+00> : vector<8xf32>
    %74 = vector.multi_reduction <add>, %73, %cst_40 [1] : vector<8x8xf32> to vector<8xf32>
    %75 = vector.shape_cast %74 : vector<8xf32> to vector<8x1xf32>
    %76 = vector.broadcast %75 : vector<8x1xf32> to vector<8x8xf32>
    %77 = arith.divf %73, %76 : vector<8x8xf32>
    %cst_41 = arith.constant 0.991999983 : f32
    %78 = vector.broadcast %cst_41 : f32 to vector<8x8xf32>
    %79 = arith.mulf %78, %77 : vector<8x8xf32>
    %cst_42 = arith.constant 1.000000e-03 : f32
    %80 = vector.broadcast %cst_42 : f32 to vector<8x8xf32>
    %81 = arith.addf %80, %79 : vector<8x8xf32>
    %cst_43 = arith.constant dense<0.000000e+00> : vector<8x8xf32>
    %82 = tpu.matmul %68, %45, %cst_43 {dimension_numbers = #tpu.dot_dimension_numbers<[1], [0], [0], [1], [0, 0, 1, 1], [], []>} : vector<8x8xf32>, vector<8x8xf32>, vector<8x8xf32> -> vector<8x8xf32>
    %cst_44 = arith.constant 6.000000e+00 : f32
    %83 = vector.broadcast %cst_44 : f32 to vector<8x8xf32>
    %84 = arith.mulf %83, %82 : vector<8x8xf32>
    %cst_45 = arith.constant -3.000000e+00 : f32
    %85 = vector.broadcast %cst_45 : f32 to vector<8x8xf32>
    %86 = arith.addf %84, %85 : vector<8x8xf32>
    %c7_i32 = arith.constant 7 : i32
    %87 = vector.broadcast %c7_i32 : i32 to vector<8x8xi32>
    %88 = arith.cmpi eq, %49, %87 : vector<8x8xi32>
    %cst_46 = arith.constant 3.000000e+00 : f32
    %89 = vector.broadcast %cst_46 : f32 to vector<8x8xf32>
    %90 = arith.select %88, %89, %86 : vector<8x8xi1>, vector<8x8xf32>
    %cst_47 = arith.constant dense<0.000000e+00> : vector<8x8xf32>
    %91 = tpu.matmul %68, %48, %cst_47 {dimension_numbers = #tpu.dot_dimension_numbers<[1], [0], [0], [1], [0, 0, 1, 1], [], []>} : vector<8x8xf32>, vector<8x8xf32>, vector<8x8xf32> -> vector<8x8xf32>
    %cst_48 = arith.constant 6.000000e+00 : f32
    %92 = vector.broadcast %cst_48 : f32 to vector<8x8xf32>
    %93 = arith.mulf %92, %91 : vector<8x8xf32>
    %cst_49 = arith.constant -3.000000e+00 : f32
    %94 = vector.broadcast %cst_49 : f32 to vector<8x8xf32>
    %95 = arith.addf %93, %94 : vector<8x8xf32>
    %96 = arith.subf %90, %95 : vector<8x8xf32>
    %cst_50 = arith.constant dense<0.000000e+00> : vector<8x8xf32>
    %97 = tpu.matmul %81, %45, %cst_50 {dimension_numbers = #tpu.dot_dimension_numbers<[1], [0], [0], [1], [0, 0, 1, 1], [], []>} : vector<8x8xf32>, vector<8x8xf32>, vector<8x8xf32> -> vector<8x8xf32>
    %cst_51 = arith.constant 6.000000e+00 : f32
    %98 = vector.broadcast %cst_51 : f32 to vector<8x8xf32>
    %99 = arith.mulf %98, %97 : vector<8x8xf32>
    %cst_52 = arith.constant -3.000000e+00 : f32
    %100 = vector.broadcast %cst_52 : f32 to vector<8x8xf32>
    %101 = arith.addf %99, %100 : vector<8x8xf32>
    %c7_i32_53 = arith.constant 7 : i32
    %102 = vector.broadcast %c7_i32_53 : i32 to vector<8x8xi32>
    %103 = arith.cmpi eq, %49, %102 : vector<8x8xi32>
    %cst_54 = arith.constant 3.000000e+00 : f32
    %104 = vector.broadcast %cst_54 : f32 to vector<8x8xf32>
    %105 = arith.select %103, %104, %101 : vector<8x8xi1>, vector<8x8xf32>
    %cst_55 = arith.constant dense<0.000000e+00> : vector<8x8xf32>
    %106 = tpu.matmul %81, %48, %cst_55 {dimension_numbers = #tpu.dot_dimension_numbers<[1], [0], [0], [1], [0, 0, 1, 1], [], []>} : vector<8x8xf32>, vector<8x8xf32>, vector<8x8xf32> -> vector<8x8xf32>
    %cst_56 = arith.constant 6.000000e+00 : f32
    %107 = vector.broadcast %cst_56 : f32 to vector<8x8xf32>
    %108 = arith.mulf %107, %106 : vector<8x8xf32>
    %cst_57 = arith.constant -3.000000e+00 : f32
    %109 = vector.broadcast %cst_57 : f32 to vector<8x8xf32>
    %110 = arith.addf %108, %109 : vector<8x8xf32>
    %111 = arith.subf %105, %110 : vector<8x8xf32>
    %cst_58 = arith.constant 0.000000e+00 : f32
    %112 = vector.broadcast %cst_58 : f32 to vector<8x8xf32>
    %113 = arith.maximumf %55, %112 : vector<8x8xf32>
    %114 = math.absf %55 : vector<8x8xf32>
    %cst_59 = arith.constant 0.000000e+00 : f32
    %115 = vector.broadcast %cst_59 : f32 to vector<8x8xf32>
    %116 = arith.subf %115, %114 : vector<8x8xf32>
    %117 = math.exp %116 : vector<8x8xf32>
    %cst_60 = arith.constant 1.000000e+00 : f32
    %118 = vector.broadcast %cst_60 : f32 to vector<8x8xf32>
    %119 = arith.addf %118, %117 : vector<8x8xf32>
    %120 = math.log %119 : vector<8x8xf32>
    %121 = arith.addf %113, %120 : vector<8x8xf32>
    %cst_61 = arith.constant 1.000000e-03 : f32
    %122 = vector.broadcast %cst_61 : f32 to vector<8x8xf32>
    %123 = arith.addf %122, %121 : vector<8x8xf32>
    %cst_62 = arith.constant -3.000000e+00 : f32
    %124 = vector.broadcast %cst_62 : f32 to vector<8x1xf32>
    %125 = arith.cmpf oge, %52, %124 : vector<8x1xf32>
    %cst_63 = arith.constant 3.000000e+00 : f32
    %126 = vector.broadcast %cst_63 : f32 to vector<8x1xf32>
    %127 = arith.cmpf ole, %52, %126 : vector<8x1xf32>
    %128 = arith.andi %125, %127 : vector<8x1xi1>
    %cst_64 = arith.constant -3.000000e+00 : f32
    %cst_65 = arith.constant 3.000000e+00 : f32
    %129 = vector.broadcast %cst_64 : f32 to vector<8x1xf32>
    %130 = arith.maximumf %129, %52 : vector<8x1xf32>
    %131 = vector.broadcast %cst_65 : f32 to vector<8x1xf32>
    %132 = arith.minimumf %131, %130 : vector<8x1xf32>
    %c7_i32_66 = arith.constant 7 : i32
    %133 = vector.broadcast %c7_i32_66 : i32 to vector<8x8xi32>
    %134 = arith.cmpi eq, %49, %133 : vector<8x8xi32>
    %cst_67 = arith.constant 3.00000095 : f32
    %135 = vector.broadcast %cst_67 : f32 to vector<8x8xf32>
    %136 = arith.select %134, %135, %90 : vector<8x8xi1>, vector<8x8xf32>
    %137 = vector.broadcast %132 : vector<8x1xf32> to vector<8x8xf32>
    %138 = arith.cmpf oge, %137, %136 : vector<8x8xf32>
    %139 = arith.extui %138 : vector<8x8xi1> to vector<8x8xi32>
    %cst_68 = arith.constant dense<0> : vector<8xi32>
    %140 = vector.multi_reduction <add>, %139, %cst_68 [1] : vector<8x8xi32> to vector<8xi32>
    %141 = vector.shape_cast %140 : vector<8xi32> to vector<8x1xi32>
    %142 = vector.broadcast %141 : vector<8x1xi32> to vector<8x8xi32>
    %143 = arith.cmpi eq, %49, %142 : vector<8x8xi32>
    %144 = arith.extui %143 : vector<8x8xi1> to vector<8x8xi32>
    %145 = arith.sitofp %144 : vector<8x8xi32> to vector<8x8xf32>
    %c1_i32 = arith.constant 1 : i32
    %146 = vector.broadcast %c1_i32 : i32 to vector<8x1xi32>
    %147 = arith.subi %141, %146 : vector<8x1xi32>
    %148 = vector.broadcast %147 : vector<8x1xi32> to vector<8x8xi32>
    %149 = arith.cmpi eq, %49, %148 : vector<8x8xi32>
    %150 = arith.extui %149 : vector<8x8xi1> to vector<8x8xi32>
    %151 = arith.sitofp %150 : vector<8x8xi32> to vector<8x8xf32>
    %152 = arith.mulf %95, %145 : vector<8x8xf32>
    %cst_69 = arith.constant dense<0.000000e+00> : vector<8xf32>
    %153 = vector.multi_reduction <add>, %152, %cst_69 [1] : vector<8x8xf32> to vector<8xf32>
    %154 = vector.shape_cast %153 : vector<8xf32> to vector<8x1xf32>
    %155 = arith.mulf %96, %145 : vector<8x8xf32>
    %cst_70 = arith.constant dense<0.000000e+00> : vector<8xf32>
    %156 = vector.multi_reduction <add>, %155, %cst_70 [1] : vector<8x8xf32> to vector<8xf32>
    %157 = vector.shape_cast %156 : vector<8xf32> to vector<8x1xf32>
    %158 = arith.mulf %110, %145 : vector<8x8xf32>
    %cst_71 = arith.constant dense<0.000000e+00> : vector<8xf32>
    %159 = vector.multi_reduction <add>, %158, %cst_71 [1] : vector<8x8xf32> to vector<8xf32>
    %160 = vector.shape_cast %159 : vector<8xf32> to vector<8x1xf32>
    %161 = arith.mulf %111, %145 : vector<8x8xf32>
    %cst_72 = arith.constant dense<0.000000e+00> : vector<8xf32>
    %162 = vector.multi_reduction <add>, %161, %cst_72 [1] : vector<8x8xf32> to vector<8xf32>
    %163 = vector.shape_cast %162 : vector<8xf32> to vector<8x1xf32>
    %164 = arith.divf %163, %157 : vector<8x1xf32>
    %c0_i32 = arith.constant 0 : i32
    %165 = vector.broadcast %c0_i32 : i32 to vector<8x1xi32>
    %166 = arith.cmpi eq, %141, %165 : vector<8x1xi32>
    %167 = arith.mulf %123, %151 : vector<8x8xf32>
    %cst_73 = arith.constant dense<0.000000e+00> : vector<8xf32>
    %168 = vector.multi_reduction <add>, %167, %cst_73 [1] : vector<8x8xf32> to vector<8xf32>
    %169 = vector.shape_cast %168 : vector<8xf32> to vector<8x1xf32>
    %cst_74 = arith.constant 1.000000e+00 : f32
    %170 = vector.broadcast %cst_74 : f32 to vector<8x1xf32>
    %171 = arith.select %166, %170, %169 : vector<8x1xi1>, vector<8x1xf32>
    %c7_i32_75 = arith.constant 7 : i32
    %172 = vector.broadcast %c7_i32_75 : i32 to vector<8x1xi32>
    %173 = arith.cmpi eq, %141, %172 : vector<8x1xi32>
    %174 = arith.mulf %123, %145 : vector<8x8xf32>
    %cst_76 = arith.constant dense<0.000000e+00> : vector<8xf32>
    %175 = vector.multi_reduction <add>, %174, %cst_76 [1] : vector<8x8xf32> to vector<8xf32>
    %176 = vector.shape_cast %175 : vector<8xf32> to vector<8x1xf32>
    %cst_77 = arith.constant 1.000000e+00 : f32
    %177 = vector.broadcast %cst_77 : f32 to vector<8x1xf32>
    %178 = arith.select %173, %177, %176 : vector<8x1xi1>, vector<8x1xf32>
    %179 = arith.subf %132, %154 : vector<8x1xf32>
    %180 = arith.divf %179, %157 : vector<8x1xf32>
    %cst_78 = arith.constant 1.000000e+00 : f32
    %181 = vector.broadcast %cst_78 : f32 to vector<8x1xf32>
    %182 = arith.subf %181, %180 : vector<8x1xf32>
    %183 = arith.mulf %180, %182 : vector<8x1xf32>
    %184 = arith.mulf %164, %180 : vector<8x1xf32>
    %185 = arith.mulf %184, %180 : vector<8x1xf32>
    %186 = arith.mulf %171, %183 : vector<8x1xf32>
    %187 = arith.addf %185, %186 : vector<8x1xf32>
    %188 = arith.mulf %163, %187 : vector<8x1xf32>
    %189 = arith.addf %171, %178 : vector<8x1xf32>
    %cst_79 = arith.constant 2.000000e+00 : f32
    %190 = vector.broadcast %cst_79 : f32 to vector<8x1xf32>
    %191 = arith.mulf %190, %164 : vector<8x1xf32>
    %192 = arith.subf %189, %191 : vector<8x1xf32>
    %193 = arith.mulf %192, %183 : vector<8x1xf32>
    %194 = arith.addf %164, %193 : vector<8x1xf32>
    %cst_80 = arith.constant 1.000000e+00 : f32
    %195 = vector.broadcast %cst_80 : f32 to vector<8x1xf32>
    %196 = arith.divf %195, %194 : vector<8x1xf32>
    %197 = arith.mulf %188, %196 : vector<8x1xf32>
    %198 = arith.addf %160, %197 : vector<8x1xf32>
    %199 = arith.mulf %164, %164 : vector<8x1xf32>
    %200 = arith.mulf %178, %180 : vector<8x1xf32>
    %201 = arith.mulf %200, %180 : vector<8x1xf32>
    %cst_81 = arith.constant 2.000000e+00 : f32
    %202 = vector.broadcast %cst_81 : f32 to vector<8x1xf32>
    %203 = arith.mulf %202, %164 : vector<8x1xf32>
    %204 = arith.mulf %203, %183 : vector<8x1xf32>
    %205 = arith.addf %201, %204 : vector<8x1xf32>
    %206 = arith.mulf %171, %182 : vector<8x1xf32>
    %207 = arith.mulf %206, %182 : vector<8x1xf32>
    %208 = arith.addf %205, %207 : vector<8x1xf32>
    %209 = arith.mulf %199, %208 : vector<8x1xf32>
    %210 = arith.mulf %209, %196 : vector<8x1xf32>
    %211 = arith.mulf %210, %196 : vector<8x1xf32>
    %212 = math.log %211 : vector<8x1xf32>
    %c0_i32_82 = arith.constant 0 : i32
    %213 = vector.broadcast %c0_i32_82 : i32 to vector<8x4xi32>
    %214 = arith.cmpi eq, %50, %213 : vector<8x4xi32>
    %215 = vector.broadcast %128 : vector<8x1xi1> to vector<8x4xi1>
    %216 = arith.andi %214, %215 : vector<8x4xi1>
    %217 = vector.shape_cast %198 : vector<8x1xf32> to vector<8x1xf32>
    %218 = vector.broadcast %217 : vector<8x1xf32> to vector<8x4xf32>
    %219 = arith.select %216, %218, %0 : vector<8x4xi1>, vector<8x4xf32>
    %cst_83 = arith.constant 0.000000e+00 : f32
    %220 = vector.broadcast %cst_83 : f32 to vector<8x1xf32>
    %221 = arith.select %128, %212, %220 : vector<8x1xi1>, vector<8x1xf32>
    %222 = arith.addf %51, %221 : vector<8x1xf32>
    %223 = vector.extract_strided_slice %0 {offsets = [0, 1], sizes = [8, 1], strides = [1, 1]} : vector<8x4xf32> to vector<8x1xf32>
    %224 = vector.extract_strided_slice %40 {offsets = [0, 32], sizes = [8, 8], strides = [1, 1]} : vector<8x128xf32> to vector<8x8xf32>
    %225 = vector.extract_strided_slice %40 {offsets = [0, 40], sizes = [8, 8], strides = [1, 1]} : vector<8x128xf32> to vector<8x8xf32>
    %226 = vector.extract_strided_slice %40 {offsets = [0, 48], sizes = [8, 8], strides = [1, 1]} : vector<8x128xf32> to vector<8x8xf32>
    %cst_84 = arith.constant dense<0xFF800000> : vector<8xf32>
    %227 = vector.multi_reduction <maximumf>, %224, %cst_84 [1] : vector<8x8xf32> to vector<8xf32>
    %228 = vector.shape_cast %227 : vector<8xf32> to vector<8x1xf32>
    %229 = vector.broadcast %228 : vector<8x1xf32> to vector<8x8xf32>
    %230 = arith.subf %224, %229 : vector<8x8xf32>
    %231 = math.exp %230 : vector<8x8xf32>
    %cst_85 = arith.constant dense<0.000000e+00> : vector<8xf32>
    %232 = vector.multi_reduction <add>, %231, %cst_85 [1] : vector<8x8xf32> to vector<8xf32>
    %233 = vector.shape_cast %232 : vector<8xf32> to vector<8x1xf32>
    %234 = vector.broadcast %233 : vector<8x1xf32> to vector<8x8xf32>
    %235 = arith.divf %231, %234 : vector<8x8xf32>
    %cst_86 = arith.constant 0.991999983 : f32
    %236 = vector.broadcast %cst_86 : f32 to vector<8x8xf32>
    %237 = arith.mulf %236, %235 : vector<8x8xf32>
    %cst_87 = arith.constant 1.000000e-03 : f32
    %238 = vector.broadcast %cst_87 : f32 to vector<8x8xf32>
    %239 = arith.addf %238, %237 : vector<8x8xf32>
    %cst_88 = arith.constant dense<0xFF800000> : vector<8xf32>
    %240 = vector.multi_reduction <maximumf>, %225, %cst_88 [1] : vector<8x8xf32> to vector<8xf32>
    %241 = vector.shape_cast %240 : vector<8xf32> to vector<8x1xf32>
    %242 = vector.broadcast %241 : vector<8x1xf32> to vector<8x8xf32>
    %243 = arith.subf %225, %242 : vector<8x8xf32>
    %244 = math.exp %243 : vector<8x8xf32>
    %cst_89 = arith.constant dense<0.000000e+00> : vector<8xf32>
    %245 = vector.multi_reduction <add>, %244, %cst_89 [1] : vector<8x8xf32> to vector<8xf32>
    %246 = vector.shape_cast %245 : vector<8xf32> to vector<8x1xf32>
    %247 = vector.broadcast %246 : vector<8x1xf32> to vector<8x8xf32>
    %248 = arith.divf %244, %247 : vector<8x8xf32>
    %cst_90 = arith.constant 0.991999983 : f32
    %249 = vector.broadcast %cst_90 : f32 to vector<8x8xf32>
    %250 = arith.mulf %249, %248 : vector<8x8xf32>
    %cst_91 = arith.constant 1.000000e-03 : f32
    %251 = vector.broadcast %cst_91 : f32 to vector<8x8xf32>
    %252 = arith.addf %251, %250 : vector<8x8xf32>
    %cst_92 = arith.constant dense<0.000000e+00> : vector<8x8xf32>
    %253 = tpu.matmul %239, %45, %cst_92 {dimension_numbers = #tpu.dot_dimension_numbers<[1], [0], [0], [1], [0, 0, 1, 1], [], []>} : vector<8x8xf32>, vector<8x8xf32>, vector<8x8xf32> -> vector<8x8xf32>
    %cst_93 = arith.constant 6.000000e+00 : f32
    %254 = vector.broadcast %cst_93 : f32 to vector<8x8xf32>
    %255 = arith.mulf %254, %253 : vector<8x8xf32>
    %cst_94 = arith.constant -3.000000e+00 : f32
    %256 = vector.broadcast %cst_94 : f32 to vector<8x8xf32>
    %257 = arith.addf %255, %256 : vector<8x8xf32>
    %c7_i32_95 = arith.constant 7 : i32
    %258 = vector.broadcast %c7_i32_95 : i32 to vector<8x8xi32>
    %259 = arith.cmpi eq, %49, %258 : vector<8x8xi32>
    %cst_96 = arith.constant 3.000000e+00 : f32
    %260 = vector.broadcast %cst_96 : f32 to vector<8x8xf32>
    %261 = arith.select %259, %260, %257 : vector<8x8xi1>, vector<8x8xf32>
    %cst_97 = arith.constant dense<0.000000e+00> : vector<8x8xf32>
    %262 = tpu.matmul %239, %48, %cst_97 {dimension_numbers = #tpu.dot_dimension_numbers<[1], [0], [0], [1], [0, 0, 1, 1], [], []>} : vector<8x8xf32>, vector<8x8xf32>, vector<8x8xf32> -> vector<8x8xf32>
    %cst_98 = arith.constant 6.000000e+00 : f32
    %263 = vector.broadcast %cst_98 : f32 to vector<8x8xf32>
    %264 = arith.mulf %263, %262 : vector<8x8xf32>
    %cst_99 = arith.constant -3.000000e+00 : f32
    %265 = vector.broadcast %cst_99 : f32 to vector<8x8xf32>
    %266 = arith.addf %264, %265 : vector<8x8xf32>
    %267 = arith.subf %261, %266 : vector<8x8xf32>
    %cst_100 = arith.constant dense<0.000000e+00> : vector<8x8xf32>
    %268 = tpu.matmul %252, %45, %cst_100 {dimension_numbers = #tpu.dot_dimension_numbers<[1], [0], [0], [1], [0, 0, 1, 1], [], []>} : vector<8x8xf32>, vector<8x8xf32>, vector<8x8xf32> -> vector<8x8xf32>
    %cst_101 = arith.constant 6.000000e+00 : f32
    %269 = vector.broadcast %cst_101 : f32 to vector<8x8xf32>
    %270 = arith.mulf %269, %268 : vector<8x8xf32>
    %cst_102 = arith.constant -3.000000e+00 : f32
    %271 = vector.broadcast %cst_102 : f32 to vector<8x8xf32>
    %272 = arith.addf %270, %271 : vector<8x8xf32>
    %c7_i32_103 = arith.constant 7 : i32
    %273 = vector.broadcast %c7_i32_103 : i32 to vector<8x8xi32>
    %274 = arith.cmpi eq, %49, %273 : vector<8x8xi32>
    %cst_104 = arith.constant 3.000000e+00 : f32
    %275 = vector.broadcast %cst_104 : f32 to vector<8x8xf32>
    %276 = arith.select %274, %275, %272 : vector<8x8xi1>, vector<8x8xf32>
    %cst_105 = arith.constant dense<0.000000e+00> : vector<8x8xf32>
    %277 = tpu.matmul %252, %48, %cst_105 {dimension_numbers = #tpu.dot_dimension_numbers<[1], [0], [0], [1], [0, 0, 1, 1], [], []>} : vector<8x8xf32>, vector<8x8xf32>, vector<8x8xf32> -> vector<8x8xf32>
    %cst_106 = arith.constant 6.000000e+00 : f32
    %278 = vector.broadcast %cst_106 : f32 to vector<8x8xf32>
    %279 = arith.mulf %278, %277 : vector<8x8xf32>
    %cst_107 = arith.constant -3.000000e+00 : f32
    %280 = vector.broadcast %cst_107 : f32 to vector<8x8xf32>
    %281 = arith.addf %279, %280 : vector<8x8xf32>
    %282 = arith.subf %276, %281 : vector<8x8xf32>
    %cst_108 = arith.constant 0.000000e+00 : f32
    %283 = vector.broadcast %cst_108 : f32 to vector<8x8xf32>
    %284 = arith.maximumf %226, %283 : vector<8x8xf32>
    %285 = math.absf %226 : vector<8x8xf32>
    %cst_109 = arith.constant 0.000000e+00 : f32
    %286 = vector.broadcast %cst_109 : f32 to vector<8x8xf32>
    %287 = arith.subf %286, %285 : vector<8x8xf32>
    %288 = math.exp %287 : vector<8x8xf32>
    %cst_110 = arith.constant 1.000000e+00 : f32
    %289 = vector.broadcast %cst_110 : f32 to vector<8x8xf32>
    %290 = arith.addf %289, %288 : vector<8x8xf32>
    %291 = math.log %290 : vector<8x8xf32>
    %292 = arith.addf %284, %291 : vector<8x8xf32>
    %cst_111 = arith.constant 1.000000e-03 : f32
    %293 = vector.broadcast %cst_111 : f32 to vector<8x8xf32>
    %294 = arith.addf %293, %292 : vector<8x8xf32>
    %cst_112 = arith.constant -3.000000e+00 : f32
    %295 = vector.broadcast %cst_112 : f32 to vector<8x1xf32>
    %296 = arith.cmpf oge, %223, %295 : vector<8x1xf32>
    %cst_113 = arith.constant 3.000000e+00 : f32
    %297 = vector.broadcast %cst_113 : f32 to vector<8x1xf32>
    %298 = arith.cmpf ole, %223, %297 : vector<8x1xf32>
    %299 = arith.andi %296, %298 : vector<8x1xi1>
    %cst_114 = arith.constant -3.000000e+00 : f32
    %cst_115 = arith.constant 3.000000e+00 : f32
    %300 = vector.broadcast %cst_114 : f32 to vector<8x1xf32>
    %301 = arith.maximumf %300, %223 : vector<8x1xf32>
    %302 = vector.broadcast %cst_115 : f32 to vector<8x1xf32>
    %303 = arith.minimumf %302, %301 : vector<8x1xf32>
    %c7_i32_116 = arith.constant 7 : i32
    %304 = vector.broadcast %c7_i32_116 : i32 to vector<8x8xi32>
    %305 = arith.cmpi eq, %49, %304 : vector<8x8xi32>
    %cst_117 = arith.constant 3.00000095 : f32
    %306 = vector.broadcast %cst_117 : f32 to vector<8x8xf32>
    %307 = arith.select %305, %306, %261 : vector<8x8xi1>, vector<8x8xf32>
    %308 = vector.broadcast %303 : vector<8x1xf32> to vector<8x8xf32>
    %309 = arith.cmpf oge, %308, %307 : vector<8x8xf32>
    %310 = arith.extui %309 : vector<8x8xi1> to vector<8x8xi32>
    %cst_118 = arith.constant dense<0> : vector<8xi32>
    %311 = vector.multi_reduction <add>, %310, %cst_118 [1] : vector<8x8xi32> to vector<8xi32>
    %312 = vector.shape_cast %311 : vector<8xi32> to vector<8x1xi32>
    %313 = vector.broadcast %312 : vector<8x1xi32> to vector<8x8xi32>
    %314 = arith.cmpi eq, %49, %313 : vector<8x8xi32>
    %315 = arith.extui %314 : vector<8x8xi1> to vector<8x8xi32>
    %316 = arith.sitofp %315 : vector<8x8xi32> to vector<8x8xf32>
    %c1_i32_119 = arith.constant 1 : i32
    %317 = vector.broadcast %c1_i32_119 : i32 to vector<8x1xi32>
    %318 = arith.subi %312, %317 : vector<8x1xi32>
    %319 = vector.broadcast %318 : vector<8x1xi32> to vector<8x8xi32>
    %320 = arith.cmpi eq, %49, %319 : vector<8x8xi32>
    %321 = arith.extui %320 : vector<8x8xi1> to vector<8x8xi32>
    %322 = arith.sitofp %321 : vector<8x8xi32> to vector<8x8xf32>
    %323 = arith.mulf %266, %316 : vector<8x8xf32>
    %cst_120 = arith.constant dense<0.000000e+00> : vector<8xf32>
    %324 = vector.multi_reduction <add>, %323, %cst_120 [1] : vector<8x8xf32> to vector<8xf32>
    %325 = vector.shape_cast %324 : vector<8xf32> to vector<8x1xf32>
    %326 = arith.mulf %267, %316 : vector<8x8xf32>
    %cst_121 = arith.constant dense<0.000000e+00> : vector<8xf32>
    %327 = vector.multi_reduction <add>, %326, %cst_121 [1] : vector<8x8xf32> to vector<8xf32>
    %328 = vector.shape_cast %327 : vector<8xf32> to vector<8x1xf32>
    %329 = arith.mulf %281, %316 : vector<8x8xf32>
    %cst_122 = arith.constant dense<0.000000e+00> : vector<8xf32>
    %330 = vector.multi_reduction <add>, %329, %cst_122 [1] : vector<8x8xf32> to vector<8xf32>
    %331 = vector.shape_cast %330 : vector<8xf32> to vector<8x1xf32>
    %332 = arith.mulf %282, %316 : vector<8x8xf32>
    %cst_123 = arith.constant dense<0.000000e+00> : vector<8xf32>
    %333 = vector.multi_reduction <add>, %332, %cst_123 [1] : vector<8x8xf32> to vector<8xf32>
    %334 = vector.shape_cast %333 : vector<8xf32> to vector<8x1xf32>
    %335 = arith.divf %334, %328 : vector<8x1xf32>
    %c0_i32_124 = arith.constant 0 : i32
    %336 = vector.broadcast %c0_i32_124 : i32 to vector<8x1xi32>
    %337 = arith.cmpi eq, %312, %336 : vector<8x1xi32>
    %338 = arith.mulf %294, %322 : vector<8x8xf32>
    %cst_125 = arith.constant dense<0.000000e+00> : vector<8xf32>
    %339 = vector.multi_reduction <add>, %338, %cst_125 [1] : vector<8x8xf32> to vector<8xf32>
    %340 = vector.shape_cast %339 : vector<8xf32> to vector<8x1xf32>
    %cst_126 = arith.constant 1.000000e+00 : f32
    %341 = vector.broadcast %cst_126 : f32 to vector<8x1xf32>
    %342 = arith.select %337, %341, %340 : vector<8x1xi1>, vector<8x1xf32>
    %c7_i32_127 = arith.constant 7 : i32
    %343 = vector.broadcast %c7_i32_127 : i32 to vector<8x1xi32>
    %344 = arith.cmpi eq, %312, %343 : vector<8x1xi32>
    %345 = arith.mulf %294, %316 : vector<8x8xf32>
    %cst_128 = arith.constant dense<0.000000e+00> : vector<8xf32>
    %346 = vector.multi_reduction <add>, %345, %cst_128 [1] : vector<8x8xf32> to vector<8xf32>
    %347 = vector.shape_cast %346 : vector<8xf32> to vector<8x1xf32>
    %cst_129 = arith.constant 1.000000e+00 : f32
    %348 = vector.broadcast %cst_129 : f32 to vector<8x1xf32>
    %349 = arith.select %344, %348, %347 : vector<8x1xi1>, vector<8x1xf32>
    %350 = arith.subf %303, %325 : vector<8x1xf32>
    %351 = arith.divf %350, %328 : vector<8x1xf32>
    %cst_130 = arith.constant 1.000000e+00 : f32
    %352 = vector.broadcast %cst_130 : f32 to vector<8x1xf32>
    %353 = arith.subf %352, %351 : vector<8x1xf32>
    %354 = arith.mulf %351, %353 : vector<8x1xf32>
    %355 = arith.mulf %335, %351 : vector<8x1xf32>
    %356 = arith.mulf %355, %351 : vector<8x1xf32>
    %357 = arith.mulf %342, %354 : vector<8x1xf32>
    %358 = arith.addf %356, %357 : vector<8x1xf32>
    %359 = arith.mulf %334, %358 : vector<8x1xf32>
    %360 = arith.addf %342, %349 : vector<8x1xf32>
    %cst_131 = arith.constant 2.000000e+00 : f32
    %361 = vector.broadcast %cst_131 : f32 to vector<8x1xf32>
    %362 = arith.mulf %361, %335 : vector<8x1xf32>
    %363 = arith.subf %360, %362 : vector<8x1xf32>
    %364 = arith.mulf %363, %354 : vector<8x1xf32>
    %365 = arith.addf %335, %364 : vector<8x1xf32>
    %cst_132 = arith.constant 1.000000e+00 : f32
    %366 = vector.broadcast %cst_132 : f32 to vector<8x1xf32>
    %367 = arith.divf %366, %365 : vector<8x1xf32>
    %368 = arith.mulf %359, %367 : vector<8x1xf32>
    %369 = arith.addf %331, %368 : vector<8x1xf32>
    %370 = arith.mulf %335, %335 : vector<8x1xf32>
    %371 = arith.mulf %349, %351 : vector<8x1xf32>
    %372 = arith.mulf %371, %351 : vector<8x1xf32>
    %cst_133 = arith.constant 2.000000e+00 : f32
    %373 = vector.broadcast %cst_133 : f32 to vector<8x1xf32>
    %374 = arith.mulf %373, %335 : vector<8x1xf32>
    %375 = arith.mulf %374, %354 : vector<8x1xf32>
    %376 = arith.addf %372, %375 : vector<8x1xf32>
    %377 = arith.mulf %342, %353 : vector<8x1xf32>
    %378 = arith.mulf %377, %353 : vector<8x1xf32>
    %379 = arith.addf %376, %378 : vector<8x1xf32>
    %380 = arith.mulf %370, %379 : vector<8x1xf32>
    %381 = arith.mulf %380, %367 : vector<8x1xf32>
    %382 = arith.mulf %381, %367 : vector<8x1xf32>
    %383 = math.log %382 : vector<8x1xf32>
    %c1_i32_134 = arith.constant 1 : i32
    %384 = vector.broadcast %c1_i32_134 : i32 to vector<8x4xi32>
    %385 = arith.cmpi eq, %50, %384 : vector<8x4xi32>
    %386 = vector.broadcast %299 : vector<8x1xi1> to vector<8x4xi1>
    %387 = arith.andi %385, %386 : vector<8x4xi1>
    %388 = vector.shape_cast %369 : vector<8x1xf32> to vector<8x1xf32>
    %389 = vector.broadcast %388 : vector<8x1xf32> to vector<8x4xf32>
    %390 = arith.select %387, %389, %219 : vector<8x4xi1>, vector<8x4xf32>
    %cst_135 = arith.constant 0.000000e+00 : f32
    %391 = vector.broadcast %cst_135 : f32 to vector<8x1xf32>
    %392 = arith.select %299, %383, %391 : vector<8x1xi1>, vector<8x1xf32>
    %393 = arith.addf %222, %392 : vector<8x1xf32>
    %394 = vector.extract_strided_slice %0 {offsets = [0, 2], sizes = [8, 1], strides = [1, 1]} : vector<8x4xf32> to vector<8x1xf32>
    %395 = vector.extract_strided_slice %40 {offsets = [0, 64], sizes = [8, 8], strides = [1, 1]} : vector<8x128xf32> to vector<8x8xf32>
    %396 = vector.extract_strided_slice %40 {offsets = [0, 72], sizes = [8, 8], strides = [1, 1]} : vector<8x128xf32> to vector<8x8xf32>
    %397 = vector.extract_strided_slice %40 {offsets = [0, 80], sizes = [8, 8], strides = [1, 1]} : vector<8x128xf32> to vector<8x8xf32>
    %cst_136 = arith.constant dense<0xFF800000> : vector<8xf32>
    %398 = vector.multi_reduction <maximumf>, %395, %cst_136 [1] : vector<8x8xf32> to vector<8xf32>
    %399 = vector.shape_cast %398 : vector<8xf32> to vector<8x1xf32>
    %400 = vector.broadcast %399 : vector<8x1xf32> to vector<8x8xf32>
    %401 = arith.subf %395, %400 : vector<8x8xf32>
    %402 = math.exp %401 : vector<8x8xf32>
    %cst_137 = arith.constant dense<0.000000e+00> : vector<8xf32>
    %403 = vector.multi_reduction <add>, %402, %cst_137 [1] : vector<8x8xf32> to vector<8xf32>
    %404 = vector.shape_cast %403 : vector<8xf32> to vector<8x1xf32>
    %405 = vector.broadcast %404 : vector<8x1xf32> to vector<8x8xf32>
    %406 = arith.divf %402, %405 : vector<8x8xf32>
    %cst_138 = arith.constant 0.991999983 : f32
    %407 = vector.broadcast %cst_138 : f32 to vector<8x8xf32>
    %408 = arith.mulf %407, %406 : vector<8x8xf32>
    %cst_139 = arith.constant 1.000000e-03 : f32
    %409 = vector.broadcast %cst_139 : f32 to vector<8x8xf32>
    %410 = arith.addf %409, %408 : vector<8x8xf32>
    %cst_140 = arith.constant dense<0xFF800000> : vector<8xf32>
    %411 = vector.multi_reduction <maximumf>, %396, %cst_140 [1] : vector<8x8xf32> to vector<8xf32>
    %412 = vector.shape_cast %411 : vector<8xf32> to vector<8x1xf32>
    %413 = vector.broadcast %412 : vector<8x1xf32> to vector<8x8xf32>
    %414 = arith.subf %396, %413 : vector<8x8xf32>
    %415 = math.exp %414 : vector<8x8xf32>
    %cst_141 = arith.constant dense<0.000000e+00> : vector<8xf32>
    %416 = vector.multi_reduction <add>, %415, %cst_141 [1] : vector<8x8xf32> to vector<8xf32>
    %417 = vector.shape_cast %416 : vector<8xf32> to vector<8x1xf32>
    %418 = vector.broadcast %417 : vector<8x1xf32> to vector<8x8xf32>
    %419 = arith.divf %415, %418 : vector<8x8xf32>
    %cst_142 = arith.constant 0.991999983 : f32
    %420 = vector.broadcast %cst_142 : f32 to vector<8x8xf32>
    %421 = arith.mulf %420, %419 : vector<8x8xf32>
    %cst_143 = arith.constant 1.000000e-03 : f32
    %422 = vector.broadcast %cst_143 : f32 to vector<8x8xf32>
    %423 = arith.addf %422, %421 : vector<8x8xf32>
    %cst_144 = arith.constant dense<0.000000e+00> : vector<8x8xf32>
    %424 = tpu.matmul %410, %45, %cst_144 {dimension_numbers = #tpu.dot_dimension_numbers<[1], [0], [0], [1], [0, 0, 1, 1], [], []>} : vector<8x8xf32>, vector<8x8xf32>, vector<8x8xf32> -> vector<8x8xf32>
    %cst_145 = arith.constant 6.000000e+00 : f32
    %425 = vector.broadcast %cst_145 : f32 to vector<8x8xf32>
    %426 = arith.mulf %425, %424 : vector<8x8xf32>
    %cst_146 = arith.constant -3.000000e+00 : f32
    %427 = vector.broadcast %cst_146 : f32 to vector<8x8xf32>
    %428 = arith.addf %426, %427 : vector<8x8xf32>
    %c7_i32_147 = arith.constant 7 : i32
    %429 = vector.broadcast %c7_i32_147 : i32 to vector<8x8xi32>
    %430 = arith.cmpi eq, %49, %429 : vector<8x8xi32>
    %cst_148 = arith.constant 3.000000e+00 : f32
    %431 = vector.broadcast %cst_148 : f32 to vector<8x8xf32>
    %432 = arith.select %430, %431, %428 : vector<8x8xi1>, vector<8x8xf32>
    %cst_149 = arith.constant dense<0.000000e+00> : vector<8x8xf32>
    %433 = tpu.matmul %410, %48, %cst_149 {dimension_numbers = #tpu.dot_dimension_numbers<[1], [0], [0], [1], [0, 0, 1, 1], [], []>} : vector<8x8xf32>, vector<8x8xf32>, vector<8x8xf32> -> vector<8x8xf32>
    %cst_150 = arith.constant 6.000000e+00 : f32
    %434 = vector.broadcast %cst_150 : f32 to vector<8x8xf32>
    %435 = arith.mulf %434, %433 : vector<8x8xf32>
    %cst_151 = arith.constant -3.000000e+00 : f32
    %436 = vector.broadcast %cst_151 : f32 to vector<8x8xf32>
    %437 = arith.addf %435, %436 : vector<8x8xf32>
    %438 = arith.subf %432, %437 : vector<8x8xf32>
    %cst_152 = arith.constant dense<0.000000e+00> : vector<8x8xf32>
    %439 = tpu.matmul %423, %45, %cst_152 {dimension_numbers = #tpu.dot_dimension_numbers<[1], [0], [0], [1], [0, 0, 1, 1], [], []>} : vector<8x8xf32>, vector<8x8xf32>, vector<8x8xf32> -> vector<8x8xf32>
    %cst_153 = arith.constant 6.000000e+00 : f32
    %440 = vector.broadcast %cst_153 : f32 to vector<8x8xf32>
    %441 = arith.mulf %440, %439 : vector<8x8xf32>
    %cst_154 = arith.constant -3.000000e+00 : f32
    %442 = vector.broadcast %cst_154 : f32 to vector<8x8xf32>
    %443 = arith.addf %441, %442 : vector<8x8xf32>
    %c7_i32_155 = arith.constant 7 : i32
    %444 = vector.broadcast %c7_i32_155 : i32 to vector<8x8xi32>
    %445 = arith.cmpi eq, %49, %444 : vector<8x8xi32>
    %cst_156 = arith.constant 3.000000e+00 : f32
    %446 = vector.broadcast %cst_156 : f32 to vector<8x8xf32>
    %447 = arith.select %445, %446, %443 : vector<8x8xi1>, vector<8x8xf32>
    %cst_157 = arith.constant dense<0.000000e+00> : vector<8x8xf32>
    %448 = tpu.matmul %423, %48, %cst_157 {dimension_numbers = #tpu.dot_dimension_numbers<[1], [0], [0], [1], [0, 0, 1, 1], [], []>} : vector<8x8xf32>, vector<8x8xf32>, vector<8x8xf32> -> vector<8x8xf32>
    %cst_158 = arith.constant 6.000000e+00 : f32
    %449 = vector.broadcast %cst_158 : f32 to vector<8x8xf32>
    %450 = arith.mulf %449, %448 : vector<8x8xf32>
    %cst_159 = arith.constant -3.000000e+00 : f32
    %451 = vector.broadcast %cst_159 : f32 to vector<8x8xf32>
    %452 = arith.addf %450, %451 : vector<8x8xf32>
    %453 = arith.subf %447, %452 : vector<8x8xf32>
    %cst_160 = arith.constant 0.000000e+00 : f32
    %454 = vector.broadcast %cst_160 : f32 to vector<8x8xf32>
    %455 = arith.maximumf %397, %454 : vector<8x8xf32>
    %456 = math.absf %397 : vector<8x8xf32>
    %cst_161 = arith.constant 0.000000e+00 : f32
    %457 = vector.broadcast %cst_161 : f32 to vector<8x8xf32>
    %458 = arith.subf %457, %456 : vector<8x8xf32>
    %459 = math.exp %458 : vector<8x8xf32>
    %cst_162 = arith.constant 1.000000e+00 : f32
    %460 = vector.broadcast %cst_162 : f32 to vector<8x8xf32>
    %461 = arith.addf %460, %459 : vector<8x8xf32>
    %462 = math.log %461 : vector<8x8xf32>
    %463 = arith.addf %455, %462 : vector<8x8xf32>
    %cst_163 = arith.constant 1.000000e-03 : f32
    %464 = vector.broadcast %cst_163 : f32 to vector<8x8xf32>
    %465 = arith.addf %464, %463 : vector<8x8xf32>
    %cst_164 = arith.constant -3.000000e+00 : f32
    %466 = vector.broadcast %cst_164 : f32 to vector<8x1xf32>
    %467 = arith.cmpf oge, %394, %466 : vector<8x1xf32>
    %cst_165 = arith.constant 3.000000e+00 : f32
    %468 = vector.broadcast %cst_165 : f32 to vector<8x1xf32>
    %469 = arith.cmpf ole, %394, %468 : vector<8x1xf32>
    %470 = arith.andi %467, %469 : vector<8x1xi1>
    %cst_166 = arith.constant -3.000000e+00 : f32
    %cst_167 = arith.constant 3.000000e+00 : f32
    %471 = vector.broadcast %cst_166 : f32 to vector<8x1xf32>
    %472 = arith.maximumf %471, %394 : vector<8x1xf32>
    %473 = vector.broadcast %cst_167 : f32 to vector<8x1xf32>
    %474 = arith.minimumf %473, %472 : vector<8x1xf32>
    %c7_i32_168 = arith.constant 7 : i32
    %475 = vector.broadcast %c7_i32_168 : i32 to vector<8x8xi32>
    %476 = arith.cmpi eq, %49, %475 : vector<8x8xi32>
    %cst_169 = arith.constant 3.00000095 : f32
    %477 = vector.broadcast %cst_169 : f32 to vector<8x8xf32>
    %478 = arith.select %476, %477, %432 : vector<8x8xi1>, vector<8x8xf32>
    %479 = vector.broadcast %474 : vector<8x1xf32> to vector<8x8xf32>
    %480 = arith.cmpf oge, %479, %478 : vector<8x8xf32>
    %481 = arith.extui %480 : vector<8x8xi1> to vector<8x8xi32>
    %cst_170 = arith.constant dense<0> : vector<8xi32>
    %482 = vector.multi_reduction <add>, %481, %cst_170 [1] : vector<8x8xi32> to vector<8xi32>
    %483 = vector.shape_cast %482 : vector<8xi32> to vector<8x1xi32>
    %484 = vector.broadcast %483 : vector<8x1xi32> to vector<8x8xi32>
    %485 = arith.cmpi eq, %49, %484 : vector<8x8xi32>
    %486 = arith.extui %485 : vector<8x8xi1> to vector<8x8xi32>
    %487 = arith.sitofp %486 : vector<8x8xi32> to vector<8x8xf32>
    %c1_i32_171 = arith.constant 1 : i32
    %488 = vector.broadcast %c1_i32_171 : i32 to vector<8x1xi32>
    %489 = arith.subi %483, %488 : vector<8x1xi32>
    %490 = vector.broadcast %489 : vector<8x1xi32> to vector<8x8xi32>
    %491 = arith.cmpi eq, %49, %490 : vector<8x8xi32>
    %492 = arith.extui %491 : vector<8x8xi1> to vector<8x8xi32>
    %493 = arith.sitofp %492 : vector<8x8xi32> to vector<8x8xf32>
    %494 = arith.mulf %437, %487 : vector<8x8xf32>
    %cst_172 = arith.constant dense<0.000000e+00> : vector<8xf32>
    %495 = vector.multi_reduction <add>, %494, %cst_172 [1] : vector<8x8xf32> to vector<8xf32>
    %496 = vector.shape_cast %495 : vector<8xf32> to vector<8x1xf32>
    %497 = arith.mulf %438, %487 : vector<8x8xf32>
    %cst_173 = arith.constant dense<0.000000e+00> : vector<8xf32>
    %498 = vector.multi_reduction <add>, %497, %cst_173 [1] : vector<8x8xf32> to vector<8xf32>
    %499 = vector.shape_cast %498 : vector<8xf32> to vector<8x1xf32>
    %500 = arith.mulf %452, %487 : vector<8x8xf32>
    %cst_174 = arith.constant dense<0.000000e+00> : vector<8xf32>
    %501 = vector.multi_reduction <add>, %500, %cst_174 [1] : vector<8x8xf32> to vector<8xf32>
    %502 = vector.shape_cast %501 : vector<8xf32> to vector<8x1xf32>
    %503 = arith.mulf %453, %487 : vector<8x8xf32>
    %cst_175 = arith.constant dense<0.000000e+00> : vector<8xf32>
    %504 = vector.multi_reduction <add>, %503, %cst_175 [1] : vector<8x8xf32> to vector<8xf32>
    %505 = vector.shape_cast %504 : vector<8xf32> to vector<8x1xf32>
    %506 = arith.divf %505, %499 : vector<8x1xf32>
    %c0_i32_176 = arith.constant 0 : i32
    %507 = vector.broadcast %c0_i32_176 : i32 to vector<8x1xi32>
    %508 = arith.cmpi eq, %483, %507 : vector<8x1xi32>
    %509 = arith.mulf %465, %493 : vector<8x8xf32>
    %cst_177 = arith.constant dense<0.000000e+00> : vector<8xf32>
    %510 = vector.multi_reduction <add>, %509, %cst_177 [1] : vector<8x8xf32> to vector<8xf32>
    %511 = vector.shape_cast %510 : vector<8xf32> to vector<8x1xf32>
    %cst_178 = arith.constant 1.000000e+00 : f32
    %512 = vector.broadcast %cst_178 : f32 to vector<8x1xf32>
    %513 = arith.select %508, %512, %511 : vector<8x1xi1>, vector<8x1xf32>
    %c7_i32_179 = arith.constant 7 : i32
    %514 = vector.broadcast %c7_i32_179 : i32 to vector<8x1xi32>
    %515 = arith.cmpi eq, %483, %514 : vector<8x1xi32>
    %516 = arith.mulf %465, %487 : vector<8x8xf32>
    %cst_180 = arith.constant dense<0.000000e+00> : vector<8xf32>
    %517 = vector.multi_reduction <add>, %516, %cst_180 [1] : vector<8x8xf32> to vector<8xf32>
    %518 = vector.shape_cast %517 : vector<8xf32> to vector<8x1xf32>
    %cst_181 = arith.constant 1.000000e+00 : f32
    %519 = vector.broadcast %cst_181 : f32 to vector<8x1xf32>
    %520 = arith.select %515, %519, %518 : vector<8x1xi1>, vector<8x1xf32>
    %521 = arith.subf %474, %496 : vector<8x1xf32>
    %522 = arith.divf %521, %499 : vector<8x1xf32>
    %cst_182 = arith.constant 1.000000e+00 : f32
    %523 = vector.broadcast %cst_182 : f32 to vector<8x1xf32>
    %524 = arith.subf %523, %522 : vector<8x1xf32>
    %525 = arith.mulf %522, %524 : vector<8x1xf32>
    %526 = arith.mulf %506, %522 : vector<8x1xf32>
    %527 = arith.mulf %526, %522 : vector<8x1xf32>
    %528 = arith.mulf %513, %525 : vector<8x1xf32>
    %529 = arith.addf %527, %528 : vector<8x1xf32>
    %530 = arith.mulf %505, %529 : vector<8x1xf32>
    %531 = arith.addf %513, %520 : vector<8x1xf32>
    %cst_183 = arith.constant 2.000000e+00 : f32
    %532 = vector.broadcast %cst_183 : f32 to vector<8x1xf32>
    %533 = arith.mulf %532, %506 : vector<8x1xf32>
    %534 = arith.subf %531, %533 : vector<8x1xf32>
    %535 = arith.mulf %534, %525 : vector<8x1xf32>
    %536 = arith.addf %506, %535 : vector<8x1xf32>
    %cst_184 = arith.constant 1.000000e+00 : f32
    %537 = vector.broadcast %cst_184 : f32 to vector<8x1xf32>
    %538 = arith.divf %537, %536 : vector<8x1xf32>
    %539 = arith.mulf %530, %538 : vector<8x1xf32>
    %540 = arith.addf %502, %539 : vector<8x1xf32>
    %541 = arith.mulf %506, %506 : vector<8x1xf32>
    %542 = arith.mulf %520, %522 : vector<8x1xf32>
    %543 = arith.mulf %542, %522 : vector<8x1xf32>
    %cst_185 = arith.constant 2.000000e+00 : f32
    %544 = vector.broadcast %cst_185 : f32 to vector<8x1xf32>
    %545 = arith.mulf %544, %506 : vector<8x1xf32>
    %546 = arith.mulf %545, %525 : vector<8x1xf32>
    %547 = arith.addf %543, %546 : vector<8x1xf32>
    %548 = arith.mulf %513, %524 : vector<8x1xf32>
    %549 = arith.mulf %548, %524 : vector<8x1xf32>
    %550 = arith.addf %547, %549 : vector<8x1xf32>
    %551 = arith.mulf %541, %550 : vector<8x1xf32>
    %552 = arith.mulf %551, %538 : vector<8x1xf32>
    %553 = arith.mulf %552, %538 : vector<8x1xf32>
    %554 = math.log %553 : vector<8x1xf32>
    %c2_i32 = arith.constant 2 : i32
    %555 = vector.broadcast %c2_i32 : i32 to vector<8x4xi32>
    %556 = arith.cmpi eq, %50, %555 : vector<8x4xi32>
    %557 = vector.broadcast %470 : vector<8x1xi1> to vector<8x4xi1>
    %558 = arith.andi %556, %557 : vector<8x4xi1>
    %559 = vector.shape_cast %540 : vector<8x1xf32> to vector<8x1xf32>
    %560 = vector.broadcast %559 : vector<8x1xf32> to vector<8x4xf32>
    %561 = arith.select %558, %560, %390 : vector<8x4xi1>, vector<8x4xf32>
    %cst_186 = arith.constant 0.000000e+00 : f32
    %562 = vector.broadcast %cst_186 : f32 to vector<8x1xf32>
    %563 = arith.select %470, %554, %562 : vector<8x1xi1>, vector<8x1xf32>
    %564 = arith.addf %393, %563 : vector<8x1xf32>
    %565 = vector.extract_strided_slice %0 {offsets = [0, 3], sizes = [8, 1], strides = [1, 1]} : vector<8x4xf32> to vector<8x1xf32>
    %566 = vector.extract_strided_slice %40 {offsets = [0, 96], sizes = [8, 8], strides = [1, 1]} : vector<8x128xf32> to vector<8x8xf32>
    %567 = vector.extract_strided_slice %40 {offsets = [0, 104], sizes = [8, 8], strides = [1, 1]} : vector<8x128xf32> to vector<8x8xf32>
    %568 = vector.extract_strided_slice %40 {offsets = [0, 112], sizes = [8, 8], strides = [1, 1]} : vector<8x128xf32> to vector<8x8xf32>
    %cst_187 = arith.constant dense<0xFF800000> : vector<8xf32>
    %569 = vector.multi_reduction <maximumf>, %566, %cst_187 [1] : vector<8x8xf32> to vector<8xf32>
    %570 = vector.shape_cast %569 : vector<8xf32> to vector<8x1xf32>
    %571 = vector.broadcast %570 : vector<8x1xf32> to vector<8x8xf32>
    %572 = arith.subf %566, %571 : vector<8x8xf32>
    %573 = math.exp %572 : vector<8x8xf32>
    %cst_188 = arith.constant dense<0.000000e+00> : vector<8xf32>
    %574 = vector.multi_reduction <add>, %573, %cst_188 [1] : vector<8x8xf32> to vector<8xf32>
    %575 = vector.shape_cast %574 : vector<8xf32> to vector<8x1xf32>
    %576 = vector.broadcast %575 : vector<8x1xf32> to vector<8x8xf32>
    %577 = arith.divf %573, %576 : vector<8x8xf32>
    %cst_189 = arith.constant 0.991999983 : f32
    %578 = vector.broadcast %cst_189 : f32 to vector<8x8xf32>
    %579 = arith.mulf %578, %577 : vector<8x8xf32>
    %cst_190 = arith.constant 1.000000e-03 : f32
    %580 = vector.broadcast %cst_190 : f32 to vector<8x8xf32>
    %581 = arith.addf %580, %579 : vector<8x8xf32>
    %cst_191 = arith.constant dense<0xFF800000> : vector<8xf32>
    %582 = vector.multi_reduction <maximumf>, %567, %cst_191 [1] : vector<8x8xf32> to vector<8xf32>
    %583 = vector.shape_cast %582 : vector<8xf32> to vector<8x1xf32>
    %584 = vector.broadcast %583 : vector<8x1xf32> to vector<8x8xf32>
    %585 = arith.subf %567, %584 : vector<8x8xf32>
    %586 = math.exp %585 : vector<8x8xf32>
    %cst_192 = arith.constant dense<0.000000e+00> : vector<8xf32>
    %587 = vector.multi_reduction <add>, %586, %cst_192 [1] : vector<8x8xf32> to vector<8xf32>
    %588 = vector.shape_cast %587 : vector<8xf32> to vector<8x1xf32>
    %589 = vector.broadcast %588 : vector<8x1xf32> to vector<8x8xf32>
    %590 = arith.divf %586, %589 : vector<8x8xf32>
    %cst_193 = arith.constant 0.991999983 : f32
    %591 = vector.broadcast %cst_193 : f32 to vector<8x8xf32>
    %592 = arith.mulf %591, %590 : vector<8x8xf32>
    %cst_194 = arith.constant 1.000000e-03 : f32
    %593 = vector.broadcast %cst_194 : f32 to vector<8x8xf32>
    %594 = arith.addf %593, %592 : vector<8x8xf32>
    %cst_195 = arith.constant dense<0.000000e+00> : vector<8x8xf32>
    %595 = tpu.matmul %581, %45, %cst_195 {dimension_numbers = #tpu.dot_dimension_numbers<[1], [0], [0], [1], [0, 0, 1, 1], [], []>} : vector<8x8xf32>, vector<8x8xf32>, vector<8x8xf32> -> vector<8x8xf32>
    %cst_196 = arith.constant 6.000000e+00 : f32
    %596 = vector.broadcast %cst_196 : f32 to vector<8x8xf32>
    %597 = arith.mulf %596, %595 : vector<8x8xf32>
    %cst_197 = arith.constant -3.000000e+00 : f32
    %598 = vector.broadcast %cst_197 : f32 to vector<8x8xf32>
    %599 = arith.addf %597, %598 : vector<8x8xf32>
    %c7_i32_198 = arith.constant 7 : i32
    %600 = vector.broadcast %c7_i32_198 : i32 to vector<8x8xi32>
    %601 = arith.cmpi eq, %49, %600 : vector<8x8xi32>
    %cst_199 = arith.constant 3.000000e+00 : f32
    %602 = vector.broadcast %cst_199 : f32 to vector<8x8xf32>
    %603 = arith.select %601, %602, %599 : vector<8x8xi1>, vector<8x8xf32>
    %cst_200 = arith.constant dense<0.000000e+00> : vector<8x8xf32>
    %604 = tpu.matmul %581, %48, %cst_200 {dimension_numbers = #tpu.dot_dimension_numbers<[1], [0], [0], [1], [0, 0, 1, 1], [], []>} : vector<8x8xf32>, vector<8x8xf32>, vector<8x8xf32> -> vector<8x8xf32>
    %cst_201 = arith.constant 6.000000e+00 : f32
    %605 = vector.broadcast %cst_201 : f32 to vector<8x8xf32>
    %606 = arith.mulf %605, %604 : vector<8x8xf32>
    %cst_202 = arith.constant -3.000000e+00 : f32
    %607 = vector.broadcast %cst_202 : f32 to vector<8x8xf32>
    %608 = arith.addf %606, %607 : vector<8x8xf32>
    %609 = arith.subf %603, %608 : vector<8x8xf32>
    %cst_203 = arith.constant dense<0.000000e+00> : vector<8x8xf32>
    %610 = tpu.matmul %594, %45, %cst_203 {dimension_numbers = #tpu.dot_dimension_numbers<[1], [0], [0], [1], [0, 0, 1, 1], [], []>} : vector<8x8xf32>, vector<8x8xf32>, vector<8x8xf32> -> vector<8x8xf32>
    %cst_204 = arith.constant 6.000000e+00 : f32
    %611 = vector.broadcast %cst_204 : f32 to vector<8x8xf32>
    %612 = arith.mulf %611, %610 : vector<8x8xf32>
    %cst_205 = arith.constant -3.000000e+00 : f32
    %613 = vector.broadcast %cst_205 : f32 to vector<8x8xf32>
    %614 = arith.addf %612, %613 : vector<8x8xf32>
    %c7_i32_206 = arith.constant 7 : i32
    %615 = vector.broadcast %c7_i32_206 : i32 to vector<8x8xi32>
    %616 = arith.cmpi eq, %49, %615 : vector<8x8xi32>
    %cst_207 = arith.constant 3.000000e+00 : f32
    %617 = vector.broadcast %cst_207 : f32 to vector<8x8xf32>
    %618 = arith.select %616, %617, %614 : vector<8x8xi1>, vector<8x8xf32>
    %cst_208 = arith.constant dense<0.000000e+00> : vector<8x8xf32>
    %619 = tpu.matmul %594, %48, %cst_208 {dimension_numbers = #tpu.dot_dimension_numbers<[1], [0], [0], [1], [0, 0, 1, 1], [], []>} : vector<8x8xf32>, vector<8x8xf32>, vector<8x8xf32> -> vector<8x8xf32>
    %cst_209 = arith.constant 6.000000e+00 : f32
    %620 = vector.broadcast %cst_209 : f32 to vector<8x8xf32>
    %621 = arith.mulf %620, %619 : vector<8x8xf32>
    %cst_210 = arith.constant -3.000000e+00 : f32
    %622 = vector.broadcast %cst_210 : f32 to vector<8x8xf32>
    %623 = arith.addf %621, %622 : vector<8x8xf32>
    %624 = arith.subf %618, %623 : vector<8x8xf32>
    %cst_211 = arith.constant 0.000000e+00 : f32
    %625 = vector.broadcast %cst_211 : f32 to vector<8x8xf32>
    %626 = arith.maximumf %568, %625 : vector<8x8xf32>
    %627 = math.absf %568 : vector<8x8xf32>
    %cst_212 = arith.constant 0.000000e+00 : f32
    %628 = vector.broadcast %cst_212 : f32 to vector<8x8xf32>
    %629 = arith.subf %628, %627 : vector<8x8xf32>
    %630 = math.exp %629 : vector<8x8xf32>
    %cst_213 = arith.constant 1.000000e+00 : f32
    %631 = vector.broadcast %cst_213 : f32 to vector<8x8xf32>
    %632 = arith.addf %631, %630 : vector<8x8xf32>
    %633 = math.log %632 : vector<8x8xf32>
    %634 = arith.addf %626, %633 : vector<8x8xf32>
    %cst_214 = arith.constant 1.000000e-03 : f32
    %635 = vector.broadcast %cst_214 : f32 to vector<8x8xf32>
    %636 = arith.addf %635, %634 : vector<8x8xf32>
    %cst_215 = arith.constant -3.000000e+00 : f32
    %637 = vector.broadcast %cst_215 : f32 to vector<8x1xf32>
    %638 = arith.cmpf oge, %565, %637 : vector<8x1xf32>
    %cst_216 = arith.constant 3.000000e+00 : f32
    %639 = vector.broadcast %cst_216 : f32 to vector<8x1xf32>
    %640 = arith.cmpf ole, %565, %639 : vector<8x1xf32>
    %641 = arith.andi %638, %640 : vector<8x1xi1>
    %cst_217 = arith.constant -3.000000e+00 : f32
    %cst_218 = arith.constant 3.000000e+00 : f32
    %642 = vector.broadcast %cst_217 : f32 to vector<8x1xf32>
    %643 = arith.maximumf %642, %565 : vector<8x1xf32>
    %644 = vector.broadcast %cst_218 : f32 to vector<8x1xf32>
    %645 = arith.minimumf %644, %643 : vector<8x1xf32>
    %c7_i32_219 = arith.constant 7 : i32
    %646 = vector.broadcast %c7_i32_219 : i32 to vector<8x8xi32>
    %647 = arith.cmpi eq, %49, %646 : vector<8x8xi32>
    %cst_220 = arith.constant 3.00000095 : f32
    %648 = vector.broadcast %cst_220 : f32 to vector<8x8xf32>
    %649 = arith.select %647, %648, %603 : vector<8x8xi1>, vector<8x8xf32>
    %650 = vector.broadcast %645 : vector<8x1xf32> to vector<8x8xf32>
    %651 = arith.cmpf oge, %650, %649 : vector<8x8xf32>
    %652 = arith.extui %651 : vector<8x8xi1> to vector<8x8xi32>
    %cst_221 = arith.constant dense<0> : vector<8xi32>
    %653 = vector.multi_reduction <add>, %652, %cst_221 [1] : vector<8x8xi32> to vector<8xi32>
    %654 = vector.shape_cast %653 : vector<8xi32> to vector<8x1xi32>
    %655 = vector.broadcast %654 : vector<8x1xi32> to vector<8x8xi32>
    %656 = arith.cmpi eq, %49, %655 : vector<8x8xi32>
    %657 = arith.extui %656 : vector<8x8xi1> to vector<8x8xi32>
    %658 = arith.sitofp %657 : vector<8x8xi32> to vector<8x8xf32>
    %c1_i32_222 = arith.constant 1 : i32
    %659 = vector.broadcast %c1_i32_222 : i32 to vector<8x1xi32>
    %660 = arith.subi %654, %659 : vector<8x1xi32>
    %661 = vector.broadcast %660 : vector<8x1xi32> to vector<8x8xi32>
    %662 = arith.cmpi eq, %49, %661 : vector<8x8xi32>
    %663 = arith.extui %662 : vector<8x8xi1> to vector<8x8xi32>
    %664 = arith.sitofp %663 : vector<8x8xi32> to vector<8x8xf32>
    %665 = arith.mulf %608, %658 : vector<8x8xf32>
    %cst_223 = arith.constant dense<0.000000e+00> : vector<8xf32>
    %666 = vector.multi_reduction <add>, %665, %cst_223 [1] : vector<8x8xf32> to vector<8xf32>
    %667 = vector.shape_cast %666 : vector<8xf32> to vector<8x1xf32>
    %668 = arith.mulf %609, %658 : vector<8x8xf32>
    %cst_224 = arith.constant dense<0.000000e+00> : vector<8xf32>
    %669 = vector.multi_reduction <add>, %668, %cst_224 [1] : vector<8x8xf32> to vector<8xf32>
    %670 = vector.shape_cast %669 : vector<8xf32> to vector<8x1xf32>
    %671 = arith.mulf %623, %658 : vector<8x8xf32>
    %cst_225 = arith.constant dense<0.000000e+00> : vector<8xf32>
    %672 = vector.multi_reduction <add>, %671, %cst_225 [1] : vector<8x8xf32> to vector<8xf32>
    %673 = vector.shape_cast %672 : vector<8xf32> to vector<8x1xf32>
    %674 = arith.mulf %624, %658 : vector<8x8xf32>
    %cst_226 = arith.constant dense<0.000000e+00> : vector<8xf32>
    %675 = vector.multi_reduction <add>, %674, %cst_226 [1] : vector<8x8xf32> to vector<8xf32>
    %676 = vector.shape_cast %675 : vector<8xf32> to vector<8x1xf32>
    %677 = arith.divf %676, %670 : vector<8x1xf32>
    %c0_i32_227 = arith.constant 0 : i32
    %678 = vector.broadcast %c0_i32_227 : i32 to vector<8x1xi32>
    %679 = arith.cmpi eq, %654, %678 : vector<8x1xi32>
    %680 = arith.mulf %636, %664 : vector<8x8xf32>
    %cst_228 = arith.constant dense<0.000000e+00> : vector<8xf32>
    %681 = vector.multi_reduction <add>, %680, %cst_228 [1] : vector<8x8xf32> to vector<8xf32>
    %682 = vector.shape_cast %681 : vector<8xf32> to vector<8x1xf32>
    %cst_229 = arith.constant 1.000000e+00 : f32
    %683 = vector.broadcast %cst_229 : f32 to vector<8x1xf32>
    %684 = arith.select %679, %683, %682 : vector<8x1xi1>, vector<8x1xf32>
    %c7_i32_230 = arith.constant 7 : i32
    %685 = vector.broadcast %c7_i32_230 : i32 to vector<8x1xi32>
    %686 = arith.cmpi eq, %654, %685 : vector<8x1xi32>
    %687 = arith.mulf %636, %658 : vector<8x8xf32>
    %cst_231 = arith.constant dense<0.000000e+00> : vector<8xf32>
    %688 = vector.multi_reduction <add>, %687, %cst_231 [1] : vector<8x8xf32> to vector<8xf32>
    %689 = vector.shape_cast %688 : vector<8xf32> to vector<8x1xf32>
    %cst_232 = arith.constant 1.000000e+00 : f32
    %690 = vector.broadcast %cst_232 : f32 to vector<8x1xf32>
    %691 = arith.select %686, %690, %689 : vector<8x1xi1>, vector<8x1xf32>
    %692 = arith.subf %645, %667 : vector<8x1xf32>
    %693 = arith.divf %692, %670 : vector<8x1xf32>
    %cst_233 = arith.constant 1.000000e+00 : f32
    %694 = vector.broadcast %cst_233 : f32 to vector<8x1xf32>
    %695 = arith.subf %694, %693 : vector<8x1xf32>
    %696 = arith.mulf %693, %695 : vector<8x1xf32>
    %697 = arith.mulf %677, %693 : vector<8x1xf32>
    %698 = arith.mulf %697, %693 : vector<8x1xf32>
    %699 = arith.mulf %684, %696 : vector<8x1xf32>
    %700 = arith.addf %698, %699 : vector<8x1xf32>
    %701 = arith.mulf %676, %700 : vector<8x1xf32>
    %702 = arith.addf %684, %691 : vector<8x1xf32>
    %cst_234 = arith.constant 2.000000e+00 : f32
    %703 = vector.broadcast %cst_234 : f32 to vector<8x1xf32>
    %704 = arith.mulf %703, %677 : vector<8x1xf32>
    %705 = arith.subf %702, %704 : vector<8x1xf32>
    %706 = arith.mulf %705, %696 : vector<8x1xf32>
    %707 = arith.addf %677, %706 : vector<8x1xf32>
    %cst_235 = arith.constant 1.000000e+00 : f32
    %708 = vector.broadcast %cst_235 : f32 to vector<8x1xf32>
    %709 = arith.divf %708, %707 : vector<8x1xf32>
    %710 = arith.mulf %701, %709 : vector<8x1xf32>
    %711 = arith.addf %673, %710 : vector<8x1xf32>
    %712 = arith.mulf %677, %677 : vector<8x1xf32>
    %713 = arith.mulf %691, %693 : vector<8x1xf32>
    %714 = arith.mulf %713, %693 : vector<8x1xf32>
    %cst_236 = arith.constant 2.000000e+00 : f32
    %715 = vector.broadcast %cst_236 : f32 to vector<8x1xf32>
    %716 = arith.mulf %715, %677 : vector<8x1xf32>
    %717 = arith.mulf %716, %696 : vector<8x1xf32>
    %718 = arith.addf %714, %717 : vector<8x1xf32>
    %719 = arith.mulf %684, %695 : vector<8x1xf32>
    %720 = arith.mulf %719, %695 : vector<8x1xf32>
    %721 = arith.addf %718, %720 : vector<8x1xf32>
    %722 = arith.mulf %712, %721 : vector<8x1xf32>
    %723 = arith.mulf %722, %709 : vector<8x1xf32>
    %724 = arith.mulf %723, %709 : vector<8x1xf32>
    %725 = math.log %724 : vector<8x1xf32>
    %c3_i32 = arith.constant 3 : i32
    %726 = vector.broadcast %c3_i32 : i32 to vector<8x4xi32>
    %727 = arith.cmpi eq, %50, %726 : vector<8x4xi32>
    %728 = vector.broadcast %641 : vector<8x1xi1> to vector<8x4xi1>
    %729 = arith.andi %727, %728 : vector<8x4xi1>
    %730 = vector.shape_cast %711 : vector<8x1xf32> to vector<8x1xf32>
    %731 = vector.broadcast %730 : vector<8x1xf32> to vector<8x4xf32>
    %732 = arith.select %729, %731, %561 : vector<8x4xi1>, vector<8x4xf32>
    %cst_237 = arith.constant 0.000000e+00 : f32
    %733 = vector.broadcast %cst_237 : f32 to vector<8x1xf32>
    %734 = arith.select %641, %725, %733 : vector<8x1xi1>, vector<8x1xf32>
    %735 = arith.addf %564, %734 : vector<8x1xf32>
    %c0_238 = arith.constant 0 : index
    %c0_239 = arith.constant 0 : index
    %736 = vector.load %arg14[%c0_238, %c0_239] : memref<8x4xf32, #tpu.memory_space<vmem>>, vector<8x4xf32>
    tpu.vector_store %arg14[%c0_238, %c0_239], %732 {strides = array<i32>} : memref<8x4xf32, #tpu.memory_space<vmem>>, vector<8x4xf32>,
    %c0_240 = arith.constant 0 : index
    %c0_241 = arith.constant 0 : index
    %737 = vector.load %arg15[%c0_240, %c0_241] : memref<8x1xf32, #tpu.memory_space<vmem>>, vector<8x1xf32>
    tpu.vector_store %arg15[%c0_240, %c0_241], %735 {strides = array<i32>} : memref<8x1xf32, #tpu.memory_space<vmem>>, vector<8x1xf32>,
    return
  }
  func.func @transform_0(%arg0: i32) -> (i32, i32) {
    %c0_i32 = arith.constant 0 : i32
    %c0_i32_0 = arith.constant 0 : i32
    return %arg0, %c0_i32 : i32, i32
  }
  func.func @transform_1(%arg0: i32) -> (i32, i32) {
    %c0_i32 = arith.constant 0 : i32
    %c0_i32_0 = arith.constant 0 : i32
    %c0_i32_1 = arith.constant 0 : i32
    return %c0_i32, %c0_i32_0 : i32, i32
  }
  func.func @transform_2(%arg0: i32) -> (i32, i32) {
    %c0_i32 = arith.constant 0 : i32
    %c0_i32_0 = arith.constant 0 : i32
    %c0_i32_1 = arith.constant 0 : i32
    return %c0_i32, %c0_i32_0 : i32, i32
  }
  func.func @transform_3(%arg0: i32) -> (i32, i32) {
    %c0_i32 = arith.constant 0 : i32
    %c0_i32_0 = arith.constant 0 : i32
    %c0_i32_1 = arith.constant 0 : i32
    return %c0_i32, %c0_i32_0 : i32, i32
  }
  func.func @transform_4(%arg0: i32) -> (i32, i32) {
    %c0_i32 = arith.constant 0 : i32
    %c0_i32_0 = arith.constant 0 : i32
    %c0_i32_1 = arith.constant 0 : i32
    return %c0_i32, %c0_i32_0 : i32, i32
  }
  func.func @transform_5(%arg0: i32) -> (i32, i32) {
    %c0_i32 = arith.constant 0 : i32
    %c0_i32_0 = arith.constant 0 : i32
    %c0_i32_1 = arith.constant 0 : i32
    return %c0_i32, %c0_i32_0 : i32, i32
  }
  func.func @transform_6(%arg0: i32) -> (i32, i32) {
    %c0_i32 = arith.constant 0 : i32
    %c0_i32_0 = arith.constant 0 : i32
    %c0_i32_1 = arith.constant 0 : i32
    return %c0_i32, %c0_i32_0 : i32, i32
  }
  func.func @transform_7(%arg0: i32) -> (i32, i32) {
    %c0_i32 = arith.constant 0 : i32
    %c0_i32_0 = arith.constant 0 : i32
    %c0_i32_1 = arith.constant 0 : i32
    return %c0_i32, %c0_i32_0 : i32, i32
  }
  func.func @transform_8(%arg0: i32) -> (i32, i32) {
    %c0_i32 = arith.constant 0 : i32
    %c0_i32_0 = arith.constant 0 : i32
    %c0_i32_1 = arith.constant 0 : i32
    return %c0_i32, %c0_i32_0 : i32, i32
  }
  func.func @transform_9(%arg0: i32) -> (i32, i32) {
    %c0_i32 = arith.constant 0 : i32
    %c0_i32_0 = arith.constant 0 : i32
    %c0_i32_1 = arith.constant 0 : i32
    return %c0_i32, %c0_i32_0 : i32, i32
  }
  func.func @transform_10(%arg0: i32) -> (i32, i32) {
    %c0_i32 = arith.constant 0 : i32
    %c0_i32_0 = arith.constant 0 : i32
    %c0_i32_1 = arith.constant 0 : i32
    return %c0_i32, %c0_i32_0 : i32, i32
  }
  func.func @transform_11(%arg0: i32) -> (i32, i32) {
    %c0_i32 = arith.constant 0 : i32
    %c0_i32_0 = arith.constant 0 : i32
    %c0_i32_1 = arith.constant 0 : i32
    return %c0_i32, %c0_i32_0 : i32, i32
  }
  func.func @transform_12(%arg0: i32) -> (i32, i32) {
    %c0_i32 = arith.constant 0 : i32
    %c0_i32_0 = arith.constant 0 : i32
    %c0_i32_1 = arith.constant 0 : i32
    return %c0_i32, %c0_i32_0 : i32, i32
  }
  func.func @transform_13(%arg0: i32) -> (i32, i32) {
    %c0_i32 = arith.constant 0 : i32
    %c0_i32_0 = arith.constant 0 : i32
    return %arg0, %c0_i32 : i32, i32
  }
  func.func @transform_14(%arg0: i32) -> (i32, i32) {
    %c0_i32 = arith.constant 0 : i32
    %c0_i32_0 = arith.constant 0 : i32
    return %arg0, %c0_i32 : i32, i32
  }
}

</mosaic_0001>

<bundles_post_ra>
// kernel: maf_piecewise_rqs_forward.1
= control target key start
LH: loop header
LB: loop body
LE: loop exit
PB: predicated region body
PF: predicated region fallthrough
CT: control target
= control target key end

     0   :  { %20 = vsyncpa [#allocation3], 0  ;;  %s2588_s0 = inlined_call_operand.vmem [shape: f32[8,4], index: 0, kind: input, shape index: {}]   ;;  %s2589_s1 = inlined_call_operand.vmem [shape: f32[4,32], index: 1, kind: input, shape index: {}]   ;;  %s2590_s2 = inlined_call_operand.vmem [shape: f32[1,32], index: 2, kind: input, shape index: {}]   ;;  %s2591_s3 = inlined_call_operand.hbm [shape: f32[32,32], index: 3, kind: input, shape index: {}]   ;;  %s2592_s4 = inlined_call_operand.vmem [shape: f32[1,32], index: 4, kind: input, shape index: {}]   ;;  %s2593_s5 = inlined_call_operand.hbm [shape: f32[32,32], index: 5, kind: input, shape index: {}]   ;;  %s2594_s6 = inlined_call_operand.vmem [shape: f32[1,32], index: 6, kind: input, shape index: {}]   ;;  %s2595_s7 = inlined_call_operand.hbm [shape: f32[32,32], index: 7, kind: input, shape index: {}]   ;;  %s2596_s8 = inlined_call_operand.vmem [shape: f32[1,32], index: 8, kind: input, shape index: {}]   ;;  %s2597_s9 = inlined_call_operand.hbm [shape: f32[32,32], index: 9, kind: input, shape index: {}]   ;;  %s2598_s10 = inlined_call_operand.vmem [shape: f32[1,32], index: 10, kind: input, shape index: {}]   ;;  %s2599_s11 = inlined_call_operand.hbm [shape: f32[32,128], index: 11, kind: input, shape index: {}]   ;;  %s2600_s12 = inlined_call_operand.vmem [shape: f32[1,128], index: 12, kind: input, shape index: {}]   ;;  %s2601_s13 = inlined_call_operand.vmem [shape: f32[8,4], index: 13, kind: output, shape index: {0}]   ;;  %s2602_s14 = inlined_call_operand.vmem [shape: f32[8,1], index: 14, kind: output, shape index: {1}]  }
   0x1   :  { %21 = vsyncpa [#allocation5], 0 }
   0x2   :  { %22 = vsyncpa [#allocation8], 0  ;;  %s48_s15 = sshll.u32 %s2593_s5, 4  ;;  %s1905_s16 = smov [#allocation4]   ;;  %s49_s15 = int_to_ptr.hbm [resolvable:$true] %s48_s15 }
   0x3   :  { %s50_s17 = sshll.u32 %s1905_s16, 4  ;;  %s78_s20 = sshll.u32 %s2597_s9, 4  ;;  %s51_s17 = int_to_ptr.vmem [resolvable:$true] %s50_s17  ;;  %s79_s20 = int_to_ptr.hbm [resolvable:$true] %s78_s20 }
   0x4   :  { %s1906_s21 = smov 128   ;;  %s1907_s22 = smov 8  }
   0x5   :  { %56 = dma.hbm_to_vmem [thread:$0]  %s49_s15, 512, %s51_s17, [#allocation5], %s1906_s21, %s1906_s21, %s1907_s22  }
   0x6   :  { %s1908_s23 = smov [#allocation7]   ;;  %s33_s27 = sshll.u32 %s2591_s3, 4  ;;  %s34_s27 = int_to_ptr.hbm [resolvable:$true] %s33_s27 }
   0x7   :  { %s80_s24 = sshll.u32 %s1908_s23, 4  ;;  %s63_s29 = sshll.u32 %s2595_s7, 4  ;;  %s81_s24 = int_to_ptr.vmem [resolvable:$true] %s80_s24  ;;  %s64_s29 = int_to_ptr.hbm [resolvable:$true] %s63_s29 }
   0x8   :  { %86 = dma.hbm_to_vmem [thread:$0]  %s79_s20, 512, %s81_s24, [#allocation8], %s1906_s21, %s1906_s21, %s1907_s22  }
   0x9   :  { %s1909_s30 = smov [#allocation2]   ;;  %s1910_s9 = smov [#allocation6]  }
   0xa   :  { %s35_s16 = sshll.u32 %s1909_s30, 4  ;;  %s65_s15 = sshll.u32 %s1910_s9, 4  ;;  %s36_s16 = int_to_ptr.vmem [resolvable:$true] %s35_s16  ;;  %s66_s15 = int_to_ptr.vmem [resolvable:$true] %s65_s15 }
   0xb   :  { %41 = dma.hbm_to_vmem [thread:$0]  %s34_s27, 512, %s36_s16, [#allocation3], %s1906_s21, %s1906_s21, %s1907_s22  }
   0xc   :  { %s93_s19 = sshll.u32 %s2599_s11, 4  ;;  %s1911_s3 = smov [#allocation9]   ;;  %s94_s19 = int_to_ptr.hbm [resolvable:$true] %s93_s19 }
   0xd   :  { %71 = dma.hbm_to_vmem [thread:$0]  %s64_s29, 512, %s66_s15, [#allocation5], %s1906_s21, %s1906_s21, %s1907_s22  }
   0xe   :  { %s95_s20 = sshll.u32 %s1911_s3, 4  ;;  %s96_s20 = int_to_ptr.vmem [resolvable:$true] %s95_s20 }
   0xf   :  { %101 = dma.hbm_to_vmem [thread:$0]  %s94_s19, 512, %s96_s20, [#allocation8], %s1906_s21, %s1906_s21, %s1907_s22  }
  0x10   :  { %1899 = dma.done.wait [#allocation3], 512  }
  0x11   :  { %1900 = vsyncadd [#allocation3], 4294966784 }
  0x12   :  { %1901 = dma.done.wait [#allocation5], 1024  }
  0x13   :  { %1902 = vsyncadd [#allocation5], 4294966272 }
  0x14   :  { %1903 = dma.done.wait [#allocation8], 1024  }
  0x15   :  { %1904 = vsyncadd [#allocation8], 4294966272  ;;  %vm134_vm0 = vcmask 1043456   ;;  %vm130_vm1 = vcmask 31744   ;;  %v125_v0 = vld [vmem:[%s2589_s1] sm:$0xf] }
  0x16   :  { %v2028_v1 = vld [vmem:[%s2588_s0] sm:$0xff]  ;;  %v162_v2 = vld [vmem:[#allocation2 + $0x18] sm:$0xff]  ;;  %1600 = vmatpush.msk.msra.mxu0 %vm134_vm0, %v125_v0  ;;  %v161_v3 = vld [vmem:[#allocation2 + $0x10] sm:$0xff]  ;;  %vm167_vm2 = vcmask 261120   ;;  %v1912_v40 = vmov 0   ;;  %vm962_vm3 = vcmask 589312  }
  0x17   :  { %183 = vmatpush.msra.mxu1 %v162_v2  ;;  %1601 = vmatmul.msk.f32.vlgmr.msra.gmra.mxu0 %vm130_vm1, %v2028_v1  ;;  %v160_v4 = vld [vmem:[#allocation2 + $0x8] sm:$0xff]  ;;  %v159_v5 = vld [vmem:[#allocation2] sm:$0xff]  ;;  %v195_v6 = vld [vmem:[#allocation4 + $0x18] sm:$0xff]  ;;  %v2049_v38 = vclamps-f32 %v2028_v1, 3.0  ;;  %vm357_vm4 = vcmask 130112   ;;  %vm330_vm5 = vcmask 64512  }
  0x18   :  { %215 = vmatpush.msra.mxu2 %v195_v6  ;;  %v1712_v7 = vld [vmem:[%s2590_s2] ss:$0 sm:$0xff]  ;;  %v194_v11 = vld [vmem:[#allocation4 + $0x10] sm:$0xff]  ;;  %v193_v12 = vld [vmem:[#allocation4 + $0x8] sm:$0xff]  ;;  %1681 = vset.pattern.permute.xlu0 %v1912_v40  ;;  %vm1274_vm6 = vcmask 851712   ;;  %vm650_vm7 = vcmask 326912  }
  0x19   :  { %184 = vmatpush.msra.mxu1 %v161_v3  ;;  %v192_v13 = vld [vmem:[#allocation4] sm:$0xff]  ;;  %v228_v18 = vld [vmem:[#allocation6 + $0x18] sm:$0xff]  ;;  %v227_v19 = vld [vmem:[#allocation6 + $0x10] sm:$0xff]  ;;  %507 = vperm.xlu0 %1681, %v2049_v38   ;;  %vm499_vm8 = vcmp.ge.f32.partialorder %v2028_v1, -3.0  ;;  %vm500_vm9 = vcmp.le.f32.partialorder %v2028_v1, 3.0  ;;  %s1915_s29 = smov 96  }
  0x1a   :  { %216 = vmatpush.msra.mxu2 %v194_v11  ;;  %v1713_v14 = vld [vmem:[%s2592_s4] ss:$0 sm:$0xff]  ;;  %248 = vmatpush.msra.mxu3 %v228_v18  ;;  %v226_v20 = vld [vmem:[#allocation6 + $0x8] sm:$0xff]  ;;  %v260_v22 = vld [vmem:[#allocation7 + $0x18] sm:$0xff]  ;;  %s1916_s30 = smov 32   ;;  %vm681_vm11 = vcmask 392512  }
  0x1b   :  { %185 = vmatpush.msra.mxu1 %v160_v4  ;;  %v225_v21 = vld [vmem:[#allocation6] sm:$0xff]  ;;  %v259_v23 = vld [vmem:[#allocation7 + $0x10] sm:$0xff]  ;;  %280 = vmatpush.msrb.mxu0 %v260_v22  ;;  %v258_v29 = vld [vmem:[#allocation7 + $0x8] sm:$0xff]  ;;  %vm1305_vm12 = vcmask 917312   ;;  %s1918_s16 = smov 88   ;;  %s1920_s9 = smov 56  }
  0x1c   :  { %217 = vmatpush.msra.mxu2 %v193_v12  ;;  %249 = vmatpush.msra.mxu3 %v227_v19  ;;  %v1714_v24 = vld [vmem:[%s2594_s6] ss:$0 sm:$0xff]  ;;  %v292_v31 = vld [vmem:[#allocation9 + $0x18] sm:$0xff]  ;;  %v291_v32 = vld [vmem:[#allocation9 + $0x10] sm:$0xff]  ;;  %s1921_s15 = smov 24   ;;  %s1925_s17 = smov 16  }
  0x1d   :  { %186 = vmatpush.msra.mxu1 %v159_v5  ;;  %281 = vmatpush.msrb.mxu0 %v259_v23  ;;  %v257_v30 = vld [vmem:[#allocation7] sm:$0xff]  ;;  %v290_v37 = vld [vmem:[#allocation9 + $0x8] sm:$0xff]  ;;  %vm2084_vm10 = vmand %vm499_vm8, %vm500_vm9  ;;  %s1926_s18 = smov 112   ;;  %s1927_s19 = smov 48  }
  0x1e   :  { %218 = vmatpush.msra.mxu2 %v192_v13  ;;  %250 = vmatpush.msra.mxu3 %v226_v20  ;;  %v1715_v33 = vld [vmem:[%s2596_s8] ss:$0 sm:$0xff]  ;;  %v2091_v1 = vsel %vm2084_vm10, 1, %v1912_v40  ;;  %s1928_s3 = smov 80   ;;  %s1930_s23 = smov 126  }
  0x1f   :  { %282 = vmatpush.msrb.mxu0 %v258_v29  ;;  %312 = vmatpush.msrb.mxu1 %v292_v31  ;;  %v289_v39 = vld [vmem:[#allocation9] sm:$0xff]  ;;  %s1931_s11 = smov 125  }
  0x20   :  { %251 = vmatpush.msra.mxu3 %v225_v21  ;;  %v1716_v41 = vld [vmem:[%s2598_s10] ss:$0 sm:$0xff]  ;;  %s1913_s10 = smov 64   ;;  %v320_v21 = vlaneseq }
  0x21   :  { %283 = vmatpush.msrb.mxu0 %v257_v30  ;;  %313 = vmatpush.msrb.mxu1 %v291_v32  ;;  %v1717_v45 = vld [vmem:[%s2600_s12] ss:$0 sm:$0xff]  ;;  %s1914_s12 = smov 120  }
  0x22   :  { %v2109_v22 = vand.u32 127, %v320_v21  ;;  %v321_v23 = vshrl.u32 %v320_v21, 7 }
  0x23   :  { %314 = vmatpush.msrb.mxu1 %v290_v37 }
  0x24   :  { %vm2112_vm13 = vcmp.le.s32.totalorder %v321_v23, %v2109_v22  ;;  %vm2117_vm14 = vcmp.lt.s32.totalorder %v321_v23, %v2109_v22 }
  0x25   :  { %315 = vmatpush.msrb.mxu1 %v289_v39 }
  0x8b   :  { %v2068_v53 = vpop.permute.xlu0 %507 }
  0x94   :  { %v155_v8 = vpop.f32.mrf.mxu0 }
  0x95   :  { %v156_v9 = vadd.f32 %v1712_v7, %v155_v8 }
  0x97   :  { %v158_v10 = vmax.f32 %v156_v9, 0.0 }
  0x99   :  { %1602 = vmatmul.msk.f32.vlgmr.msra.gmra.mxu1 %vm167_vm2, %v158_v10 }
 0x116   :  { %v188_v15 = vpop.f32.mrf.mxu1 }
 0x117   :  { %v189_v16 = vadd.f32 %v1713_v14, %v188_v15 }
 0x119   :  { %v191_v17 = vmax.f32 %v189_v16, 0.0 }
 0x11b   :  { %1603 = vmatmul.msk.f32.vlgmr.msra.gmra.mxu2 %vm167_vm2, %v191_v17 }
 0x19e   :  { %v220_v25 = vpop.f32.mrf.mxu2 }
 0x19f   :  { %v221_v26 = vadd.f32 %v1714_v24, %v220_v25 }
 0x1a1   :  { %v223_v27 = vadd.f32 %v221_v26, %v156_v9  ;;  %v1917_v26 = vmov 1.0  }
 0x1a2   :  { %1609 = vmatpush.msk.msrb.mxu2 %vm2112_vm13, %v1917_v26  ;;  %1611 = vmatpush.msk.msrb.mxu3 %vm2117_vm14, %v1917_v26 }
 0x1a3   :  { %v224_v28 = vmax.f32 %v223_v27, 0.0  ;;  %1613 = vmatpush.msk.msra.mxu0 %vm2112_vm13, %v1917_v26  ;;  %1615 = vmatpush.msk.msra.mxu1 %vm2117_vm14, %v1917_v26 }
 0x1a4   :  { %1621 = vmatpush.msk.msra.mxu2 %vm2112_vm13, %v1917_v26 }
 0x1a5   :  { %1604 = vmatmul.msk.f32.vlgmr.msra.gmra.mxu3 %vm167_vm2, %v224_v28 }
 0x1a6   :  { %1623 = vmatpush.msk.msra.mxu3 %vm2117_vm14, %v1917_v26 }
 0x228   :  { %v253_v34 = vpop.f32.mrf.mxu3 }
 0x229   :  { %v254_v35 = vadd.f32 %v1715_v33, %v253_v34 }
 0x22b   :  { %v256_v36 = vmax.f32 %v254_v35, 0.0 }
 0x22d   :  { %1605 = vmatmul.msk.f32.vlgmr.msrb.gmra.mxu0 %vm167_vm2, %v256_v36 }
 0x22e   :  { %1625 = vmatpush.msk.msrb.mxu0 %vm2112_vm13, %v1917_v26 }
 0x2aa   :  { %v285_v42 = vpop.f32.mrf.mxu0 }
 0x2ab   :  { %v286_v43 = vadd.f32 %v1716_v41, %v285_v42 }
 0x2ad   :  { %v288_v44 = vadd.f32 %v286_v43, %v223_v27 }
 0x2af   :  { %1606 = vmatmul.msk.f32.vlgmr.msrb.gmra.mxu1 %vm167_vm2, %v288_v44 }
 0x2b0   :  { %1627 = vmatpush.msk.msrb.mxu1 %vm2117_vm14, %v1917_v26 }
 0x32c   :  { %v317_v46 = vpop.f32.mrf.mxu1 }
 0x32d   :  { %v2060_v47 = vadd.f32 %v1717_v45, %v317_v46 }
 0x32f   :  { %v963_v48 = vsel %vm962_vm3, %v2060_v47, -inf  ;;  %v358_v49 = vsel %vm357_vm4, %v2060_v47, -inf  ;;  %v331_v50 = vsel %vm330_vm5, %v2060_v47, -inf  ;;  %v1275_v51 = vsel %vm1274_vm6, %v2060_v47, -inf }
 0x330   :  { %964 = vmax.xlane.f32.xlu2 %v963_v48  ;;  %359 = vmax.xlane.f32.xlu1 %v358_v49  ;;  %v651_v52 = vsel %vm650_vm7, %v2060_v47, -inf  ;;  %v682_v18 = vsel %vm681_vm11, %v2060_v47, -inf  ;;  %v1306_v20 = vsel %vm1305_vm12, %v2060_v47, -inf }
 0x331   :  { %332 = vmax.xlane.f32.xlu0 %v331_v50 }
 0x338   :  { %1276 = vmax.xlane.f32.xlu1 %v1275_v51 }
 0x339   :  { %652 = vmax.xlane.f32.xlu0 %v651_v52 }
 0x3a3   :  { %v965_v54 = vpop.xlane.xlu2 %964  ;;  %v360_v55 = vpop.xlane.xlu1 %359 }
 0x3a4   :  { %v966_v56 = vsub.f32 %v2060_v47, %v965_v54  ;;  %v361_v57 = vsub.f32 %v2060_v47, %v360_v55  ;;  %v333_v58 = vpop.xlane.xlu0 %332 }
 0x3a5   :  { %v334_v9 = vsub.f32 %v2060_v47, %v333_v58 }
 0x3a6   :  { %v967_v59 = vmul.f32 1.442695, %v966_v56  ;;  %v362_v60 = vmul.f32 1.442695, %v361_v57 }
 0x3a7   :  { %v335_v10 = vmul.f32 1.442695, %v334_v9 }
 0x3a8   :  { %1718 = vpow2.f32 %v967_v59 }
 0x3a9   :  { %1720 = vpow2.f32 %v362_v60 }
 0x3ab   :  { %v1277_v0 = vpop.xlane.xlu1 %1276 }
 0x3ac   :  { %v653_v61 = vpop.xlane.xlu0 %652  ;;  %v1278_v4 = vsub.f32 %v2060_v47, %v1277_v0 }
 0x3ad   :  { %v654_v62 = vsub.f32 %v2060_v47, %v653_v61 }
 0x3ae   :  { %v2073_v63 = vpop.eup %1718  ;;  %v1279_v6 = vmul.f32 1.442695, %v1278_v4 }
 0x3af   :  { %v2077_v2 = vpop.eup %1720  ;;  %v655_v3 = vmul.f32 1.442695, %v654_v62  ;;  %970 = vrot.lane.b32.xlu0 %v2073_v63, %s1913_s10 }
 0x3b0   :  { %365 = vrot.lane.b32.xlu1 %v2077_v2, %s1914_s12 }
 0x3b1   :  { %1722 = vpow2.f32 %v655_v3 }
 0x3b2   :  { %1724 = vpow2.f32 %v1279_v6 }
 0x3b3   :  { %1726 = vpow2.f32 %v335_v10 }
 0x3b7   :  { %v2093_v7 = vpop.eup %1722  ;;  %638 = vperm.xlu0 %1681, %v2091_v1  }
 0x3b8   :  { %658 = vrot.lane.b32.xlu1 %v2093_v7, %s1915_s29  ;;  %v2098_v8 = vpop.eup %1724 }
 0x3b9   :  { %v1727_v11 = vpop.eup %1726 }
 0x3ba   :  { %v337_v12 = vsel %vm330_vm5, %v1727_v11, 0.0 }
 0x3c0   :  { %1282 = vrot.lane.b32.xlu1 %v2098_v8, %s1916_s30 }
 0x3e1   :  { %338 = vadd.xlane.f32.xlu0 %v337_v12 }
 0x421   :  { %v971_v13 = vpop.permute.xlu0 %970 }
 0x422   :  { %v366_v14 = vpop.permute.xlu1 %365  ;;  %v973_v15 = vsel %vm330_vm5, %v971_v13, 0.0 }
 0x423   :  { %v368_v16 = vsel %vm330_vm5, %v366_v14, 0.0  ;;  %974 = vadd.xlane.f32.xlu1 %v973_v15 }
 0x424   :  { %369 = vadd.xlane.f32.xlu2 %v368_v16 }
 0x429   :  { %v2145_v27 = vpop.permute.xlu0 %638 }
 0x42a   :  { %v659_v17 = vpop.permute.xlu1 %658 }
 0x42b   :  { %v661_v19 = vsel %vm330_vm5, %v659_v17, 0.0 }
 0x42c   :  { %683 = vmax.xlane.f32.xlu2 %v682_v18  ;;  %662 = vadd.xlane.f32.xlu0 %v661_v19 }
 0x432   :  { %v1283_v44 = vpop.permute.xlu1 %1282 }
 0x434   :  { %1307 = vmax.xlane.f32.xlu0 %v1306_v20 }
 0x454   :  { %v339_v28 = vpop.xlane.xlu0 %338 }
 0x455   :  { %1728 = vrcp.f32 %v339_v28  ;;  %v351_v32 = vand.u32 2147483648, %v339_v28  ;;  %v349_v34 = vand.u32 2147483647, %v339_v28  ;;  %vm345_vm0 = vweird.f32 %v339_v28 }
 0x457   :  { %v352_v36 = vor.u32 1.1754944e-38, %v351_v32  ;;  %vm350_vm3 = vcmp.eq.f32.partialorder %v349_v34, 8.507059e+37 }
 0x45b   :  { %v1729_v29 = vpop.eup %1728 }
 0x45c   :  { %v341_v30 = vmul.f32 %v1729_v29, %v339_v28  ;;  %vm346_vm15 = vweird.f32 %v1729_v29 }
 0x45d   :  { %vm347_vm2 = vmor %vm345_vm0, %vm346_vm15  ;;  %vm993_vm0 = vcmask 654912  }
 0x45e   :  { %v342_v31 = vsub.f32 1.0, %v341_v30  ;;  %v994_v28 = vsel %vm993_vm0, %v2060_v47, -inf  ;;  %v1285_v30 = vsel %vm330_vm5, %v1283_v44, 0.0 }
 0x460   :  { %v343_v33 = vmul.f32 %v1729_v29, %v342_v31 }
 0x462   :  { %v344_v35 = vadd.f32 %v1729_v29, %v343_v33 }
 0x464   :  { %v348_v37 = vsel %vm347_vm2, %v1729_v29, %v344_v35 }
 0x465   :  { %v353_v39 = vsel %vm350_vm3, %v352_v36, %v348_v37 }
 0x466   :  { %v354_v41 = vmul.f32 %v1727_v11, %v353_v39 }
 0x468   :  { %v355_v42 = vmul.f32 0.992, %v354_v41 }
 0x46a   :  { %v356_v43 = vadd.f32 0.001, %v355_v42 }
 0x46c   :  { %1610 = vmatmul.msk.f32.vlgmr.msrb.gmra.mxu2 %vm330_vm5, %v356_v43  ;;  %1612 = vmatmul.msk.f32.vlgmr.msrb.gmra.mxu3 %vm330_vm5, %v356_v43 }
 0x46d   :  { %1632 = vmatpush.msk.msrb.mxu2 %vm2112_vm13, %v1917_v26  ;;  %1634 = vmatpush.msk.msrb.mxu3 %vm2117_vm14, %v1917_v26 }
 0x496   :  { %v975_v45 = vpop.xlane.xlu1 %974 }
 0x497   :  { %v2155_v46 = vpop.xlane.xlu2 %369  ;;  %1730 = vrcp.f32 %v975_v45  ;;  %vm981_vm7 = vweird.f32 %v975_v45  ;;  %v987_v4 = vand.u32 2147483648, %v975_v45  ;;  %v985_v6 = vand.u32 2147483647, %v975_v45 }
 0x498   :  { %v382_v32 = vand.u32 2147483648, %v2155_v46  ;;  %vm376_vm3 = vweird.f32 %v2155_v46  ;;  %v380_v33 = vand.u32 2147483647, %v2155_v46 }
 0x499   :  { %v988_v13 = vor.u32 1.1754944e-38, %v987_v4  ;;  %vm986_vm15 = vcmp.eq.f32.partialorder %v985_v6, 8.507059e+37 }
 0x49a   :  { %v383_v35 = vor.u32 1.1754944e-38, %v382_v32 }
 0x49d   :  { %v1731_v48 = vpop.eup %1730 }
 0x49e   :  { %v977_v49 = vmul.f32 %v1731_v48, %v975_v45  ;;  %vm982_vm4 = vweird.f32 %v1731_v48 }
 0x49f   :  { %v684_v50 = vpop.xlane.xlu2 %683  ;;  %v663_v51 = vpop.xlane.xlu0 %662  ;;  %vm983_vm8 = vmor %vm981_vm7, %vm982_vm4 }
 0x4a0   :  { %v685_v52 = vsub.f32 %v2060_v47, %v684_v50  ;;  %1732 = vrcp.f32 %v663_v51  ;;  %v978_v55 = vsub.f32 1.0, %v977_v49  ;;  %v675_v61 = vand.u32 2147483648, %v663_v51 }
 0x4a1   :  { %v673_v0 = vand.u32 2147483647, %v663_v51  ;;  %vm669_vm9 = vweird.f32 %v663_v51 }
 0x4a2   :  { %v686_v54 = vmul.f32 1.442695, %v685_v52  ;;  %v979_v57 = vmul.f32 %v1731_v48, %v978_v55  ;;  %v676_v10 = vor.u32 1.1754944e-38, %v675_v61 }
 0x4a3   :  { %vm674_vm12 = vcmp.eq.f32.partialorder %v673_v0, 8.507059e+37 }
 0x4a4   :  { %1734 = vpow2.f32 %v686_v54  ;;  %v980_v3 = vadd.f32 %v1731_v48, %v979_v57 }
 0x4a5   :  { %1736 = vrcp.f32 %v2155_v46 }
 0x4a6   :  { %v1733_v56 = vpop.eup %1732  ;;  %v984_v12 = vsel %vm983_vm8, %v1731_v48, %v980_v3  ;;  %v1919_v48 = vmov 1  }
 0x4a7   :  { %v665_v58 = vmul.f32 %v1733_v56, %v663_v51  ;;  %vm670_vm6 = vweird.f32 %v1733_v56  ;;  %v989_v16 = vsel %vm986_vm15, %v988_v13, %v984_v12  ;;  %1682 = vset.pattern.permute.xlu1 %v1919_v48 }
 0x4a8   :  { %vm671_vm11 = vmor %vm669_vm9, %vm670_vm6  ;;  %v990_v19 = vmul.f32 %v2073_v63, %v989_v16  ;;  %vm381_vm6 = vcmp.eq.f32.partialorder %v380_v33, 8.507059e+37 }
 0x4a9   :  { %v666_v59 = vsub.f32 1.0, %v665_v58 }
 0x4aa   :  { %v2158_v60 = vpop.eup %1734  ;;  %v991_v20 = vmul.f32 0.992, %v990_v19 }
 0x4ab   :  { %v667_v62 = vmul.f32 %v1733_v56, %v666_v59  ;;  %689 = vrot.lane.b32.xlu2 %v2158_v60, %s1918_s16  ;;  %v1737_v23 = vpop.eup %1736 }
 0x4ac   :  { %v992_v21 = vadd.f32 0.001, %v991_v20  ;;  %vm377_vm2 = vweird.f32 %v1737_v23 }
 0x4ad   :  { %v668_v9 = vadd.f32 %v1733_v56, %v667_v62  ;;  %vm378_vm4 = vmor %vm376_vm3, %vm377_vm2 }
 0x4af   :  { %v672_v11 = vsel %vm671_vm11, %v1733_v56, %v668_v9 }
 0x4b0   :  { %v677_v14 = vsel %vm674_vm12, %v676_v10, %v672_v11  ;;  %v1308_v10 = vpop.xlane.xlu0 %1307  ;;  %vm413_vm12 = vcmp.eq.s32.totalorder %v2109_v22, 7 }
 0x4b1   :  { %v678_v15 = vmul.f32 %v2093_v7, %v677_v14  ;;  %v372_v7 = vmul.f32 %v1737_v23, %v2155_v46 }
 0x4b3   :  { %v679_v17 = vmul.f32 0.992, %v678_v15  ;;  %v373_v29 = vsub.f32 1.0, %v372_v7  ;;  %v1309_v7 = vsub.f32 %v2060_v47, %v1308_v10 }
 0x4b5   :  { %v680_v18 = vadd.f32 0.001, %v679_v17  ;;  %v374_v31 = vmul.f32 %v1737_v23, %v373_v29  ;;  %v1310_v32 = vmul.f32 1.442695, %v1309_v7 }
 0x4b7   :  { %713 = vrot.lane.b32.xlu1 %v680_v18, %s1915_s29  ;;  %v375_v63 = vadd.f32 %v1737_v23, %v374_v31 }
 0x4b9   :  { %v379_v34 = vsel %vm378_vm4, %v1737_v23, %v375_v63 }
 0x4ba   :  { %v384_v36 = vsel %vm381_vm6, %v383_v35, %v379_v34 }
 0x4bb   :  { %v385_v37 = vmul.f32 %v2077_v2, %v384_v36 }
 0x4bd   :  { %v386_v39 = vmul.f32 0.992, %v385_v37 }
 0x4bf   :  { %1025 = vrot.lane.b32.xlu1 %v992_v21, %s1913_s10  ;;  %v387_v41 = vadd.f32 0.001, %v386_v39  ;;  %v1922_v39 = vmov 3  }
 0x4c0   :  { %1684 = vset.pattern.permute.xlu0 %v1922_v39 }
 0x4d4   :  { %995 = vmax.xlane.f32.xlu2 %v994_v28 }
 0x4dc   :  { %1286 = vadd.xlane.f32.xlu2 %v1285_v30 }
 0x4ef   :  { %v408_v12 = vpop.f32.mrf.mxu2 }
 0x4f0   :  { %v411_v13 = vmul.f32 6.0, %v408_v12 }
 0x4f2   :  { %v2204_v16 = vadd.f32 -3.0, %v411_v13 }
 0x4f4   :  { %439 = vrot.lane.b32.xlu2 %v387_v41, %s1914_s12  ;;  %v504_v20 = vsel %vm413_vm12, 3.000001, %v2204_v16 }
 0x4f5   :  { %vm510_vm3 = vcmp.ge.f32.partialorder %v2068_v53, %v504_v20 }
 0x4f6   :  { %v511_v31 = vsel %vm510_vm3, 1, %v1912_v40 }
 0x4f7   :  { %v2215_v34 = vsel %vm330_vm5, %v511_v31, 0 }
 0x4f8   :  { %v514_v53 = vshrl.u32 %v2215_v34, 16 }
 0x4fa   :  { %v516_v35 = vcvt.s32.f32 %v514_v53 }
 0x505   :  { %v690_v42 = vpop.permute.xlu2 %689 }
 0x506   :  { %v692_v43 = vsel %vm330_vm5, %v690_v42, 0.0  ;;  %v1923_v42 = vmov 2  }
 0x507   :  { %693 = vadd.xlane.f32.xlu0 %v692_v43  ;;  %1683 = vset.pattern.permute.xlu2 %v1923_v42 }
 0x529   :  { %v714_v44 = vpop.permute.xlu1 %713 }
 0x52a   :  { %1622 = vmatmul.msk.f32.vlgmr.msra.gmra.mxu2 %vm330_vm5, %v714_v44  ;;  %1624 = vmatmul.msk.f32.vlgmr.msra.gmra.mxu3 %vm330_vm5, %v714_v44 }
 0x52b   :  { %1643 = vmatpush.msk.msra.mxu2 %vm2112_vm13, %v1917_v26  ;;  %1645 = vmatpush.msk.msra.mxu3 %vm2117_vm14, %v1917_v26 }
 0x531   :  { %v1026_v2 = vpop.permute.xlu1 %1025 }
 0x532   :  { %1633 = vmatmul.msk.f32.vlgmr.msrb.gmra.mxu2 %vm330_vm5, %v1026_v2  ;;  %1635 = vmatmul.msk.f32.vlgmr.msrb.gmra.mxu3 %vm330_vm5, %v1026_v2 }
 0x547   :  { %v996_v45 = vpop.xlane.xlu2 %995 }
 0x548   :  { %v997_v46 = vsub.f32 %v2060_v47, %v996_v45 }
 0x54a   :  { %v998_v49 = vmul.f32 1.442695, %v997_v46 }
 0x54c   :  { %1738 = vpow2.f32 %v998_v49 }
 0x54f   :  { %v1287_v50 = vpop.xlane.xlu2 %1286 }
 0x550   :  { %1740 = vrcp.f32 %v1287_v50  ;;  %v1299_v57 = vand.u32 2147483648, %v1287_v50  ;;  %v1297_v59 = vand.u32 2147483647, %v1287_v50  ;;  %vm1293_vm8 = vweird.f32 %v1287_v50 }
 0x552   :  { %v2188_v51 = vpop.eup %1738  ;;  %v1300_v62 = vor.u32 1.1754944e-38, %v1299_v57  ;;  %vm1298_vm11 = vcmp.eq.f32.partialorder %v1297_v59, 8.507059e+37 }
 0x553   :  { %1001 = vrot.lane.b32.xlu2 %v2188_v51, %s1920_s9 }
 0x556   :  { %v1741_v52 = vpop.eup %1740 }
 0x557   :  { %v1289_v54 = vmul.f32 %v1741_v52, %v1287_v50  ;;  %v440_v55 = vpop.permute.xlu2 %439  ;;  %vm1294_vm7 = vweird.f32 %v1741_v52 }
 0x558   :  { %1614 = vmatmul.msk.f32.vlgmr.msra.gmra.mxu0 %vm330_vm5, %v440_v55  ;;  %1616 = vmatmul.msk.f32.vlgmr.msra.gmra.mxu1 %vm330_vm5, %v440_v55  ;;  %vm1295_vm9 = vmor %vm1293_vm8, %vm1294_vm7 }
 0x559   :  { %v1290_v56 = vsub.f32 1.0, %v1289_v54  ;;  %1636 = vmatpush.msk.msra.mxu0 %vm2112_vm13, %v1917_v26  ;;  %1638 = vmatpush.msk.msra.mxu1 %vm2117_vm14, %v1917_v26 }
 0x55b   :  { %v1291_v58 = vmul.f32 %v1741_v52, %v1290_v56 }
 0x55d   :  { %v1292_v61 = vadd.f32 %v1741_v52, %v1291_v58 }
 0x55f   :  { %v1296_v0 = vsel %vm1295_vm9, %v1741_v52, %v1292_v61 }
 0x560   :  { %v1301_v3 = vsel %vm1298_vm11, %v1300_v62, %v1296_v0 }
 0x561   :  { %v1302_v4 = vmul.f32 %v2098_v8, %v1301_v3 }
 0x563   :  { %v1303_v6 = vmul.f32 0.992, %v1302_v4 }
 0x565   :  { %v1304_v9 = vadd.f32 0.001, %v1303_v6 }
 0x567   :  { %1337 = vrot.lane.b32.xlu1 %v1304_v9, %s1916_s30 }
 0x56f   :  { %816 = vperm.xlu1 %1682, %v2049_v38  }
 0x577   :  { %1707 = vset.pattern.permute.xlu1 %v1912_v40 }
 0x57a   :  { %v694_v11 = vpop.xlane.xlu0 %693 }
 0x57b   :  { %1742 = vrcp.f32 %v694_v11  ;;  %v706_v17 = vand.u32 2147483648, %v694_v11  ;;  %v704_v19 = vand.u32 2147483647, %v694_v11  ;;  %vm700_vm0 = vweird.f32 %v694_v11 }
 0x57c   :  { %1744 = vpow2.f32 %v1310_v32 }
 0x57d   :  { %v707_v23 = vor.u32 1.1754944e-38, %v706_v17  ;;  %vm705_vm4 = vcmp.eq.f32.partialorder %v704_v19, 8.507059e+37 }
 0x581   :  { %v1743_v14 = vpop.eup %1742 }
 0x582   :  { %v696_v15 = vmul.f32 %v1743_v14, %v694_v11  ;;  %vm701_vm15 = vweird.f32 %v1743_v14  ;;  %v2219_v36 = vpop.eup %1744 }
 0x583   :  { %vm702_vm2 = vmor %vm700_vm0, %vm701_vm15 }
 0x584   :  { %v697_v8 = vsub.f32 1.0, %v696_v15 }
 0x586   :  { %v698_v18 = vmul.f32 %v1743_v14, %v697_v8 }
 0x588   :  { %v699_v21 = vadd.f32 %v1743_v14, %v698_v18 }
 0x58a   :  { %v703_v28 = vsel %vm702_vm2, %v1743_v14, %v699_v21 }
 0x58b   :  { %v708_v29 = vsel %vm705_vm4, %v707_v23, %v703_v28 }
 0x58c   :  { %v709_v30 = vmul.f32 %v2158_v60, %v708_v29 }
 0x58e   :  { %v710_v63 = vmul.f32 0.992, %v709_v30  ;;  %v513_v30 = vand.u32 65535, %v2215_v34 }
 0x590   :  { %v711_v33 = vadd.f32 0.001, %v710_v63  ;;  %v515_v31 = vcvt.s32.f32 %v513_v30 }
 0x592   :  { %764 = vrot.lane.b32.xlu0 %v711_v33, %s1918_s16 }
 0x599   :  { %519 = vadd.xlane.f32.xlu1 %v516_v35  ;;  %v432_v35 = vpop.f32.mrf.mxu3 }
 0x59a   :  { %1313 = vrot.lane.b32.xlu0 %v2219_v36, %s1921_s15 }
 0x5ad   :  { %v1002_v60 = vpop.permute.xlu2 %1001  ;;  %v734_v59 = vpop.f32.mrf.mxu2 }
 0x5ae   :  { %v1004_v37 = vsel %vm330_vm5, %v1002_v60, 0.0  ;;  %v435_v60 = vmul.f32 6.0, %v432_v35 }
 0x5b5   :  { %v1046_v61 = vpop.f32.mrf.mxu2 }
 0x5b6   :  { %v1049_v62 = vmul.f32 6.0, %v1046_v61 }
 0x5b8   :  { %v2245_v3 = vadd.f32 -3.0, %v1049_v62 }
 0x5ba   :  { %v1126_v9 = vsel %vm413_vm12, 3.000001, %v2245_v3 }
 0x5c4   :  { %1005 = vadd.xlane.f32.xlu0 %v1004_v37 }
 0x5d8   :  { %1440 = vperm.xlu0 %1684, %v2049_v38  }
 0x5d9   :  { %v1338_v41 = vpop.permute.xlu1 %1337 }
 0x5da   :  { %1644 = vmatmul.msk.f32.vlgmr.msra.gmra.mxu2 %vm330_vm5, %v1338_v41  ;;  %1646 = vmatmul.msk.f32.vlgmr.msra.gmra.mxu3 %vm330_vm5, %v1338_v41  ;;  %v436_v41 = vadd.f32 -3.0, %v435_v60 }
 0x5e0   :  { %1708 = vset.pattern.permute.xlu0 %v1919_v48 }
 0x5e1   :  { %v817_v53 = vpop.permute.xlu1 %816 }
 0x604   :  { %v765_v43 = vpop.permute.xlu0 %764 }
 0x605   :  { %1626 = vmatmul.msk.f32.vlgmr.msrb.gmra.mxu0 %vm330_vm5, %v765_v43  ;;  %1628 = vmatmul.msk.f32.vlgmr.msrb.gmra.mxu1 %vm330_vm5, %v765_v43 }
 0x606   :  { %1647 = vmatpush.msk.msrb.mxu0 %vm2112_vm13, %v1917_v26  ;;  %1649 = vmatpush.msk.msrb.mxu1 %vm2117_vm14, %v1917_v26 }
 0x60c   :  { %v1314_v44 = vpop.permute.xlu0 %1313 }
 0x60d   :  { %v1316_v2 = vsel %vm330_vm5, %v1314_v44, 0.0 }
 0x60e   :  { %1317 = vadd.xlane.f32.xlu2 %v1316_v2  ;;  %v414_v2 = vsel %vm413_vm12, 3.0, %v2204_v16 }
 0x626   :  { %1128 = vperm.xlu2 %1683, %v2049_v38  }
 0x62e   :  { %1685 = vset.pattern.permute.xlu2 %v1919_v48 }
 0x62f   :  { %946 = vperm.xlu2 %1685, %v2091_v1  }
 0x637   :  { %v1006_v45 = vpop.xlane.xlu0 %1005  ;;  %1706 = vset.pattern.permute.xlu2 %v1923_v42 }
 0x638   :  { %1746 = vrcp.f32 %v1006_v45  ;;  %v1018_v50 = vand.u32 2147483648, %v1006_v45  ;;  %v1016_v26 = vand.u32 2147483647, %v1006_v45  ;;  %vm1012_vm14 = vweird.f32 %v1006_v45 }
 0x63a   :  { %v1019_v54 = vor.u32 1.1754944e-38, %v1018_v50  ;;  %vm1017_vm7 = vcmp.eq.f32.partialorder %v1016_v26, 8.507059e+37 }
 0x63e   :  { %v1747_v24 = vpop.eup %1746 }
 0x63f   :  { %v1008_v46 = vmul.f32 %v1747_v24, %v1006_v45  ;;  %vm1013_vm13 = vweird.f32 %v1747_v24  ;;  %v737_v45 = vmul.f32 6.0, %v734_v59 }
 0x640   :  { %vm1014_vm6 = vmor %vm1012_vm14, %vm1013_vm13 }
 0x641   :  { %v1009_v49 = vsub.f32 1.0, %v1008_v46  ;;  %v483_v46 = vpop.f32.mrf.mxu1  ;;  %v2272_v26 = vadd.f32 -3.0, %v737_v45 }
 0x643   :  { %v1010_v25 = vmul.f32 %v1747_v24, %v1009_v49  ;;  %v437_v49 = vsub.f32 %v414_v2, %v436_v41  ;;  %v814_v59 = vsel %vm413_vm12, 3.000001, %v2272_v26 }
 0x644   :  { %vm819_vm4 = vcmp.ge.f32.partialorder %v817_v53, %v814_v59 }
 0x645   :  { %v1011_v52 = vadd.f32 %v1747_v24, %v1010_v25 }
 0x647   :  { %v1015_v55 = vsel %vm1014_vm6, %v1747_v24, %v1011_v52  ;;  %v1924_v52 = vmov 0.0  }
 0x648   :  { %v1020_v48 = vsel %vm1017_vm7, %v1019_v54, %v1015_v55  ;;  %v486_v55 = vmul.f32 6.0, %v483_v46 }
 0x649   :  { %v1021_v56 = vmul.f32 %v2188_v51, %v1020_v48 }
 0x64a   :  { %v1441_v29 = vpop.permute.xlu0 %1440  ;;  %v487_v61 = vadd.f32 -3.0, %v486_v55 }
 0x64b   :  { %v1022_v57 = vmul.f32 0.992, %v1021_v56 }
 0x64d   :  { %v1023_v58 = vadd.f32 0.001, %v1022_v57 }
 0x64f   :  { %1076 = vrot.lane.b32.xlu0 %v1023_v58, %s1920_s9 }
 0x65d   :  { %v1358_v50 = vpop.f32.mrf.mxu2 }
 0x65e   :  { %v1361_v16 = vmul.f32 6.0, %v1358_v50 }
 0x660   :  { %v2282_v62 = vadd.f32 -3.0, %v1361_v16 }
 0x681   :  { %v1318_v0 = vpop.xlane.xlu2 %1317 }
 0x682   :  { %1748 = vrcp.f32 %v1318_v0  ;;  %v1330_v12 = vand.u32 2147483648, %v1318_v0  ;;  %v1328_v15 = vand.u32 2147483647, %v1318_v0  ;;  %vm1324_vm11 = vweird.f32 %v1318_v0 }
 0x684   :  { %v1331_v19 = vor.u32 1.1754944e-38, %v1330_v12  ;;  %vm1329_vm0 = vcmp.eq.f32.partialorder %v1328_v15, 8.507059e+37 }
 0x688   :  { %v1749_v4 = vpop.eup %1748 }
 0x689   :  { %v1320_v6 = vmul.f32 %v1749_v4, %v1318_v0  ;;  %v1129_v10 = vpop.permute.xlu2 %1128  ;;  %vm1325_vm9 = vweird.f32 %v1749_v4 }
 0x68a   :  { %vm1131_vm8 = vcmp.ge.f32.partialorder %v1129_v10, %v1126_v9  ;;  %vm1326_vm15 = vmor %vm1324_vm11, %vm1325_vm9 }
 0x68b   :  { %v1321_v51 = vsub.f32 1.0, %v1320_v6  ;;  %v1132_v11 = vsel %vm1131_vm8, 1, %v1912_v40  ;;  %v1438_v6 = vsel %vm413_vm12, 3.000001, %v2282_v62 }
 0x68c   :  { %v2252_v13 = vsel %vm330_vm5, %v1132_v11, 0  ;;  %vm1443_vm13 = vcmp.ge.f32.partialorder %v1441_v29, %v1438_v6  ;;  %v490_v29 = vand.u32 2147483647, %v2060_v47 }
 0x68d   :  { %v1322_v14 = vmul.f32 %v1749_v4, %v1321_v51  ;;  %v1135_v8 = vshrl.u32 %v2252_v13, 16  ;;  %v1444_v11 = vsel %vm1443_vm13, 1, %v1912_v40  ;;  %v1134_v53 = vand.u32 65535, %v2252_v13 }
 0x68f   :  { %v1137_v17 = vcvt.s32.f32 %v1135_v8  ;;  %v1323_v18 = vadd.f32 %v1749_v4, %v1322_v14  ;;  %v1445_v14 = vsel %vm330_vm5, %v1444_v11, 0  ;;  %v1136_v35 = vcvt.s32.f32 %v1134_v53 }
 0x690   :  { %v1447_v15 = vshrl.u32 %v1445_v14, 16  ;;  %v1446_v60 = vand.u32 65535, %v1445_v14 }
 0x691   :  { %1140 = vadd.xlane.f32.xlu0 %v1137_v17  ;;  %v1327_v20 = vsel %vm1326_vm15, %v1749_v4, %v1323_v18  ;;  %v2260_v32 = vpop.permute.xlu2 %946  ;;  %v820_v4 = vsel %vm819_vm4, 1, %v1912_v40  ;;  %v460_v17 = vpop.f32.mrf.mxu0 }
 0x692   :  { %v1332_v21 = vsel %vm1329_vm0, %v1331_v19, %v1327_v20  ;;  %v821_v9 = vsel %vm330_vm5, %v820_v4, 0  ;;  %v1449_v8 = vcvt.s32.f32 %v1447_v15  ;;  %v463_v18 = vmul.f32 6.0, %v460_v17 }
 0x693   :  { %v1333_v23 = vmul.f32 %v2219_v36, %v1332_v21  ;;  %v520_v36 = vpop.xlane.xlu1 %519  ;;  %v822_v51 = vand.u32 65535, %v821_v9  ;;  %v823_v30 = vshrl.u32 %v821_v9, 16 }
 0x694   :  { %v522_v37 = vcvt.f32.s32 %v520_v36  ;;  %v464_v19 = vadd.f32 -3.0, %v463_v18  ;;  %v2317_v18 = vpop.f32.mrf.mxu1 }
 0x695   :  { %v1334_v28 = vmul.f32 0.992, %v1333_v23  ;;  %v824_v12 = vcvt.s32.f32 %v822_v51  ;;  %v757_v51 = vpop.f32.mrf.mxu3 }
 0x696   :  { %v523_v43 = vshll.u32 %v522_v37, 16  ;;  %v465_v21 = vsel %vm413_vm12, 3.0, %v464_v19 }
 0x697   :  { %v1335_v7 = vadd.f32 0.001, %v1334_v28  ;;  %v488_v28 = vsub.f32 %v465_v21, %v487_v61 }
 0x699   :  { %1388 = vrot.lane.b32.xlu2 %v1335_v7, %s1921_s15 }
 0x6c1   :  { %v1077_v63 = vpop.permute.xlu0 %1076 }
 0x6c2   :  { %517 = vadd.xlane.f32.xlu2 %v515_v31  ;;  %1637 = vmatmul.msk.f32.vlgmr.msra.gmra.mxu0 %vm330_vm5, %v1077_v63  ;;  %v491_v31 = vsub.f32 0.0, %v490_v29 }
 0x6c3   :  { %1639 = vmatmul.msk.f32.vlgmr.msra.gmra.mxu1 %vm330_vm5, %v1077_v63  ;;  %v825_v63 = vcvt.s32.f32 %v823_v30 }
 0x6f3   :  { %v1389_v33 = vpop.permute.xlu2 %1388 }
 0x6f4   :  { %1648 = vmatmul.msk.f32.vlgmr.msrb.gmra.mxu0 %vm330_vm5, %v1389_v33  ;;  %1650 = vmatmul.msk.f32.vlgmr.msrb.gmra.mxu1 %vm330_vm5, %v1389_v33  ;;  %v492_v33 = vmul.f32 1.442695, %v491_v31 }
 0x6f6   :  { %1750 = vpow2.f32 %v492_v33 }
 0x6fc   :  { %v1751_v36 = vpop.eup %1750 }
 0x6fd   :  { %v494_v37 = vadd.f32 1.0, %v1751_v36 }
 0x6ff   :  { %1752 = vlog2.f32 %v494_v37  ;;  %v1051_v37 = vsel %vm413_vm12, 3.0, %v2245_v3 }
 0x704   :  { %v1141_v19 = vpop.xlane.xlu0 %1140 }
 0x735   :  { %v518_v34 = vpop.xlane.xlu2 %517 }
 0x736   :  { %v521_v44 = vcvt.f32.s32 %v518_v34  ;;  %v1448_v34 = vcvt.s32.f32 %v1446_v60 }
 0x738   :  { %v2267_v24 = vadd.s32 %v523_v43, %v521_v44  ;;  %v489_v44 = vmax.f32 %v2060_v47, 0.0 }
 0x73a   :  { %vm525_vm2 = vcmp.eq.s32.totalorder %v2109_v22, %v2267_v24  ;;  %v1619_v25 = vadd.s32 4294967295, %v2267_v24 }
 0x73b   :  { %v1618_v54 = vsel %vm525_vm2, 1.0, %v1924_v52 }
 0x73c   :  { %v536_v48 = vmul.f32 %v1618_v54, %v437_v49  ;;  %vm529_vm3 = vcmp.eq.s32.totalorder %v2109_v22, %v1619_v25  ;;  %v540_v0 = vmul.f32 %v1618_v54, %v487_v61  ;;  %v532_v20 = vmul.f32 %v1618_v54, %v436_v41  ;;  %v1753_v41 = vpop.eup %1752 }
 0x73d   :  { %v1620_v56 = vsel %vm529_vm3, 1.0, %v1924_v52  ;;  %v544_v7 = vmul.f32 %v1618_v54, %v488_v28  ;;  %v496_v43 = vmul.f32 0.6931472, %v1753_v41 }
 0x73e   :  { %v537_v57 = vsel %vm330_vm5, %v536_v48, 0.0  ;;  %v1686_v58 = vpack.i.bf16 %v1618_v54, %v1620_v56  ;;  %v541_v10 = vsel %vm330_vm5, %v540_v0, 0.0  ;;  %v533_v23 = vsel %vm330_vm5, %v532_v20, 0.0 }
 0x73f   :  { %538 = vadd.xlane.f32.xlu1 %v537_v57  ;;  %v545_v40 = vsel %vm330_vm5, %v544_v7, 0.0  ;;  %v497_v2 = vadd.f32 %v496_v43, %v489_v44  ;;  %v760_v20 = vmul.f32 6.0, %v757_v51  ;;  %v1143_v7 = vcvt.f32.s32 %v1141_v19 }
 0x740   :  { %1687 = vrot.lane.b32.xlu2 %v1686_v58, %s1925_s17  ;;  %v1120_v41 = vpop.f32.mrf.mxu1 }
 0x741   :  { %v2299_v46 = vadd.f32 0.001, %v497_v2  ;;  %v761_v29 = vadd.f32 -3.0, %v760_v20 }
 0x747   :  { %542 = vadd.xlane.f32.xlu1 %v541_v10 }
 0x74f   :  { %826 = vadd.xlane.f32.xlu1 %v824_v12  ;;  %v2315_v12 = vpop.f32.mrf.mxu0 }
 0x757   :  { %1452 = vadd.xlane.f32.xlu1 %v1449_v8  ;;  %v1069_v8 = vpop.f32.mrf.mxu3  ;;  %v1097_v30 = vpop.f32.mrf.mxu0 }
 0x758   :  { %v1072_v28 = vmul.f32 6.0, %v1069_v8 }
 0x75f   :  { %v1381_v2 = vpop.f32.mrf.mxu3 }
 0x760   :  { %v1384_v3 = vmul.f32 6.0, %v1381_v2 }
 0x769   :  { %534 = vadd.xlane.f32.xlu2 %v533_v23 }
 0x771   :  { %546 = vadd.xlane.f32.xlu2 %v545_v40 }
 0x779   :  { %828 = vadd.xlane.f32.xlu2 %v825_v63  ;;  %v2324_v63 = vadd.f32 -3.0, %v1072_v28 }
 0x781   :  { %1138 = vadd.xlane.f32.xlu2 %v1136_v35  ;;  %v1144_v35 = vshll.u32 %v1143_v7, 16 }
 0x789   :  { %1450 = vadd.xlane.f32.xlu2 %v1448_v34  ;;  %v1100_v34 = vmul.f32 6.0, %v1097_v30 }
 0x79a   :  { %v1688_v45 = vpop.permute.xlu2 %1687 }
 0x79b   :  { %v1690_v49 = vunpack.i.h.bf16 %v1688_v45  ;;  %v1689_v50 = vunpack.i.l.bf16 %v1688_v45 }
 0x79d   :  { %v582_v13 = vmul.f32 %v1690_v49, %v2299_v46  ;;  %v568_v25 = vmul.f32 %v1689_v50, %v2299_v46  ;;  %v1074_v50 = vsub.f32 %v1051_v37, %v2324_v63 }
 0x79f   :  { %584 = vrot.lane.b32.xlu0 %v582_v13, %s1926_s18 }
 0x7a7   :  { %570 = vrot.lane.b32.xlu0 %v568_v25, %s1926_s18  ;;  %v1123_v25 = vmul.f32 6.0, %v1120_v41 }
 0x7b2   :  { %v539_v54 = vpop.xlane.xlu1 %538 }
 0x7b3   :  { %1754 = vrcp.f32 %v539_v54  ;;  %v559_v57 = vand.u32 2147483648, %v539_v54  ;;  %vm553_vm6 = vweird.f32 %v539_v54  ;;  %v557_v58 = vand.u32 2147483647, %v539_v54 }
 0x7b5   :  { %v560_v61 = vor.u32 1.1754944e-38, %v559_v57  ;;  %vm558_vm8 = vcmp.eq.f32.partialorder %v557_v58, 8.507059e+37 }
 0x7b9   :  { %v1755_v55 = vpop.eup %1754 }
 0x7ba   :  { %v549_v48 = vmul.f32 %v1755_v55, %v539_v54  ;;  %vm554_vm14 = vweird.f32 %v1755_v55  ;;  %v2311_v10 = vpop.xlane.xlu1 %542 }
 0x7bb   :  { %vm555_vm7 = vmor %vm553_vm6, %vm554_vm14  ;;  %vm577_vm6 = vcmp.eq.s32.totalorder %v2267_v24, 7 }
 0x7bc   :  { %v550_v47 = vsub.f32 1.0, %v549_v48 }
 0x7be   :  { %v551_v16 = vmul.f32 %v1755_v55, %v550_v47 }
 0x7c0   :  { %v552_v56 = vadd.f32 %v1755_v55, %v551_v16 }
 0x7c2   :  { %v556_v59 = vsel %vm555_vm7, %v1755_v55, %v552_v56  ;;  %v827_v14 = vpop.xlane.xlu1 %826  ;;  %v1101_v55 = vadd.f32 -3.0, %v1100_v34  ;;  %v1124_v56 = vadd.f32 -3.0, %v1123_v25 }
 0x7c3   :  { %v2306_v6 = vsel %vm558_vm8, %v560_v61, %v556_v59  ;;  %v830_v21 = vcvt.f32.s32 %v827_v14  ;;  %v2344_v59 = vadd.f32 -3.0, %v1384_v3  ;;  %vm563_vm8 = vcmp.eq.s32.totalorder %v2267_v24, 0 }
 0x7c4   :  { %v1102_v61 = vsel %vm413_vm12, 3.0, %v1101_v55 }
 0x7c5   :  { %v1125_v14 = vsub.f32 %v1102_v61, %v1124_v56 }
 0x7ca   :  { %v1453_v43 = vpop.xlane.xlu1 %1452 }
 0x7cb   :  { %v1455_v54 = vcvt.f32.s32 %v1453_v43 }
 0x7cd   :  { %v1456_v57 = vshll.u32 %v1455_v54, 16 }
 0x7dc   :  { %v535_v0 = vpop.xlane.xlu2 %534 }
 0x7dd   :  { %v591_v4 = vsub.f32 %v2049_v38, %v535_v0  ;;  %v1363_v0 = vsel %vm413_vm12, 3.0, %v2282_v62 }
 0x7df   :  { %v2309_v9 = vmul.f32 %v591_v4, %v2306_v6 }
 0x7e4   :  { %v2313_v11 = vpop.xlane.xlu2 %546 }
 0x7ec   :  { %v829_v15 = vpop.xlane.xlu2 %828 }
 0x7ed   :  { %v831_v17 = vcvt.f32.s32 %v829_v15  ;;  %v1386_v15 = vsub.f32 %v1363_v0, %v2344_v59 }
 0x7ef   :  { %v832_v23 = vshll.u32 %v831_v17, 16 }
 0x7f1   :  { %v2319_v40 = vadd.s32 %v832_v23, %v830_v21  ;;  %v739_v21 = vsel %vm413_vm12, 3.0, %v2272_v26 }
 0x7f2   :  { %v762_v7 = vsub.f32 %v739_v21, %v761_v29 }
 0x7f3   :  { %vm834_vm9 = vcmp.eq.s32.totalorder %v2109_v22, %v2319_v40  ;;  %v1630_v31 = vadd.s32 4294967295, %v2319_v40 }
 0x7f4   :  { %v1139_v33 = vpop.xlane.xlu2 %1138  ;;  %v2327_v53 = vsel %vm834_vm9, 1.0, %v1924_v52 }
 0x7f5   :  { %v1142_v36 = vcvt.f32.s32 %v1139_v33  ;;  %v841_v60 = vmul.f32 %v2327_v53, %v761_v29  ;;  %vm838_vm11 = vcmp.eq.s32.totalorder %v2109_v22, %v1630_v31  ;;  %v845_v30 = vmul.f32 %v2327_v53, %v762_v7 }
 0x7f6   :  { %v1631_v44 = vsel %vm838_vm11, 1.0, %v1924_v52  ;;  %v811_v33 = vmul.f32 6.0, %v2317_v18 }
 0x7f7   :  { %v2335_v45 = vadd.s32 %v1144_v35, %v1142_v36  ;;  %v842_v49 = vsel %vm330_vm5, %v841_v60, 0.0  ;;  %v1691_v13 = vpack.i.bf16 %v2327_v53, %v1631_v44  ;;  %v788_v35 = vmul.f32 6.0, %v2315_v12 }
 0x7f8   :  { %843 = vadd.xlane.f32.xlu0 %v842_v49  ;;  %v846_v36 = vsel %vm330_vm5, %v845_v30, 0.0  ;;  %v812_v26 = vadd.f32 -3.0, %v811_v33 }
 0x7f9   :  { %1692 = vrot.lane.b32.xlu1 %v1691_v13, %s1927_s19  ;;  %vm1146_vm15 = vcmp.eq.s32.totalorder %v2109_v22, %v2335_v45  ;;  %v789_v37 = vadd.f32 -3.0, %v788_v35  ;;  %v1641_v43 = vadd.s32 4294967295, %v2335_v45 }
 0x7fa   :  { %v1640_v48 = vsel %vm1146_vm15, 1.0, %v1924_v52  ;;  %v849_v29 = vmul.f32 %v2327_v53, %v812_v26 }
 0x7fb   :  { %v1157_v47 = vmul.f32 %v1640_v48, %v1074_v50  ;;  %v1165_v17 = vmul.f32 %v1640_v48, %v1125_v14  ;;  %v790_v34 = vsel %vm413_vm12, 3.0, %v789_v37  ;;  %vm1150_vm3 = vcmp.eq.s32.totalorder %v2109_v22, %v1641_v43 }
 0x7fc   :  { %v1451_v16 = vpop.xlane.xlu2 %1450  ;;  %v850_v41 = vsel %vm330_vm5, %v849_v29, 0.0  ;;  %v813_v18 = vsub.f32 %v790_v34, %v812_v26  ;;  %v1642_v2 = vsel %vm1150_vm3, 1.0, %v1924_v52  ;;  %v1153_v25 = vmul.f32 %v1640_v48, %v2324_v63 }
 0x7fd   :  { %v1454_v58 = vcvt.f32.s32 %v1451_v16  ;;  %v1158_v51 = vsel %vm330_vm5, %v1157_v47, 0.0  ;;  %v1166_v62 = vsel %vm330_vm5, %v1165_v17, 0.0  ;;  %v1696_v13 = vpack.i.bf16 %v1640_v48, %v1642_v2 }
 0x7fe   :  { %v853_v12 = vmul.f32 %v2327_v53, %v813_v18  ;;  %v1154_v53 = vsel %vm330_vm5, %v1153_v25, 0.0  ;;  %v1161_v54 = vmul.f32 %v1640_v48, %v1124_v56 }
 0x7ff   :  { %v2351_v4 = vadd.s32 %v1456_v57, %v1454_v58 }
 0x800   :  { %1159 = vadd.xlane.f32.xlu0 %v1158_v51  ;;  %v854_v44 = vsel %vm330_vm5, %v853_v12, 0.0  ;;  %v1162_v3 = vsel %vm330_vm5, %v1161_v54, 0.0 }
 0x801   :  { %vm1458_vm0 = vcmp.eq.s32.totalorder %v2109_v22, %v2351_v4  ;;  %v1652_v20 = vadd.s32 4294967295, %v2351_v4 }
 0x802   :  { %v2358_v8 = vsel %vm1458_vm0, 1.0, %v1924_v52 }
 0x803   :  { %v2361_v19 = vmul.f32 %v2358_v8, %v1386_v15  ;;  %vm1462_vm2 = vcmp.eq.s32.totalorder %v2109_v22, %v1652_v20 }
 0x804   :  { %v1653_v31 = vsel %vm1462_vm2, 1.0, %v1924_v52 }
 0x805   :  { %v1701_v60 = vpack.i.bf16 %v2358_v8, %v1653_v31 }
 0x808   :  { %1167 = vadd.xlane.f32.xlu0 %v1166_v62 }
 0x811   :  { %v585_v23 = vpop.permute.xlu0 %584 }
 0x812   :  { %v587_v28 = vsel %vm330_vm5, %v585_v23, 0.0 }
 0x813   :  { %588 = vadd.xlane.f32.xlu2 %v587_v28 }
 0x819   :  { %v571_v49 = vpop.permute.xlu0 %570 }
 0x81a   :  { %v573_v50 = vsel %vm330_vm5, %v571_v49, 0.0 }
 0x81b   :  { %847 = vadd.xlane.f32.xlu2 %v846_v36 }
 0x81c   :  { %1702 = vrot.lane.b32.xlu0 %v1701_v60, %s1926_s18 }
 0x823   :  { %851 = vadd.xlane.f32.xlu1 %v850_v41  ;;  %v562_v41 = vmul.f32 %v2306_v6, %v2313_v11 }
 0x825   :  { %v601_v6 = vmul.f32 2.0, %v562_v41  ;;  %v595_v24 = vmul.f32 %v2309_v9, %v562_v41 }
 0x82b   :  { %855 = vadd.xlane.f32.xlu1 %v854_v44  ;;  %v593_v44 = vsub.f32 1.0, %v2309_v9 }
 0x833   :  { %1697 = vrot.lane.b32.xlu2 %v1696_v13, %s1928_s3  ;;  %574 = vadd.xlane.f32.xlu1 %v573_v50 }
 0x85c   :  { %1155 = vadd.xlane.f32.xlu2 %v1154_v53 }
 0x864   :  { %1163 = vadd.xlane.f32.xlu2 %v1162_v3  ;;  %v594_v3 = vmul.f32 %v593_v44, %v2309_v9 }
 0x86b   :  { %v1693_v55 = vpop.permute.xlu1 %1692  ;;  %v844_v57 = vpop.xlane.xlu0 %843 }
 0x86c   :  { %v1694_v47 = vunpack.i.l.bf16 %v1693_v55  ;;  %v1695_v16 = vunpack.i.h.bf16 %v1693_v55  ;;  %v900_v60 = vsub.f32 %v2049_v38, %v844_v57  ;;  %v625_v57 = vmul.f32 %v601_v6, %v594_v3 }
 0x86e   :  { %v877_v52 = vmul.f32 %v1694_v47, %v2299_v46  ;;  %v891_v58 = vmul.f32 %v1695_v16, %v2299_v46 }
 0x870   :  { %879 = vrot.lane.b32.xlu1 %v877_v52, %s1928_s3 }
 0x873   :  { %v2394_v61 = vpop.xlane.xlu0 %1159 }
 0x874   :  { %vm1174_vm3 = vweird.f32 %v2394_v61 }
 0x87b   :  { %v2396_v56 = vpop.xlane.xlu0 %1167 }
 0x87c   :  { %1258 = vperm.xlu2 %1706, %v2091_v1  }
 0x884   :  { %893 = vrot.lane.b32.xlu2 %v891_v58, %s1928_s3 }
 0x885   :  { %1710 = vset.pattern.permute.xlu2 %v1922_v39 }
 0x886   :  { %v589_v63 = vpop.xlane.xlu2 %588 }
 0x887   :  { %v590_v29 = vsel %vm577_vm6, 1.0, %v589_v63 }
 0x888   :  { %v623_v2 = vmul.f32 %v2309_v9, %v590_v29 }
 0x88a   :  { %v624_v55 = vmul.f32 %v623_v2, %v2309_v9 }
 0x88e   :  { %v848_v48 = vpop.xlane.xlu2 %847  ;;  %v1703_v30 = vpop.permute.xlu0 %1702 }
 0x88f   :  { %1756 = vrcp.f32 %v848_v48  ;;  %v868_v28 = vand.u32 2147483648, %v848_v48  ;;  %v866_v31 = vand.u32 2147483647, %v848_v48  ;;  %vm862_vm13 = vweird.f32 %v848_v48 }
 0x890   :  { %v1704_v35 = vunpack.i.l.bf16 %v1703_v30  ;;  %v1705_v54 = vunpack.i.h.bf16 %v1703_v30  ;;  %v596_v30 = vmul.f32 %v595_v24, %v2309_v9 }
 0x891   :  { %v869_v36 = vor.u32 1.1754944e-38, %v868_v28  ;;  %vm867_vm7 = vcmp.eq.f32.partialorder %v866_v31, 8.507059e+37 }
 0x892   :  { %v1501_v43 = vmul.f32 %v1704_v35, %v2299_v46 }
 0x895   :  { %v1757_v0 = vpop.eup %1756 }
 0x896   :  { %v858_v51 = vmul.f32 %v1757_v0, %v848_v48  ;;  %v2398_v14 = vpop.xlane.xlu1 %851  ;;  %v1698_v15 = vpop.permute.xlu2 %1697  ;;  %vm863_vm4 = vweird.f32 %v1757_v0  ;;  %v1515_v48 = vmul.f32 %v1705_v54, %v2299_v46 }
 0x897   :  { %v1700_v17 = vunpack.i.h.bf16 %v1698_v15  ;;  %v1699_v62 = vunpack.i.l.bf16 %v1698_v15  ;;  %vm864_vm14 = vmor %vm862_vm13, %vm863_vm4 }
 0x898   :  { %v859_v20 = vsub.f32 1.0, %v858_v51 }
 0x899   :  { %v1203_v21 = vmul.f32 %v1700_v17, %v2299_v46  ;;  %v1189_v23 = vmul.f32 %v1699_v62, %v2299_v46 }
 0x89a   :  { %v860_v7 = vmul.f32 %v1757_v0, %v859_v20 }
 0x89b   :  { %1205 = vrot.lane.b32.xlu2 %v1203_v21, %s1927_s19  ;;  %1191 = vrot.lane.b32.xlu1 %v1189_v23, %s1927_s19 }
 0x89c   :  { %v861_v33 = vadd.f32 %v1757_v0, %v860_v7 }
 0x89e   :  { %v2406_v26 = vpop.xlane.xlu1 %855  ;;  %v865_v37 = vsel %vm864_vm14, %v1757_v0, %v861_v33  ;;  %v626_v0 = vadd.f32 %v625_v57, %v624_v55  ;;  %vm640_vm14 = vcmp.eq.s32.totalorder %v2145_v27, 1 }
 0x89f   :  { %v870_v34 = vsel %vm867_vm7, %v869_v36, %v865_v37  ;;  %v622_v37 = vmul.f32 %v562_v41, %v562_v41  ;;  %vm886_vm7 = vcmp.eq.s32.totalorder %v2319_v40, 7 }
 0x8a0   :  { %v2411_v18 = vmul.f32 %v870_v34, %v2406_v26  ;;  %v2413_v12 = vmul.f32 %v900_v60, %v870_v34 }
 0x8a2   :  { %v2419_v49 = vsub.f32 1.0, %v2413_v12  ;;  %v904_v13 = vmul.f32 %v2413_v12, %v2411_v18  ;;  %v2432_v53 = vmul.f32 2.0, %v2411_v18 }
 0x8a3   :  { %1503 = vrot.lane.b32.xlu2 %v1501_v43, %s1925_s17 }
 0x8a4   :  { %v2426_v50 = vmul.f32 %v2419_v49, %v2413_v12  ;;  %v2429_v25 = vmul.f32 %v904_v13, %v2413_v12 }
 0x8a6   :  { %v575_v47 = vpop.xlane.xlu1 %574  ;;  %v2439_v52 = vmul.f32 %v2432_v53, %v2426_v50 }
 0x8a7   :  { %v576_v16 = vsel %vm563_vm8, 1.0, %v575_v47  ;;  %vm1198_vm8 = vcmp.eq.s32.totalorder %v2335_v45, 7 }
 0x8a8   :  { %v600_v58 = vadd.f32 %v590_v29, %v576_v16  ;;  %v627_v63 = vmul.f32 %v593_v44, %v576_v16  ;;  %v597_v23 = vmul.f32 %v594_v3, %v576_v16  ;;  %v1180_v16 = vand.u32 2147483648, %v2394_v61 }
 0x8aa   :  { %v602_v51 = vsub.f32 %v600_v58, %v601_v6  ;;  %v628_v15 = vmul.f32 %v627_v63, %v593_v44  ;;  %v598_v33 = vadd.f32 %v597_v23, %v596_v30  ;;  %v1181_v58 = vor.u32 1.1754944e-38, %v1180_v16 }
 0x8ab   :  { %1517 = vrot.lane.b32.xlu2 %v1515_v48, %s1925_s17 }
 0x8ac   :  { %v603_v17 = vmul.f32 %v602_v51, %v594_v3  ;;  %v629_v62 = vadd.f32 %v628_v15, %v626_v0  ;;  %v599_v43 = vmul.f32 %v598_v33, %v2313_v11  ;;  %v1178_v11 = vand.u32 2147483647, %v2394_v61  ;;  %v1432_v33 = vpop.f32.mrf.mxu1 }
 0x8ae   :  { %v604_v20 = vadd.f32 %v603_v17, %v562_v41  ;;  %v630_v44 = vmul.f32 %v629_v62, %v622_v37  ;;  %vm1179_vm13 = vcmp.eq.f32.partialorder %v1178_v11, 8.507059e+37  ;;  %v1470_v11 = vsel %vm330_vm5, %v2361_v19, 0.0 }
 0x8b0   :  { %1758 = vrcp.f32 %v604_v20  ;;  %v616_v31 = vand.u32 2147483648, %v604_v20  ;;  %v614_v36 = vand.u32 2147483647, %v604_v20  ;;  %vm610_vm11 = vweird.f32 %v604_v20 }
 0x8b1   :  { %1760 = vrcp.f32 %v2394_v61 }
 0x8b2   :  { %v617_v34 = vor.u32 1.1754944e-38, %v616_v31  ;;  %vm615_vm0 = vcmp.eq.f32.partialorder %v614_v36, 8.507059e+37  ;;  %v1435_v36 = vmul.f32 6.0, %v1432_v33 }
 0x8b6   :  { %v1759_v21 = vpop.eup %1758 }
 0x8b7   :  { %v606_v28 = vmul.f32 %v1759_v21, %v604_v20  ;;  %v1761_v7 = vpop.eup %1760  ;;  %vm611_vm9 = vweird.f32 %v1759_v21 }
 0x8b8   :  { %v1170_v60 = vmul.f32 %v1761_v7, %v2394_v61  ;;  %vm612_vm15 = vmor %vm610_vm11, %vm611_vm9  ;;  %vm1175_vm2 = vweird.f32 %v1761_v7 }
 0x8b9   :  { %v607_v46 = vsub.f32 1.0, %v606_v28  ;;  %vm1176_vm4 = vmor %vm1174_vm3, %vm1175_vm2  ;;  %vm1184_vm2 = vcmp.eq.s32.totalorder %v2335_v45, 0 }
 0x8ba   :  { %v1171_v13 = vsub.f32 1.0, %v1170_v60 }
 0x8bb   :  { %v608_v35 = vmul.f32 %v1759_v21, %v607_v46 }
 0x8bc   :  { %v1172_v47 = vmul.f32 %v1761_v7, %v1171_v13 }
 0x8bd   :  { %v609_v29 = vadd.f32 %v1759_v21, %v608_v35  ;;  %v1409_v35 = vpop.f32.mrf.mxu0 }
 0x8be   :  { %v1173_v41 = vadd.f32 %v1761_v7, %v1172_v47  ;;  %v1412_v60 = vmul.f32 6.0, %v1409_v35 }
 0x8bf   :  { %v613_v2 = vsel %vm612_vm15, %v1759_v21, %v609_v29 }
 0x8c0   :  { %v618_v9 = vsel %vm615_vm0, %v617_v34, %v613_v2  ;;  %v1177_v57 = vsel %vm1176_vm4, %v1761_v7, %v1173_v41  ;;  %v1436_v34 = vadd.f32 -3.0, %v1435_v36 }
 0x8c1   :  { %v620_v6 = vmul.f32 %v618_v9, %v599_v43  ;;  %v631_v54 = vmul.f32 %v630_v44, %v618_v9  ;;  %v1182_v63 = vsel %vm1179_vm13, %v1181_v58, %v1177_v57  ;;  %v1413_v43 = vadd.f32 -3.0, %v1412_v60 }
 0x8c2   :  { %v2458_v51 = vmul.f32 %v1182_v63, %v2396_v56  ;;  %v1473_v44 = vmul.f32 %v2358_v8, %v1436_v34 }
 0x8c3   :  { %v621_v3 = vadd.f32 %v620_v6, %v2311_v10  ;;  %v2449_v55 = vmul.f32 %v631_v54, %v618_v9  ;;  %v1465_v10 = vmul.f32 %v2358_v8, %v2344_v59  ;;  %v1414_v2 = vsel %vm413_vm12, 3.0, %v1413_v43 }
 0x8c4   :  { %v2473_v59 = vmul.f32 2.0, %v2458_v51  ;;  %v1437_v13 = vsub.f32 %v1414_v2, %v1436_v34  ;;  %vm635_vm12 = vcmp.eq.s32.totalorder %v2109_v22, 0 }
 0x8c5   :  { %644 = vperm.xlu1 %1707, %v621_v3   ;;  %v1466_v17 = vsel %vm330_vm5, %v1465_v10, 0.0  ;;  %vm2503_vm6 = vmand %vm635_vm12, %vm640_vm14  ;;  %vm1510_vm12 = vcmp.eq.s32.totalorder %v2351_v4, 7 }
 0x8c6   :  { %v1477_v9 = vmul.f32 %v2358_v8, %v1437_v13 }
 0x8c8   :  { %v1478_v6 = vsel %vm330_vm5, %v1477_v9, 0.0 }
 0x8cf   :  { %v1156_v48 = vpop.xlane.xlu2 %1155 }
 0x8d0   :  { %v1212_v0 = vsub.f32 %v2049_v38, %v1156_v48 }
 0x8d2   :  { %v2460_v15 = vmul.f32 %v1212_v0, %v1182_v63  ;;  %v2512_v63 = vld [vmem:[%s2588_s0] sm:$0xff]  ;;  %s1929_s0 = smov 127  }
 0x8d4   :  { %1467 = vadd.xlane.f32.xlu2 %v1466_v17  ;;  %v2464_v61 = vsub.f32 1.0, %v2460_v15  ;;  %v1216_v62 = vmul.f32 %v2460_v15, %v2458_v51 }
 0x8d6   :  { %v2470_v20 = vmul.f32 %v2464_v61, %v2460_v15  ;;  %v2476_v24 = vmul.f32 %v1216_v62, %v2460_v15 }
 0x8d7   :  { %v2478_v21 = vpop.xlane.xlu2 %1163 }
 0x8d8   :  { %v2482_v23 = vmul.f32 %v2473_v59, %v2470_v20 }
 0x8df   :  { %v2484_v28 = vpop.permute.xlu2 %1258 }
 0x8e2   :  { %v880_v7 = vpop.permute.xlu1 %879 }
 0x8e3   :  { %v882_v30 = vsel %vm330_vm5, %v880_v7, 0.0 }
 0x8e4   :  { %883 = vadd.xlane.f32.xlu0 %v882_v30 }
 0x8e7   :  { %v894_v46 = vpop.permute.xlu2 %893 }
 0x8e8   :  { %v896_v31 = vsel %vm330_vm5, %v894_v46, 0.0 }
 0x8ec   :  { %1570 = vperm.xlu2 %1710, %v2091_v1   ;;  %v1474_v1 = vsel %vm330_vm5, %v1473_v44, 0.0 }
 0x8ef   :  { %897 = vadd.xlane.f32.xlu1 %v896_v31 }
 0x8f5   :  { %v1206_v37 = vpop.permute.xlu2 %1205 }
 0x8f6   :  { %v1208_v29 = vsel %vm330_vm5, %v1206_v37, 0.0 }
 0x8f7   :  { %1209 = vadd.xlane.f32.xlu1 %v1208_v29 }
 0x8fd   :  { %v1504_v54 = vpop.permute.xlu2 %1503 }
 0x8fe   :  { %v1506_v41 = vsel %vm330_vm5, %v1504_v54, 0.0 }
 0x8ff   :  { %1475 = vadd.xlane.f32.xlu1 %v1474_v1 }
 0x905   :  { %v1518_v16 = vpop.permute.xlu2 %1517 }
 0x906   :  { %v1520_v57 = vsel %vm330_vm5, %v1518_v16, 0.0 }
 0x907   :  { %1479 = vadd.xlane.f32.xlu1 %v1478_v6 }
 0x90d   :  { %v1192_v3 = vpop.permute.xlu1 %1191 }
 0x90e   :  { %v1194_v47 = vsel %vm330_vm5, %v1192_v3, 0.0  ;;  %vm872_vm5 = vcmp.eq.s32.totalorder %v2319_v40, 0 }
 0x90f   :  { %1195 = vadd.xlane.f32.xlu0 %v1194_v47  ;;  %1507 = vadd.xlane.f32.xlu1 %v1506_v41 }
 0x917   :  { %1471 = vadd.xlane.f32.xlu0 %v1470_v11  ;;  %1521 = vadd.xlane.f32.xlu1 %v1520_v57 }
 0x937   :  { %v2507_v58 = vpop.permute.xlu1 %644 }
 0x938   :  { %v647_v19 = vsel %vm2503_vm6, %v2507_v58, %v2512_v63  ;;  %vm1587_vm6 = vcmask 7168  }
 0x957   :  { %v884_v48 = vpop.xlane.xlu0 %883 }
 0x958   :  { %v885_v27 = vsel %vm872_vm5, 1.0, %v884_v48 }
 0x959   :  { %v906_v10 = vmul.f32 %v2426_v50, %v885_v27  ;;  %v936_v0 = vmul.f32 %v2419_v49, %v885_v27 }
 0x95b   :  { %v907_v17 = vadd.f32 %v906_v10, %v2429_v25  ;;  %v937_v62 = vmul.f32 %v936_v0, %v2419_v49  ;;  %v931_v25 = vmul.f32 %v2411_v18, %v2411_v18 }
 0x95d   :  { %v908_v54 = vmul.f32 %v907_v17, %v2406_v26 }
 0x962   :  { %v898_v7 = vpop.xlane.xlu1 %897 }
 0x963   :  { %v899_v30 = vsel %vm886_vm7, 1.0, %v898_v7  ;;  %v1243_v7 = vmul.f32 %v2458_v51, %v2458_v51 }
 0x964   :  { %v909_v46 = vadd.f32 %v899_v30, %v885_v27  ;;  %v932_v31 = vmul.f32 %v2413_v12, %v899_v30 }
 0x966   :  { %v911_v33 = vsub.f32 %v909_v46, %v2432_v53  ;;  %v933_v35 = vmul.f32 %v932_v31, %v2413_v12 }
 0x968   :  { %v912_v36 = vmul.f32 %v911_v33, %v2426_v50  ;;  %v935_v60 = vadd.f32 %v2439_v52, %v933_v35 }
 0x96a   :  { %v913_v49 = vadd.f32 %v912_v36, %v2411_v18  ;;  %v938_v37 = vadd.f32 %v937_v62, %v935_v60  ;;  %v1210_v40 = vpop.xlane.xlu1 %1209 }
 0x96b   :  { %v1211_v29 = vsel %vm1198_vm8, 1.0, %v1210_v40 }
 0x96c   :  { %1762 = vrcp.f32 %v913_v49  ;;  %v939_v34 = vmul.f32 %v938_v37, %v931_v25  ;;  %v1244_v53 = vmul.f32 %v2460_v15, %v1211_v29  ;;  %v925_v2 = vand.u32 2147483648, %v913_v49 }
 0x96d   :  { %v923_v18 = vand.u32 2147483647, %v913_v49  ;;  %vm919_vm11 = vweird.f32 %v913_v49 }
 0x96e   :  { %v1245_v12 = vmul.f32 %v1244_v53, %v2460_v15  ;;  %v926_v6 = vor.u32 1.1754944e-38, %v925_v2 }
 0x96f   :  { %vm924_vm0 = vcmp.eq.f32.partialorder %v923_v18, 8.507059e+37 }
 0x970   :  { %v1247_v50 = vadd.f32 %v2482_v23, %v1245_v12 }
 0x972   :  { %v1763_v43 = vpop.eup %1762  ;;  %v2536_v9 = vpop.xlane.xlu1 %1475 }
 0x973   :  { %v915_v52 = vmul.f32 %v1763_v43, %v913_v49  ;;  %vm920_vm9 = vweird.f32 %v1763_v43 }
 0x974   :  { %vm921_vm15 = vmor %vm919_vm11, %vm920_vm9  ;;  %vm1496_vm11 = vcmp.eq.s32.totalorder %v2351_v4, 0 }
 0x975   :  { %v916_v44 = vsub.f32 1.0, %v915_v52 }
 0x977   :  { %v917_v1 = vmul.f32 %v1763_v43, %v916_v44 }
 0x979   :  { %v918_v13 = vadd.f32 %v1763_v43, %v917_v1 }
 0x97a   :  { %v2541_v48 = vpop.xlane.xlu1 %1479 }
 0x97b   :  { %v922_v3 = vsel %vm921_vm15, %v1763_v43, %v918_v13 }
 0x97c   :  { %v927_v15 = vsel %vm924_vm0, %v926_v6, %v922_v3 }
 0x97d   :  { %v929_v47 = vmul.f32 %v927_v15, %v908_v54  ;;  %v940_v23 = vmul.f32 %v939_v34, %v927_v15 }
 0x97f   :  { %v930_v41 = vadd.f32 %v929_v47, %v2398_v14  ;;  %v941_v16 = vmul.f32 %v940_v23, %v927_v15 }
 0x981   :  { %952 = vperm.xlu0 %1708, %v930_v41   ;;  %1764 = vlog2.f32 %v941_v16 }
 0x982   :  { %v1196_v11 = vpop.xlane.xlu0 %1195 }
 0x983   :  { %v1197_v57 = vsel %vm1184_vm2, 1.0, %v1196_v11 }
 0x984   :  { %v1218_v27 = vmul.f32 %v2470_v20, %v1197_v57  ;;  %v1221_v10 = vadd.f32 %v1211_v29, %v1197_v57  ;;  %v1248_v26 = vmul.f32 %v2464_v61, %v1197_v57 }
 0x986   :  { %v1219_v0 = vadd.f32 %v1218_v27, %v2476_v24  ;;  %v1223_v17 = vsub.f32 %v1221_v10, %v2473_v59  ;;  %v1249_v14 = vmul.f32 %v1248_v26, %v2464_v61  ;;  %v1508_v61 = vpop.xlane.xlu1 %1507 }
 0x987   :  { %v1765_v62 = vpop.eup %1764  ;;  %v1509_v47 = vsel %vm1496_vm11, 1.0, %v1508_v61 }
 0x988   :  { %v1224_v45 = vmul.f32 %v1223_v17, %v2470_v20  ;;  %v1250_v30 = vadd.f32 %v1249_v14, %v1247_v50  ;;  %v943_v46 = vmul.f32 0.6931472, %v1765_v62  ;;  %v1220_v2 = vmul.f32 %v1219_v0, %v2396_v56 }
 0x989   :  { %1709 = vset.pattern.permute.xlu0 %v1923_v42  ;;  %v1468_v42 = vpop.xlane.xlu2 %1467 }
 0x98a   :  { %v1225_v31 = vadd.f32 %v1224_v45, %v2458_v51  ;;  %v1251_v33 = vmul.f32 %v1250_v30, %v1243_v7  ;;  %v1472_v35 = vpop.xlane.xlu0 %1471  ;;  %v956_v24 = vsel %vm2084_vm10, %v943_v46, 0.0  ;;  %v1524_v43 = vsub.f32 %v2049_v38, %v1468_v42 }
 0x98b   :  { %1766 = vrcp.f32 %v1472_v35  ;;  %958 = vrot.lane.b32.xlu1 %v956_v24, %s1929_s0  ;;  %v1492_v49 = vand.u32 2147483648, %v1472_v35  ;;  %v1490_v51 = vand.u32 2147483647, %v1472_v35  ;;  %vm1486_vm13 = vweird.f32 %v1472_v35 }
 0x98c   :  { %1768 = vrcp.f32 %v1225_v31  ;;  %v1237_v29 = vand.u32 2147483648, %v1225_v31  ;;  %v1235_v53 = vand.u32 2147483647, %v1225_v31  ;;  %vm1231_vm5 = vweird.f32 %v1225_v31 }
 0x98d   :  { %v1493_v52 = vor.u32 1.1754944e-38, %v1492_v49  ;;  %vm1491_vm7 = vcmp.eq.f32.partialorder %v1490_v51, 8.507059e+37 }
 0x98e   :  { %v1522_v50 = vpop.xlane.xlu1 %1521  ;;  %v1238_v18 = vor.u32 1.1754944e-38, %v1237_v29  ;;  %vm1236_vm9 = vcmp.eq.f32.partialorder %v1235_v53, 8.507059e+37 }
 0x98f   :  { %v1523_v6 = vsel %vm1510_vm12, 1.0, %v1522_v50  ;;  %vm1256_vm12 = vcmp.eq.s32.totalorder %v2109_v22, 2 }
 0x990   :  { %v1533_v56 = vadd.f32 %v1523_v6, %v1509_v47 }
 0x991   :  { %v1767_v59 = vpop.eup %1766 }
 0x992   :  { %v1769_v36 = vpop.eup %1768  ;;  %v1482_v60 = vmul.f32 %v1767_v59, %v1472_v35  ;;  %vm1487_vm3 = vweird.f32 %v1767_v59 }
 0x993   :  { %v1227_v20 = vmul.f32 %v1769_v36, %v1225_v31  ;;  %vm1232_vm4 = vweird.f32 %v1769_v36  ;;  %vm1488_vm14 = vmor %vm1486_vm13, %vm1487_vm3  ;;  %vm948_vm13 = vcmp.eq.s32.totalorder %v2260_v32, 1 }
 0x994   :  { %v1483_v25 = vsub.f32 1.0, %v1482_v60  ;;  %vm1233_vm8 = vmor %vm1231_vm5, %vm1232_vm4  ;;  %vm944_vm4 = vcmp.eq.s32.totalorder %v2109_v22, 1 }
 0x995   :  { %v1228_v37 = vsub.f32 1.0, %v1227_v20  ;;  %vm949_vm5 = vmand %vm944_vm4, %vm948_vm13 }
 0x996   :  { %v1484_v40 = vmul.f32 %v1767_v59, %v1483_v25 }
 0x997   :  { %v1229_v34 = vmul.f32 %v1769_v36, %v1228_v37 }
 0x998   :  { %v1485_v12 = vadd.f32 %v1767_v59, %v1484_v40 }
 0x999   :  { %v1230_v44 = vadd.f32 %v1769_v36, %v1229_v34 }
 0x99a   :  { %v1489_v1 = vsel %vm1488_vm14, %v1767_v59, %v1485_v12  ;;  %vm1260_vm14 = vcmp.eq.s32.totalorder %v2484_v28, 1 }
 0x99b   :  { %v1494_v13 = vsel %vm1491_vm7, %v1493_v52, %v1489_v1  ;;  %v1234_v54 = vsel %vm1233_vm8, %v1769_v36, %v1230_v44  ;;  %vm1261_vm7 = vmand %vm1256_vm12, %vm1260_vm14  ;;  %vm1568_vm8 = vcmp.eq.s32.totalorder %v2109_v22, 3 }
 0x99c   :  { %v1495_v3 = vmul.f32 %v1494_v13, %v2541_v48  ;;  %v1525_v15 = vmul.f32 %v1524_v43, %v1494_v13  ;;  %v1239_v38 = vsel %vm1236_vm9, %v1238_v18, %v1234_v54  ;;  %v1571_v54 = vpop.permute.xlu2 %1570 }
 0x99d   :  { %v1241_v23 = vmul.f32 %v1239_v38, %v1220_v2  ;;  %v1252_v41 = vmul.f32 %v1251_v33, %v1239_v38  ;;  %vm1572_vm9 = vcmp.eq.s32.totalorder %v1571_v54, 1 }
 0x99e   :  { %v1534_v16 = vmul.f32 2.0, %v1495_v3  ;;  %v1526_v11 = vsub.f32 1.0, %v1525_v15  ;;  %v1556_v14 = vmul.f32 %v1525_v15, %v1523_v6  ;;  %v1528_v30 = vmul.f32 %v1525_v15, %v1495_v3  ;;  %vm1573_vm11 = vmand %vm1568_vm8, %vm1572_vm9 }
 0x99f   :  { %v1242_v57 = vadd.f32 %v1241_v23, %v2478_v21  ;;  %v1253_v27 = vmul.f32 %v1252_v41, %v1239_v38  ;;  %v1555_v37 = vmul.f32 %v1495_v3, %v1495_v3 }
 0x9a0   :  { %v1527_v10 = vmul.f32 %v1526_v11, %v1525_v15  ;;  %v1535_v26 = vsub.f32 %v1533_v56, %v1534_v16  ;;  %v1557_v46 = vmul.f32 %v1556_v14, %v1525_v15  ;;  %v1560_v21 = vmul.f32 %v1526_v11, %v1509_v47 }
 0x9a1   :  { %1264 = vperm.xlu0 %1709, %v1242_v57   ;;  %1770 = vlog2.f32 %v1253_v27  ;;  %v1529_v61 = vmul.f32 %v1528_v30, %v1525_v15 }
 0x9a2   :  { %v1536_v0 = vmul.f32 %v1535_v26, %v1527_v10  ;;  %v1558_v7 = vmul.f32 %v1534_v16, %v1527_v10  ;;  %v1530_v33 = vmul.f32 %v1527_v10, %v1509_v47  ;;  %v1561_v59 = vmul.f32 %v1560_v21, %v1526_v11 }
 0x9a4   :  { %v1537_v17 = vadd.f32 %v1536_v0, %v1495_v3  ;;  %v1559_v35 = vadd.f32 %v1558_v7, %v1557_v46  ;;  %v1531_v60 = vadd.f32 %v1530_v33, %v1529_v61 }
 0x9a6   :  { %1772 = vrcp.f32 %v1537_v17  ;;  %v1549_v20 = vand.u32 2147483648, %v1537_v17  ;;  %v1562_v25 = vadd.f32 %v1561_v59, %v1559_v35  ;;  %vm1543_vm0 = vweird.f32 %v1537_v17 }
 0x9a7   :  { %v1771_v4 = vpop.eup %1770  ;;  %v1532_v29 = vmul.f32 %v1531_v60, %v2541_v48 }
 0x9a8   :  { %v1255_v62 = vmul.f32 0.6931472, %v1771_v4  ;;  %v1550_v40 = vor.u32 1.1754944e-38, %v1549_v20  ;;  %v1563_v51 = vmul.f32 %v1562_v25, %v1555_v37 }
 0x9a9   :  { %1711 = vset.pattern.permute.xlu0 %v1922_v39  ;;  %v1547_v39 = vand.u32 2147483647, %v1537_v17 }
 0x9aa   :  { %v1268_v45 = vsel %vm2084_vm10, %v1255_v62, 0.0 }
 0x9ab   :  { %1270 = vrot.lane.b32.xlu0 %v1268_v45, %s1930_s23  ;;  %vm1548_vm3 = vcmp.eq.f32.partialorder %v1547_v39, 8.507059e+37 }
 0x9ac   :  { %v1773_v31 = vpop.eup %1772 }
 0x9ad   :  { %v1539_v24 = vmul.f32 %v1773_v31, %v1537_v17  ;;  %vm1544_vm15 = vweird.f32 %v1773_v31 }
 0x9ae   :  { %vm1545_vm2 = vmor %vm1543_vm0, %vm1544_vm15 }
 0x9af   :  { %v1540_v36 = vsub.f32 1.0, %v1539_v24 }
 0x9b1   :  { %v1541_v49 = vmul.f32 %v1773_v31, %v1540_v36 }
 0x9b3   :  { %v1542_v42 = vadd.f32 %v1773_v31, %v1541_v49 }
 0x9b5   :  { %v1546_v34 = vsel %vm1545_vm2, %v1773_v31, %v1542_v42 }
 0x9b6   :  { %v1551_v53 = vsel %vm1548_vm3, %v1550_v40, %v1546_v34 }
 0x9b7   :  { %v1553_v12 = vmul.f32 %v1551_v53, %v1532_v29  ;;  %v1564_v50 = vmul.f32 %v1563_v51, %v1551_v53 }
 0x9b9   :  { %v1554_v43 = vadd.f32 %v1553_v12, %v2536_v9  ;;  %v1565_v52 = vmul.f32 %v1564_v50, %v1551_v53 }
 0x9bb   :  { %1576 = vperm.xlu0 %1711, %v1554_v43   ;;  %1774 = vlog2.f32 %v1565_v52 }
 0x9bc   :  { %1776 = vlog2.f32 %v2449_v55 }
 0x9c1   :  { %v1775_v44 = vpop.eup %1774 }
 0x9c2   :  { %v1567_v2 = vmul.f32 0.6931472, %v1775_v44  ;;  %v1777_v32 = vpop.eup %1776 }
 0x9c3   :  { %v634_v15 = vmul.f32 0.6931472, %v1777_v32 }
 0x9c4   :  { %v1580_v1 = vsel %vm2084_vm10, %v1567_v2, 0.0 }
 0x9c5   :  { %1582 = vrot.lane.b32.xlu1 %v1580_v1, %s1931_s11  ;;  %v648_v8 = vsel %vm2084_vm10, %v634_v15, 0.0 }
 0x9f3   :  { %v953_v18 = vpop.permute.xlu0 %952 }
 0x9f4   :  { %v955_v9 = vsel %vm949_vm5, %v953_v18, %v647_v19 }
 0x9fd   :  { %v959_v38 = vpop.permute.xlu1 %958 }
 0x9fe   :  { %v961_v58 = vadd.f32 %v959_v38, %v648_v8 }
 0xa13   :  { %v1265_v48 = vpop.permute.xlu0 %1264 }
 0xa14   :  { %v1267_v13 = vsel %vm1261_vm7, %v1265_v48, %v955_v9 }
 0xa1d   :  { %v1271_v6 = vpop.permute.xlu0 %1270 }
 0xa1e   :  { %v1273_v63 = vadd.f32 %v1271_v6, %v961_v58 }
 0xa2d   :  { %v1577_v28 = vpop.permute.xlu0 %1576 }
 0xa2e   :  { %v1579_v3 = vsel %vm1573_vm11, %v1577_v28, %v1267_v13 }
 0xa2f   :  { %1586 = vst.msk [vmem:[%s2601_s13] sm:$0xff] %vm130_vm1, %v1579_v3 }
 0xa37   :  { %v1583_v55 = vpop.permute.xlu1 %1582 }
 0xa38   :  { %v1585_v22 = vadd.f32 %v1583_v55, %v1273_v63 }
 0xa3a   :  { %1588 = vst.msk [vmem:[%s2602_s14] sm:$0xff] %vm1587_vm6, %v1585_v22 }
 0xa3b   :  { %1597 = vsyncpa [#allocation3], 1 }
 0xa3c   :  { %1598 = vsyncpa [#allocation5], 1 }
 0xa3d   :  { %1599 = vsyncpa [#allocation8], 1 }

</bundles_post_ra>
